<compile_context>
chip_gen: v7x
topology: tpu7x:2x2x1
jax: 0.10.0
libtpu: 0.0.40
codegen_flags: <defaults>
</compile_context>

<pallas_src>
import numpy as np
import jax
import jax.numpy as jnp
from jax.experimental import pallas as pl
from jax.experimental.pallas import tpu as pltpu


# ---------------------------------------------------------------------------
# Fused kernel: selection + fc1(16->512)+ReLU + fc2(512->1024)+ReLU
#               + fc3(1024->out) column tile + Sigmoid.
# The selection/fc1/fc2 part is recomputed per fc3 column tile (it is tiny),
# so grid steps are fully independent -> "parallel" axis (v7x dual-TC split).
# ---------------------------------------------------------------------------
def _fused_decoder_kernel(caps_ref, w1_ref, b1_ref, w2_ref, b2_ref,
                          w3_ref, b3_ref, out_ref):
    caps = caps_ref[...].astype(jnp.float32)                    # (B, N, D)
    B, N, _ = caps.shape

    # argmax over ||v|| == argmax over ||v||^2 (monotone) -> skip the sqrt.
    # Both pick the FIRST maximum, matching torch.argmax; sqrt-rounding ties
    # are pathological only.
    sq = jnp.sum(caps * caps, axis=-1)                           # (B, N)
    iota_n = jax.lax.broadcasted_iota(jnp.int32, (B, N), 1)
    max_sq = jnp.max(sq, axis=-1, keepdims=True)
    cls = jnp.min(jnp.where(sq == max_sq, iota_n, N), axis=-1)   # (B,)
    onehot = (iota_n == cls[:, None]).astype(jnp.float32)        # (B, N)
    selected = jnp.sum(onehot[:, :, None] * caps, axis=1)        # (B, D)

    h1 = jnp.maximum(
        jnp.dot(selected.astype(jnp.bfloat16), w1_ref[...],
                preferred_element_type=jnp.float32) + b1_ref[...], 0.0)
    h2 = jnp.maximum(
        jnp.dot(h1.astype(jnp.bfloat16), w2_ref[...],
                preferred_element_type=jnp.float32) + b2_ref[...], 0.0)
    logits = jnp.dot(h2.astype(jnp.bfloat16), w3_ref[...],
                     preferred_element_type=jnp.float32) + b3_ref[...]
    out_ref[...] = jax.nn.sigmoid(logits).astype(out_ref.dtype)


def mcapsule_decoder(caps, params, output_shape=(3, 16, 16), n_col_tiles=1):
    """caps: (B, num_capsules, capsule_dim) float32.

    params: pre-prepared (bf16 weights, f32 biases, w3/b3 pre-padded) from
    make_params.  n_col_tiles=1 is right for single-TC chips (v5e/v6e); pass
    n_col_tiles=2 on v7x to let the two TensorCores each stream half of W3.
    """
    w1, b1, w2, b2, w3, b3 = params
    B = caps.shape[0]
    out_dim = int(np.prod(output_shape))
    H1 = w1.shape[1]
    H2 = w2.shape[1]
    out_dim_pad = w3.shape[1]                       # pre-padded in make_params

    # Column tiles must keep the lane dim a multiple of 128; otherwise fall
    # back to the single resident tile (always correct, best on 1-TC chips).
    if n_col_tiles < 1 or out_dim_pad % (n_col_tiles * 128) != 0:
        n_col_tiles = 1
    tile_n = out_dim_pad // n_col_tiles

    ce = pl.CostEstimate(
        flops=int(2 * B * (w1.shape[0] * H1 + H1 * H2 + H2 * out_dim_pad)),
        transcendentals=int(B * out_dim_pad),
        bytes_accessed=int(caps.size * 4
                           + (w1.size + w2.size + w3.size) * 2
                           + (b1.size + b2.size + b3.size) * 4
                           + B * out_dim_pad * 4))

    flat = pl.pallas_call(
        _fused_decoder_kernel,
        out_shape=jax.ShapeDtypeStruct((B, out_dim_pad), jnp.float32),
        grid_spec=pltpu.PrefetchScalarGridSpec(
            num_scalar_prefetch=0,
            grid=(n_col_tiles,),
            in_specs=[
                pl.BlockSpec(caps.shape, lambda j: (0, 0, 0)),   # caps (resident)
                pl.BlockSpec(w1.shape, lambda j: (0, 0)),        # W1 (resident)
                pl.BlockSpec(b1.shape, lambda j: (0, 0)),
                pl.BlockSpec(w2.shape, lambda j: (0, 0)),        # W2 (resident)
                pl.BlockSpec(b2.shape, lambda j: (0, 0)),
                pl.BlockSpec((H2, tile_n), lambda j: (0, j)),    # W3 column tile
                pl.BlockSpec((1, tile_n), lambda j: (0, j)),     # b3 tile
            ],
            out_specs=pl.BlockSpec((B, tile_n), lambda j: (0, j)),
        ),
        compiler_params=pltpu.CompilerParams(
            dimension_semantics=("parallel",)),
        cost_estimate=ce,
    )(caps, w1, b1, w2, b2, w3, b3)

    if out_dim_pad != out_dim:
        flat = flat[:, :out_dim]
    return flat.reshape(B, *output_shape)


def _reference(caps, params, output_shape):
    """Pure-JAX reference mirroring the PyTorch forward (bf16 weight storage,
    f32 biases/accumulation — same cast points as the kernel)."""
    w1, b1, w2, b2, w3, b3 = params
    out_dim = int(np.prod(output_shape))
    v_norm = jnp.linalg.norm(caps, axis=-1)
    cls = jnp.argmax(v_norm, axis=-1)
    B = caps.shape[0]
    selected = caps[jnp.arange(B), cls]
    h1 = jnp.maximum(
        jnp.dot(selected.astype(jnp.bfloat16), w1,
                preferred_element_type=jnp.float32) + b1[0], 0.0)
    h2 = jnp.maximum(
        jnp.dot(h1.astype(jnp.bfloat16), w2,
                preferred_element_type=jnp.float32) + b2[0], 0.0)
    out = jax.nn.sigmoid(
        jnp.dot(h2.astype(jnp.bfloat16), w3,
                preferred_element_type=jnp.float32) + b3[0])
    return out[:, :out_dim].reshape(B, *output_shape)


def make_params(key, input_dim, out_dim, h1=512, h2=1024, pad_to=256):
    """Deterministic Linear params. Weights (in, out) stored as bf16 to halve
    HBM weight bytes; biases stay f32.  W3/b3 are padded ONCE here to a
    multiple of `pad_to` (full-width 256-wide MXU passes, no per-call pad).
    """
    ks = jax.random.split(key, 6)

    def lin(kw, kb, fan_in, fan_out, pad_out=0):
        bound = 1.0 / np.sqrt(fan_in)
        w = jax.random.uniform(kw, (fan_in, fan_out), jnp.float32, -bound, bound)
        b = jax.random.uniform(kb, (1, fan_out), jnp.float32, -bound, bound)
        if pad_out:
            w = jnp.pad(w, ((0, 0), (0, pad_out)))
            b = jnp.pad(b, ((0, 0), (0, pad_out)))
        return w.astype(jnp.bfloat16), b

    out_dim_pad = pad_to * int(pl.cdiv(out_dim, pad_to))
    w1, b1 = lin(ks[0], ks[1], input_dim, h1)
    w2, b2 = lin(ks[2], ks[3], h1, h2)
    w3, b3 = lin(ks[4], ks[5], h2, out_dim, pad_out=out_dim_pad - out_dim)
    return (w1, b1, w2, b2, w3, b3)


if __name__ == "__main__":
    # Small shapes consistent with the module: batch 2, num_classes=7 digit
    # capsules of dim 16; decoded image scaled down to (3, 16, 16).
    B, N_CAPS, CAPS_DIM = 2, 7, 16
    OUTPUT_SHAPE = (3, 16, 16)
    OUT_DIM = int(np.prod(OUTPUT_SHAPE))

    key = jax.random.PRNGKey(0)
    k_caps, k_params = jax.random.split(key)
    caps = jax.random.normal(k_caps, (B, N_CAPS, CAPS_DIM), jnp.float32)
    params = make_params(k_params, CAPS_DIM, OUT_DIM)

    # Single-tile fused call (right for v5e/v6e; pass n_col_tiles=2 on v7x).
    out = jax.block_until_ready(
        mcapsule_decoder(caps, params, OUTPUT_SHAPE, n_col_tiles=1))
    ref = jax.block_until_ready(_reference(caps, params, OUTPUT_SHAPE))

    assert out.shape == (B, *OUTPUT_SHAPE), out.shape
    np.testing.assert_allclose(np.asarray(out), np.asarray(ref),
                               atol=1e-4, rtol=1e-4)

    # Also exercise the 2-way column-tiled path (v7x dual-TC layout).
    out2 = jax.block_until_ready(
        mcapsule_decoder(caps, params, OUTPUT_SHAPE, n_col_tiles=2))
    np.testing.assert_allclose(np.asarray(out2), np.asarray(ref),
                               atol=1e-4, rtol=1e-4)

    print("KERNEL_OK")
</pallas_src>

<mosaic_0001>
module attributes {stable_mosaic.version = 11 : i64} {
  func.func @_fused_decoder_kernel(%arg0: i32, %arg1: memref<2x7x16xf32, #tpu.memory_space<vmem>>, %arg2: memref<16x512xbf16, #tpu.memory_space<vmem>>, %arg3: memref<1x512xf32, #tpu.memory_space<vmem>>, %arg4: memref<512x1024xbf16, #tpu.memory_space<vmem>>, %arg5: memref<1x1024xf32, #tpu.memory_space<vmem>>, %arg6: memref<1024x768xbf16, #tpu.memory_space<vmem>>, %arg7: memref<1x768xf32, #tpu.memory_space<vmem>>, %arg8: memref<2x768xf32, #tpu.memory_space<vmem>>) attributes {dimension_semantics = [#tpu.dimension_semantics<parallel>], iteration_bounds = array<i64: 1>, scalar_prefetch = 0 : i64, scratch_operands = 0 : i64, tpu.core_type = #tpu.core_type<tc>, window_params = [{pipeline_mode = #tpu.pipeline_mode<synchronous>, transform_indices = @transform_0, window_bounds = array<i64: 2, 7, 16>}, {pipeline_mode = #tpu.pipeline_mode<synchronous>, transform_indices = @transform_1, window_bounds = array<i64: 16, 512>}, {pipeline_mode = #tpu.pipeline_mode<synchronous>, transform_indices = @transform_2, window_bounds = array<i64: 1, 512>}, {pipeline_mode = #tpu.pipeline_mode<synchronous>, transform_indices = @transform_3, window_bounds = array<i64: 512, 1024>}, {pipeline_mode = #tpu.pipeline_mode<synchronous>, transform_indices = @transform_4, window_bounds = array<i64: 1, 1024>}, {transform_indices = @transform_5, window_bounds = array<i64: 1024, 768>}, {transform_indices = @transform_6, window_bounds = array<i64: 1, 768>}, {transform_indices = @transform_7, window_bounds = array<i64: 2, 768>}]} {
    %c0 = arith.constant 0 : index
    %c0_0 = arith.constant 0 : index
    %c0_1 = arith.constant 0 : index
    %0 = vector.load %arg1[%c0, %c0_0, %c0_1] : memref<2x7x16xf32, #tpu.memory_space<vmem>>, vector<2x7x16xf32>
    %1 = arith.mulf %0, %0 : vector<2x7x16xf32>
    %cst = arith.constant dense<0.000000e+00> : vector<2x7xf32>
    %2 = vector.multi_reduction <add>, %1, %cst [2] : vector<2x7x16xf32> to vector<2x7xf32>
    %3 = tpu.iota {dimensions = array<i32: 1>} : vector<2x7xi32>
    %cst_2 = arith.constant dense<0xFF800000> : vector<2xf32>
    %4 = vector.multi_reduction <maximumf>, %2, %cst_2 [1] : vector<2x7xf32> to vector<2xf32>
    %5 = vector.shape_cast %4 : vector<2xf32> to vector<2x1xf32>
    %6 = vector.broadcast %5 : vector<2x1xf32> to vector<2x7xf32>
    %7 = arith.cmpf oeq, %2, %6 : vector<2x7xf32>
    %c7_i32 = arith.constant 7 : i32
    %8 = vector.broadcast %c7_i32 : i32 to vector<2x7xi32>
    %9 = arith.select %7, %3, %8 : vector<2x7xi1>, vector<2x7xi32>
    %cst_3 = arith.constant dense<2147483647> : vector<2xi32>
    %10 = vector.multi_reduction <minsi>, %9, %cst_3 [1] : vector<2x7xi32> to vector<2xi32>
    %11 = vector.shape_cast %10 : vector<2xi32> to vector<2x1xi32>
    %12 = vector.broadcast %11 : vector<2x1xi32> to vector<2x7xi32>
    %13 = arith.cmpi eq, %3, %12 : vector<2x7xi32>
    %14 = arith.extui %13 : vector<2x7xi1> to vector<2x7xi32>
    %15 = arith.sitofp %14 : vector<2x7xi32> to vector<2x7xf32>
    %16 = vector.shape_cast %15 : vector<2x7xf32> to vector<2x7x1xf32>
    %17 = vector.broadcast %16 : vector<2x7x1xf32> to vector<2x7x16xf32>
    %18 = arith.mulf %17, %0 : vector<2x7x16xf32>
    %cst_4 = arith.constant dense<0.000000e+00> : vector<2x16xf32>
    %19 = vector.multi_reduction <add>, %18, %cst_4 [1] : vector<2x7x16xf32> to vector<2x16xf32>
    %20 = arith.truncf %19 : vector<2x16xf32> to vector<2x16xbf16>
    %c0_5 = arith.constant 0 : index
    %c0_6 = arith.constant 0 : index
    %21 = vector.load %arg2[%c0_5, %c0_6] : memref<16x512xbf16, #tpu.memory_space<vmem>>, vector<16x512xbf16>
    %cst_7 = arith.constant dense<0.000000e+00> : vector<2x512xf32>
    %22 = tpu.matmul %20, %21, %cst_7 {dimension_numbers = #tpu.dot_dimension_numbers<[1], [0], [0], [1], [0, 0, 1, 1], [], []>} : vector<2x16xbf16>, vector<16x512xbf16>, vector<2x512xf32> -> vector<2x512xf32>
    %c0_8 = arith.constant 0 : index
    %c0_9 = arith.constant 0 : index
    %23 = vector.load %arg3[%c0_8, %c0_9] : memref<1x512xf32, #tpu.memory_space<vmem>>, vector<1x512xf32>
    %24 = vector.broadcast %23 : vector<1x512xf32> to vector<2x512xf32>
    %25 = arith.addf %22, %24 : vector<2x512xf32>
    %cst_10 = arith.constant 0.000000e+00 : f32
    %26 = vector.broadcast %cst_10 : f32 to vector<2x512xf32>
    %27 = arith.maximumf %25, %26 : vector<2x512xf32>
    %28 = arith.truncf %27 : vector<2x512xf32> to vector<2x512xbf16>
    %c0_11 = arith.constant 0 : index
    %c0_12 = arith.constant 0 : index
    %29 = vector.load %arg4[%c0_11, %c0_12] : memref<512x1024xbf16, #tpu.memory_space<vmem>>, vector<512x1024xbf16>
    %cst_13 = arith.constant dense<0.000000e+00> : vector<2x1024xf32>
    %30 = tpu.matmul %28, %29, %cst_13 {dimension_numbers = #tpu.dot_dimension_numbers<[1], [0], [0], [1], [0, 0, 1, 1], [], []>} : vector<2x512xbf16>, vector<512x1024xbf16>, vector<2x1024xf32> -> vector<2x1024xf32>
    %c0_14 = arith.constant 0 : index
    %c0_15 = arith.constant 0 : index
    %31 = vector.load %arg5[%c0_14, %c0_15] : memref<1x1024xf32, #tpu.memory_space<vmem>>, vector<1x1024xf32>
    %32 = vector.broadcast %31 : vector<1x1024xf32> to vector<2x1024xf32>
    %33 = arith.addf %30, %32 : vector<2x1024xf32>
    %cst_16 = arith.constant 0.000000e+00 : f32
    %34 = vector.broadcast %cst_16 : f32 to vector<2x1024xf32>
    %35 = arith.maximumf %33, %34 : vector<2x1024xf32>
    %36 = arith.truncf %35 : vector<2x1024xf32> to vector<2x1024xbf16>
    %c0_17 = arith.constant 0 : index
    %c0_18 = arith.constant 0 : index
    %37 = vector.load %arg6[%c0_17, %c0_18] : memref<1024x768xbf16, #tpu.memory_space<vmem>>, vector<1024x768xbf16>
    %cst_19 = arith.constant dense<0.000000e+00> : vector<2x768xf32>
    %38 = tpu.matmul %36, %37, %cst_19 {dimension_numbers = #tpu.dot_dimension_numbers<[1], [0], [0], [1], [0, 0, 1, 1], [], []>} : vector<2x1024xbf16>, vector<1024x768xbf16>, vector<2x768xf32> -> vector<2x768xf32>
    %c0_20 = arith.constant 0 : index
    %c0_21 = arith.constant 0 : index
    %39 = vector.load %arg7[%c0_20, %c0_21] : memref<1x768xf32, #tpu.memory_space<vmem>>, vector<1x768xf32>
    %40 = vector.broadcast %39 : vector<1x768xf32> to vector<2x768xf32>
    %41 = arith.addf %38, %40 : vector<2x768xf32>
    %42 = arith.negf %41 : vector<2x768xf32>
    %43 = math.exp %42 : vector<2x768xf32>
    %cst_22 = arith.constant 1.000000e+00 : f32
    %44 = vector.broadcast %cst_22 : f32 to vector<2x768xf32>
    %45 = arith.addf %44, %43 : vector<2x768xf32>
    %46 = arith.divf %44, %45 : vector<2x768xf32>
    %c0_23 = arith.constant 0 : index
    %c0_24 = arith.constant 0 : index
    %47 = vector.load %arg8[%c0_23, %c0_24] : memref<2x768xf32, #tpu.memory_space<vmem>>, vector<2x768xf32>
    tpu.vector_store %arg8[%c0_23, %c0_24], %46 {strides = array<i32>} : memref<2x768xf32, #tpu.memory_space<vmem>>, vector<2x768xf32>,
    return
  }
  func.func @transform_0(%arg0: i32) -> (i32, i32, i32) {
    %c0_i32 = arith.constant 0 : i32
    %c0_i32_0 = arith.constant 0 : i32
    %c0_i32_1 = arith.constant 0 : i32
    %c0_i32_2 = arith.constant 0 : i32
    return %c0_i32, %c0_i32_0, %c0_i32_1 : i32, i32, i32
  }
  func.func @transform_1(%arg0: i32) -> (i32, i32) {
    %c0_i32 = arith.constant 0 : i32
    %c0_i32_0 = arith.constant 0 : i32
    %c0_i32_1 = arith.constant 0 : i32
    return %c0_i32, %c0_i32_0 : i32, i32
  }
  func.func @transform_2(%arg0: i32) -> (i32, i32) {
    %c0_i32 = arith.constant 0 : i32
    %c0_i32_0 = arith.constant 0 : i32
    %c0_i32_1 = arith.constant 0 : i32
    return %c0_i32, %c0_i32_0 : i32, i32
  }
  func.func @transform_3(%arg0: i32) -> (i32, i32) {
    %c0_i32 = arith.constant 0 : i32
    %c0_i32_0 = arith.constant 0 : i32
    %c0_i32_1 = arith.constant 0 : i32
    return %c0_i32, %c0_i32_0 : i32, i32
  }
  func.func @transform_4(%arg0: i32) -> (i32, i32) {
    %c0_i32 = arith.constant 0 : i32
    %c0_i32_0 = arith.constant 0 : i32
    %c0_i32_1 = arith.constant 0 : i32
    return %c0_i32, %c0_i32_0 : i32, i32
  }
  func.func @transform_5(%arg0: i32) -> (i32, i32) {
    %c0_i32 = arith.constant 0 : i32
    %c0_i32_0 = arith.constant 0 : i32
    return %c0_i32, %arg0 : i32, i32
  }
  func.func @transform_6(%arg0: i32) -> (i32, i32) {
    %c0_i32 = arith.constant 0 : i32
    %c0_i32_0 = arith.constant 0 : i32
    return %c0_i32, %arg0 : i32, i32
  }
  func.func @transform_7(%arg0: i32) -> (i32, i32) {
    %c0_i32 = arith.constant 0 : i32
    %c0_i32_0 = arith.constant 0 : i32
    return %c0_i32, %arg0 : i32, i32
  }
}

</mosaic_0001>

<bundles_post_ra>
// kernel: tpu_custom_call.1
= control target key start
LH: loop header
LB: loop body
LE: loop exit
PB: predicated region body
PF: predicated region fallthrough
CT: control target
= control target key end

     0   :  { %12 = vsyncpa [#allocation3], 0  ;;  %s7015_s0 = inlined_call_operand.vmem [shape: f32[2,7,16], index: 0, kind: input, shape index: {}]   ;;  %s7016_s1 = inlined_call_operand.hbm [shape: bf16[16,512], index: 1, kind: input, shape index: {}]   ;;  %s7017_s2 = inlined_call_operand.hbm [shape: f32[1,512], index: 2, kind: input, shape index: {}]   ;;  %s7018_s3 = inlined_call_operand.hbm [shape: bf16[512,1024], index: 3, kind: input, shape index: {}]   ;;  %s7019_s4 = inlined_call_operand.hbm [shape: f32[1,1024], index: 4, kind: input, shape index: {}]   ;;  %s7020_s5 = inlined_call_operand.hbm [shape: bf16[1024,768], index: 5, kind: input, shape index: {}]   ;;  %s7021_s6 = inlined_call_operand.hbm [shape: f32[1,768], index: 6, kind: input, shape index: {}]   ;;  %s7022_s7 = inlined_call_operand.hbm [shape: f32[2,768], index: 7, kind: output, shape index: {}]  }
   0x1   :  { %13 = vsyncpa [#allocation6], 0 }
   0x2   :  { %14 = vsyncpa [#allocation9], 0 }
   0x3   :  { %15 = vsyncpa [#allocation12], 0 }
   0x4   :  { %16 = vsyncpa [#allocation4], 0  ;;  %s6711_s24 = smov [#allocation5]   ;;  %s6712_s26 = smov [#allocation8]  }
   0x5   :  { %s37_s25 = sshll.u32 %s6711_s24, 4  ;;  %s59_s27 = sshll.u32 %s6712_s26, 4  ;;  %s38_s25 = int_to_ptr.vmem [resolvable:$true] %s37_s25  ;;  %s60_s27 = int_to_ptr.vmem [resolvable:$true] %s59_s27 }
   0x6   :  { %s6547_s30 = scalar_lea.hbm %s7017_s2, 64 }
   0x7   :  { %p6548_p0 = scmp.ne.s32.totalorder %s7017_s2, %s6547_s30  ;;  %p6551_p1 = scmp.lt.u32.totalorder %s6547_s30, %s7017_s2 }
   0x9   :  { %p6553_p2 = pnand %p6551_p1, %p6548_p0 }
   0xb   :  { %6556 = shalt.err (!%p6553_p2)
}
   0xc   :  { %s6557_s12 = scalar_lea.vmem %s38_s25, 64  ;;  %p6562_p4 = scmp.lt.s32.totalorder %s38_s25, %s38_s25 }
   0xd   :  { %p6558_p3 = scmp.ne.s32.totalorder %s38_s25, %s6557_s12  ;;  %p6563_p5 = scmp.lt.s32.totalorder %s6557_s12, %s6557_s12 }
   0xf   :  { %p6564_p6 = por %p6563_p5, %p6562_p4 }
  0x11   :  { %p6565_p7 = pnand %p6564_p6, %p6558_p3 }
  0x13   :  { %6568 = shalt.err (!%p6565_p7)
}
  0x14   :  { %40 = dma.hbm_to_vmem [thread:$0]  %s7017_s2, 64, %s38_s25, [#allocation6]  }
  0x15   :  { %s6569_s17 = scalar_lea.hbm %s7019_s4, 128 }
  0x16   :  { %p6570_p8 = scmp.ne.s32.totalorder %s7019_s4, %s6569_s17  ;;  %p6573_p9 = scmp.lt.u32.totalorder %s6569_s17, %s7019_s4 }
  0x18   :  { %p6575_p10 = pnand %p6573_p9, %p6570_p8 }
  0x1a   :  { %6578 = shalt.err (!%p6575_p10)
}
  0x1b   :  { %s6579_s22 = scalar_lea.vmem %s60_s27, 128  ;;  %p6584_p12 = scmp.lt.s32.totalorder %s60_s27, %s60_s27 }
  0x1c   :  { %p6580_p11 = scmp.ne.s32.totalorder %s60_s27, %s6579_s22  ;;  %p6585_p13 = scmp.lt.s32.totalorder %s6579_s22, %s6579_s22 }
  0x1e   :  { %p6586_p0 = por %p6585_p13, %p6584_p12 }
  0x20   :  { %p6587_p1 = pnand %p6586_p0, %p6580_p11 }
  0x22   :  { %6590 = shalt.err (!%p6587_p1)
}
  0x23   :  { %62 = dma.hbm_to_vmem [thread:$0]  %s7019_s4, 128, %s60_s27, [#allocation9]  }
  0x24   :  { %s6713_s24 = smov [#allocation2]   ;;  %s6591_s29 = scalar_lea.hbm %s7016_s1, 512 }
  0x25   :  { %s24_s25 = sshll.u32 %s6713_s24, 4  ;;  %p6592_p2 = scmp.ne.s32.totalorder %s7016_s1, %s6591_s29  ;;  %s25_s25 = int_to_ptr.vmem [resolvable:$true] %s24_s25 }
  0x26   :  { %p6595_p3 = scmp.lt.u32.totalorder %s6591_s29, %s7016_s1 }
  0x28   :  { %p6597_p4 = pnand %p6595_p3, %p6592_p2 }
  0x2a   :  { %6600 = shalt.err (!%p6597_p4)
}
  0x2b   :  { %s6601_s11 = scalar_lea.vmem %s25_s25, 512  ;;  %p6606_p6 = scmp.lt.s32.totalorder %s25_s25, %s25_s25 }
  0x2c   :  { %p6602_p5 = scmp.ne.s32.totalorder %s25_s25, %s6601_s11  ;;  %p6607_p7 = scmp.lt.s32.totalorder %s6601_s11, %s6601_s11 }
  0x2e   :  { %p6608_p8 = por %p6607_p7, %p6606_p6 }
  0x30   :  { %p6609_p9 = pnand %p6608_p8, %p6602_p5 }
  0x32   :  { %6612 = shalt.err (!%p6609_p9)
}
  0x33   :  { %s6714_s4 = smov 256   ;;  %s6715_s27 = smov 16  }
  0x34   :  { %30 = dma.hbm_to_vmem [thread:$0]  %s7016_s1, 512, %s25_s25, [#allocation3], %s6714_s4, %s6714_s4, %s6715_s27  }
  0x35   :  { %s6716_s14 = smov [#allocation7]   ;;  %s6613_s18 = scalar_lea.hbm %s7018_s3, 32768 }
  0x36   :  { %s46_s15 = sshll.u32 %s6716_s14, 4  ;;  %p6614_p10 = scmp.ne.s32.totalorder %s7018_s3, %s6613_s18  ;;  %s47_s15 = int_to_ptr.vmem [resolvable:$true] %s46_s15 }
  0x37   :  { %p6617_p11 = scmp.lt.u32.totalorder %s6613_s18, %s7018_s3 }
  0x39   :  { %p6619_p12 = pnand %p6617_p11, %p6614_p10 }
  0x3b   :  { %6622 = shalt.err (!%p6619_p12)
}
  0x3c   :  { %s6623_s2 = scalar_lea.vmem %s47_s15, 32768  ;;  %p6628_p0 = scmp.lt.s32.totalorder %s47_s15, %s47_s15 }
  0x3d   :  { %p6624_p13 = scmp.ne.s32.totalorder %s47_s15, %s6623_s2  ;;  %p6629_p1 = scmp.lt.s32.totalorder %s6623_s2, %s6623_s2 }
  0x3f   :  { %p6630_p2 = por %p6629_p1, %p6628_p0 }
  0x41   :  { %p6631_p3 = pnand %p6630_p2, %p6624_p13 }
  0x43   :  { %6634 = shalt.err (!%p6631_p3)
}
  0x44   :  { %s6717_s1 = smov 512   ;;  %s6718_s23 = smov 32  }
  0x45   :  { %52 = dma.hbm_to_vmem [thread:$0]  %s7018_s3, 32768, %s47_s15, [#allocation6], %s6717_s1, %s6717_s1, %s6718_s23  }
  0x46   :  { %s6719_s26 = smov [#allocation10]   ;;  %s6635_s8 = scalar_lea.hbm %s7020_s5, 49152 }
  0x47   :  { %s68_s28 = sshll.u32 %s6719_s26, 4  ;;  %p6636_p4 = scmp.ne.s32.totalorder %s7020_s5, %s6635_s8  ;;  %s69_s28 = int_to_ptr.vmem [resolvable:$true] %s68_s28 }
  0x48   :  { %p6639_p5 = scmp.lt.u32.totalorder %s6635_s8, %s7020_s5 }
  0x4a   :  { %p6641_p6 = pnand %p6639_p5, %p6636_p4 }
  0x4c   :  { %6644 = shalt.err (!%p6641_p6)
}
  0x4d   :  { %s6645_s27 = scalar_lea.vmem %s69_s28, 49152  ;;  %p6650_p8 = scmp.lt.s32.totalorder %s69_s28, %s69_s28 }
  0x4e   :  { %p6646_p7 = scmp.ne.s32.totalorder %s69_s28, %s6645_s27  ;;  %p6651_p9 = scmp.lt.s32.totalorder %s6645_s27, %s6645_s27 }
  0x50   :  { %p6652_p10 = por %p6651_p9, %p6650_p8 }
  0x52   :  { %p6653_p11 = pnand %p6652_p10, %p6646_p7 }
  0x54   :  { %6656 = shalt.err (!%p6653_p11)
}
  0x55   :  { %s6720_s3 = smov 384   ;;  %s6721_s12 = smov 24  }
  0x56   :  { %74 = dma.hbm_to_vmem [thread:$0]  %s7020_s5, 49152, %s69_s28, [#allocation9], %s6720_s3, %s6720_s3, %s6721_s12  }
  0x57   :  { %s6722_s15 = smov [#allocation11]   ;;  %s6657_s19 = scalar_lea.hbm %s7021_s6, 96 }
  0x58   :  { %s81_s16 = sshll.u32 %s6722_s15, 4  ;;  %p6658_p12 = scmp.ne.s32.totalorder %s7021_s6, %s6657_s19  ;;  %s82_s16 = int_to_ptr.vmem [resolvable:$true] %s81_s16 }
  0x59   :  { %p6661_p13 = scmp.lt.u32.totalorder %s6657_s19, %s7021_s6 }
  0x5b   :  { %p6663_p0 = pnand %p6661_p13, %p6658_p12 }
  0x5d   :  { %6666 = shalt.err (!%p6663_p0)
}
  0x5e   :  { %s6667_s1 = scalar_lea.vmem %s82_s16, 96  ;;  %p6672_p2 = scmp.lt.s32.totalorder %s82_s16, %s82_s16 }
  0x5f   :  { %p6668_p1 = scmp.ne.s32.totalorder %s82_s16, %s6667_s1  ;;  %p6673_p3 = scmp.lt.s32.totalorder %s6667_s1, %s6667_s1 }
  0x61   :  { %p6674_p4 = por %p6673_p3, %p6672_p2 }
  0x63   :  { %p6675_p5 = pnand %p6674_p4, %p6668_p1 }
  0x65   :  { %6678 = shalt.err (!%p6675_p5)
}
  0x66   :  { %84 = dma.hbm_to_vmem [thread:$0]  %s7021_s6, 96, %s82_s16, [#allocation12]  }
  0x67   :  { %6701 = dma.done.wait [#allocation3], 512  }
  0x68   :  { %6702 = vsyncadd [#allocation3], 4294966784 }
  0x69   :  { %6703 = dma.done.wait [#allocation6], 32832  }
  0x6a   :  { %6704 = vsyncadd [#allocation6], 4294934464 }
  0x6b   :  { %6705 = dma.done.wait [#allocation9], 49280  }
  0x6c   :  { %6706 = vsyncadd [#allocation9], 4294918016 }
  0x6d   :  { %6707 = dma.done.wait [#allocation12], 96  }
  0x6e   :  { %6708 = vsyncadd [#allocation12], 4294967200  ;;  %v6842_v0 = vld [vmem:[%s7015_s0] sm:$0x7f]  ;;  %vm108_vm0 = vcmask 129024   ;;  %v115_v6 = vlaneseq  ;;  %vm127_vm1 = vcmask 1041409  }
  0x6f   :  { %v6847_v1 = vld [vmem:[%s7015_s0 + $0x8] sm:$0x7f]  ;;  %v106_v2 = vmul.f32 %v6842_v0, %v6842_v0  ;;  %vm130_vm2 = vcmask 50176   ;;  %v6723_v16 = vmov 0   ;;  %v6724_v42 = vmov 0.0   ;;  %v365_v52 = vld [vmem:[#allocation7 + $0x10] sm:$0xff] }
  0x70   :  { %v107_v3 = vmul.f32 %v6847_v1, %v6847_v1  ;;  %v116_v7 = vand.u32 127, %v115_v6  ;;  %v6855_v8 = vshrl.u32 %v115_v6, 7  ;;  %5939 = vset.pattern.permute.xlu1 %v6723_v16  ;;  %5938 = vset.pattern.permute.xlu0 %v6723_v16  ;;  %v5940_v46 = vld [vmem:[#allocation2 + $0x4] ss:$16 sps:$4 sm:$0xff]   ;;  %v5942_v47 = vld [vmem:[#allocation2 + $0xc] ss:$16 sps:$4 sm:$0xff]  }
  0x71   :  { %v109_v4 = vsel %vm108_vm0, %v106_v2, 0.0  ;;  %305 = vmatprep.mubr.bf16.mxu0 %v6723_v16  ;;  %346 = vmatprep.mubr.bf16.mxu1 %v6723_v16  ;;  %v5944_v48 = vld [vmem:[#allocation2] ss:$16 sps:$4 sm:$0xff]   ;;  %v5945_v49 = vld [vmem:[#allocation2 + $0x8] ss:$16 sps:$4 sm:$0xff]   ;;  %vm269_vm7 = vcmask 130048  }
  0x72   :  { %110 = vadd.xlane.f32.xlu0 %v109_v4  ;;  %v112_v5 = vsel %vm108_vm0, %v107_v3, 0.0  ;;  %v121_v10 = vsub.s32 %v116_v7, %v6855_v8  ;;  %v6861_v17 = vsub.s32 0, %v6855_v8  ;;  %v6864_v18 = vsub.s32 1, %v6855_v8  ;;  %273 = vmatprep.subr.bf16.mxu0 %v5940_v46  ;;  %v363_v50 = vld [vmem:[#allocation7] sm:$0xff]  ;;  %v369_v55 = vld [vmem:[#allocation7 + $0x30] sm:$0xff]  ;;  %s6726_s0 = smov [#allocation13]  }
  0x73   :  { %314 = vmatprep.subr.bf16.mxu1 %v5942_v47  ;;  %274 = vmatpush1.bf16.msra.mxu0 %v5944_v48  ;;  %v367_v51 = vld [vmem:[#allocation7 + $0x20] sm:$0xff]  ;;  %v5213_v56 = vcombine.low %v365_v52, %v369_v55  ;;  %v5214_v57 = vcombine.high %v365_v52, %v369_v55  ;;  %v401_v46 = vld [vmem:[#allocation7 + $0x130] sm:$0xff]  ;;  %s5190_s6 = sshll.u32 %s6726_s0, 4  ;;  %s5191_s6 = int_to_ptr.vmem [resolvable:$true] %s5190_s6 }
  0x74   :  { %315 = vmatpush1.bf16.msra.mxu1 %v5945_v49  ;;  %v5209_v53 = vcombine.low %v363_v50, %v367_v51  ;;  %v5210_v54 = vcombine.high %v363_v50, %v367_v51  ;;  %v371_v16 = vld [vmem:[#allocation7 + $0x40] sm:$0xff]  ;;  %s6679_s29 = scalar_lea.vmem %s5191_s6, 192  ;;  %p6684_p7 = scmp.lt.s32.totalorder %s5191_s6, %s5191_s6 }
  0x75   :  { %2105 = vmatprep.subr.bf16.mxu0 %v5214_v57  ;;  %v403_v51 = vld [vmem:[#allocation7 + $0x140] sm:$0xff]  ;;  %p6680_p6 = scmp.ne.s32.totalorder %s5191_s6, %s6679_s29  ;;  %p6685_p8 = scmp.lt.s32.totalorder %s6679_s29, %s6679_s29 }
  0x76   :  { %113 = vadd.xlane.f32.xlu0 %v112_v5  ;;  %1941 = vmatprep.subr.bf16.mxu1 %v5210_v54  ;;  %v407_v52 = vld [vmem:[#allocation7 + $0x160] sm:$0xff]  ;;  %v409_v54 = vld [vmem:[#allocation7 + $0x170] sm:$0xff] }
  0x77   :  { %v5250_v57 = vcombine.high %v403_v51, %v407_v52  ;;  %p6686_p9 = por %p6685_p8, %p6684_p7 }
  0x79   :  { %p6687_p10 = pnand %p6686_p9, %p6680_p6 }
  0xff   :  { %v111_v9 = vpop.xlane.xlu0 %110 }
 0x100   :  { %v122_v12 = vrot.slane %v111_v9, %v121_v10 }
 0x103   :  { %v114_v11 = vpop.xlane.xlu0 %113 }
 0x104   :  { %v126_v13 = vrot.slane %v114_v11, %v121_v10 }
 0x106   :  { %v128_v14 = vsel %vm127_vm1, %v126_v13, %v122_v12 }
 0x107   :  { %v131_v15 = vsel %vm130_vm2, %v128_v14, -inf }
 0x108   :  { %132 = vmax.xlane.f32.xlu1 %v131_v15 }
 0x119   :  { %148 = vbcast.lane.b32.xlu1 %v116_v7, 256 }
 0x195   :  { %v133_v19 = vpop.xlane.xlu1 %132 }
 0x196   :  { %v138_v20 = vrot.slane %v133_v19, %v6861_v17  ;;  %v142_v21 = vrot.slane %v133_v19, %v6864_v18 }
 0x198   :  { %vm146_vm3 = vcmp.eq.f32.partialorder %v114_v11, %v142_v21  ;;  %vm145_vm4 = vcmp.eq.f32.partialorder %v111_v9, %v138_v20  ;;  %v375_v21 = vld [vmem:[#allocation7 + $0x60] sm:$0xff] }
 0x199   :  { %v149_v22 = vpop.permute.xlu1 %148 }
 0x19a   :  { %v151_v23 = vsel %vm146_vm3, %v149_v22, 7  ;;  %v150_v24 = vsel %vm145_vm4, %v149_v22, 7  ;;  %v377_v22 = vld [vmem:[#allocation7 + $0x70] sm:$0xff] }
 0x19b   :  { %156 = vperm.xlu1 %5939, %v151_v23   ;;  %153 = vperm.xlu0 %5938, %v150_v24  }
 0x21a   :  { %v157_v25 = vpop.permute.xlu1 %156  ;;  %v154_v26 = vpop.permute.xlu0 %153 }
 0x21b   :  { %v165_v27 = vrot.slane %v157_v25, %v121_v10  ;;  %v161_v28 = vrot.slane %v154_v26, %v121_v10  ;;  %v5218_v25 = vcombine.high %v371_v16, %v375_v21 }
 0x21d   :  { %v166_v29 = vsel %vm127_vm1, %v165_v27, %v161_v28  ;;  %v379_v27 = vld [vmem:[#allocation7 + $0x80] sm:$0xff] }
 0x21e   :  { %v167_v30 = vsel %vm130_vm2, %v166_v29, 2147483647  ;;  %v383_v28 = vld [vmem:[#allocation7 + $0xa0] sm:$0xff]  ;;  %v381_v29 = vld [vmem:[#allocation7 + $0x90] sm:$0xff] }
 0x21f   :  { %v169_v31 = vshra.s32 %v167_v30, 16  ;;  %v168_v33 = vand.u32 65535, %v167_v30  ;;  %v385_v30 = vld [vmem:[#allocation7 + $0xb0] sm:$0xff] }
 0x221   :  { %v171_v32 = vcvt.s32.f32 %v169_v31  ;;  %v170_v35 = vcvt.s32.f32 %v168_v33  ;;  %v5217_v31 = vcombine.low %v371_v16, %v375_v21  ;;  %v5226_v33 = vcombine.high %v379_v27, %v383_v28  ;;  %v433_v16 = vld [vmem:[#allocation7 + $0x230] sm:$0xff] }
 0x223   :  { %172 = vmin.xlane.f32.xlu1 %v171_v32 }
 0x2b0   :  { %v173_v34 = vpop.xlane.xlu1 %172 }
 0x2b1   :  { %vm174_vm5 = vcmp.eq.f32.partialorder %v171_v32, %v173_v34  ;;  %v179_v37 = vcvt.f32.s32 %v173_v34  ;;  %v5230_v34 = vcombine.high %v381_v29, %v385_v30 }
 0x2b2   :  { %v175_v36 = vsel %vm174_vm5, %v170_v35, inf  ;;  %v387_v35 = vld [vmem:[#allocation7 + $0xc0] sm:$0xff] }
 0x2b3   :  { %176 = vmin.xlane.f32.xlu0 %v175_v36  ;;  %v180_v39 = vshll.u32 %v179_v37, 16  ;;  %v391_v36 = vld [vmem:[#allocation7 + $0xe0] sm:$0xff]  ;;  %v389_v37 = vld [vmem:[#allocation7 + $0xd0] sm:$0xff] }
 0x2b4   :  { %v5233_v47 = vcombine.low %v387_v35, %v391_v36 }
 0x340   :  { %v177_v38 = vpop.xlane.xlu0 %176 }
 0x341   :  { %v178_v40 = vcvt.f32.s32 %v177_v38  ;;  %v393_v38 = vld [vmem:[#allocation7 + $0xf0] sm:$0xff] }
 0x342   :  { %v5237_v48 = vcombine.low %v389_v37, %v393_v38 }
 0x343   :  { %v181_v41 = vadd.s32 %v180_v39, %v178_v40  ;;  %v5225_v39 = vcombine.low %v379_v27, %v383_v28  ;;  %v5229_v40 = vcombine.low %v381_v29, %v385_v30  ;;  %v443_v30 = vld [vmem:[#allocation7 + $0x280] sm:$0xff] }
 0x345   :  { %vm182_vm6 = vcmp.eq.s32.totalorder %v116_v7, %v181_v41  ;;  %v5234_v41 = vcombine.high %v387_v35, %v391_v36 }
 0x346   :  { %v5202_v43 = vsel %vm182_vm6, 1.0, %v6724_v42  ;;  %v5238_v42 = vcombine.high %v389_v37, %v393_v38  ;;  %v451_v38 = vld [vmem:[#allocation7 + $0x2c0] sm:$0xff] }
 0x347   :  { %v188_v44 = vrot.slane %v5202_v43, %v6861_v17  ;;  %v195_v45 = vrot.slane %v5202_v43, %v6864_v18  ;;  %v395_v43 = vld [vmem:[#allocation7 + $0x100] sm:$0xff] }
 0x349   :  { %190 = vbcast.lane.b32.xlu1 %v188_v44, 256  ;;  %v399_v44 = vld [vmem:[#allocation7 + $0x120] sm:$0xff] }
 0x34a   :  { %v5242_v49 = vcombine.high %v395_v43, %v399_v44  ;;  %v5241_v55 = vcombine.low %v395_v43, %v399_v44 }
 0x34d   :  { %197 = vbcast.lane.b32.xlu1 %v195_v45, 256  ;;  %v397_v45 = vld [vmem:[#allocation7 + $0x110] sm:$0xff] }
 0x34e   :  { %v5246_v50 = vcombine.high %v397_v45, %v401_v46 }
 0x3bb   :  { %v191_v58 = vpop.permute.xlu1 %190 }
 0x3bc   :  { %v199_v59 = vmul.f32 %v191_v58, %v6842_v0 }
 0x3be   :  { %v201_v60 = vsel %vm108_vm0, %v199_v59, 0.0  ;;  %v411_v59 = vld [vmem:[#allocation7 + $0x180] sm:$0xff] }
 0x3bf   :  { %v202_v61 = vrot.slane %v201_v60, 4  ;;  %v198_v62 = vpop.permute.xlu1 %197 }
 0x3c0   :  { %v200_v63 = vmul.f32 %v198_v62, %v6847_v1  ;;  %v373_v1 = vld [vmem:[#allocation7 + $0x50] sm:$0xff] }
 0x3c1   :  { %v203_v2 = vadd.f32 %v202_v61, %v201_v60  ;;  %v5222_v26 = vcombine.high %v373_v1, %v377_v22  ;;  %v5221_v32 = vcombine.low %v373_v1, %v377_v22  ;;  %v415_v60 = vld [vmem:[#allocation7 + $0x1a0] sm:$0xff]  ;;  %v413_v61 = vld [vmem:[#allocation7 + $0x190] sm:$0xff] }
 0x3c2   :  { %v208_v3 = vsel %vm108_vm0, %v200_v63, 0.0  ;;  %v417_v62 = vld [vmem:[#allocation7 + $0x1b0] sm:$0xff]  ;;  %v5249_v63 = vcombine.low %v403_v51, %v407_v52  ;;  %v435_v22 = vld [vmem:[#allocation7 + $0x240] sm:$0xff] }
 0x3c3   :  { %v204_v4 = vrot.slane %v203_v2, 2  ;;  %v209_v5 = vrot.slane %v208_v3, 4 }
 0x3c5   :  { %v205_v6 = vadd.f32 %v204_v4, %v203_v2  ;;  %v210_v7 = vadd.f32 %v209_v5, %v208_v3  ;;  %v5258_v3 = vcombine.high %v411_v59, %v415_v60  ;;  %v5262_v4 = vcombine.high %v413_v61, %v417_v62  ;;  %v419_v5 = vld [vmem:[#allocation7 + $0x1c0] sm:$0xff] }
 0x3c7   :  { %v206_v9 = vrot.slane %v205_v6, 1  ;;  %v211_v10 = vrot.slane %v210_v7, 2 }
 0x3c9   :  { %v207_v11 = vadd.f32 %v206_v9, %v205_v6  ;;  %v212_v12 = vadd.f32 %v211_v10, %v210_v7  ;;  %v423_v6 = vld [vmem:[#allocation7 + $0x1e0] sm:$0xff]  ;;  %v421_v7 = vld [vmem:[#allocation7 + $0x1d0] sm:$0xff]  ;;  %v5257_v10 = vcombine.low %v411_v59, %v415_v60 }
 0x3ca   :  { %v425_v9 = vld [vmem:[#allocation7 + $0x1f0] sm:$0xff] }
 0x3cb   :  { %v213_v13 = vrot.slane %v212_v12, 1  ;;  %v215_v14 = vpack.c.bf16 %v207_v11, %v207_v11  ;;  %v5261_v11 = vcombine.low %v413_v61, %v417_v62 }
 0x3cd   :  { %v214_v0 = vadd.f32 %v213_v13, %v212_v12  ;;  %v245_v19 = vunpack.c.l.b16 %v215_v14  ;;  %v5266_v12 = vcombine.high %v419_v5, %v423_v6  ;;  %v5270_v13 = vcombine.high %v421_v7, %v425_v9  ;;  %v427_v14 = vld [vmem:[#allocation7 + $0x200] sm:$0xff] }
 0x3cf   :  { %v216_v15 = vpack.c.bf16 %v214_v0, %v214_v0  ;;  %v431_v0 = vld [vmem:[#allocation7 + $0x220] sm:$0xff] }
 0x3d0   :  { %v5274_v21 = vcombine.high %v427_v14, %v431_v0 }
 0x3d1   :  { %v246_v20 = vunpack.c.l.b16 %v216_v15  ;;  %v429_v15 = vld [vmem:[#allocation7 + $0x210] sm:$0xff] }
 0x3d2   :  { %v5278_v1 = vcombine.high %v429_v15, %v433_v16  ;;  %v5277_v27 = vcombine.low %v429_v15, %v433_v16 }
 0x3d3   :  { %v247_v23 = vsel %vm127_vm1, %v246_v20, %v245_v19  ;;  %v5265_v19 = vcombine.low %v419_v5, %v423_v6  ;;  %v5269_v20 = vcombine.low %v421_v7, %v425_v9  ;;  %v481_v6 = vld [vmem:[#allocation7 + $0x3b0] sm:$0xff] }
 0x3d4   :  { %v248_v24 = vpack.c.b16 %v247_v23, %v247_v23  ;;  %v439_v23 = vld [vmem:[#allocation7 + $0x260] sm:$0xff] }
 0x3d5   :  { %v5282_v28 = vcombine.high %v435_v22, %v439_v23 }
 0x3d6   :  { %5207 = vmatmul.mubr.msk.bf16.vlgmr.msra.gmra.mrb[0].mxu0 %vm269_vm7, %v248_v24  ;;  %5208 = vmatmul.mubr.msk.bf16.vlgmr.msra.gmra.mrb[0].mxu1 %vm269_vm7, %v248_v24  ;;  %v437_v24 = vld [vmem:[#allocation7 + $0x250] sm:$0xff] }
 0x3d7   :  { %1942 = vmatpush1.bf16.msra.mxu1 %v5209_v53  ;;  %2106 = vmatpush1.bf16.msra.mxu0 %v5213_v56  ;;  %v405_v53 = vld [vmem:[#allocation7 + $0x150] sm:$0xff]  ;;  %v5245_v56 = vcombine.low %v397_v45, %v401_v46  ;;  %v459_v46 = vld [vmem:[#allocation7 + $0x300] sm:$0xff] }
 0x3d8   :  { %1943 = vmatprep.subr.bf16.mxu1 %v5218_v25  ;;  %2107 = vmatprep.subr.bf16.mxu0 %v5222_v26  ;;  %v5254_v58 = vcombine.high %v405_v53, %v409_v54  ;;  %v5253_v2 = vcombine.low %v405_v53, %v409_v54  ;;  %v441_v25 = vld [vmem:[#allocation7 + $0x270] sm:$0xff]  ;;  %v5273_v26 = vcombine.low %v427_v14, %v431_v0  ;;  %v467_v54 = vld [vmem:[#allocation7 + $0x340] sm:$0xff] }
 0x3d9   :  { %v5286_v29 = vcombine.high %v437_v24, %v441_v25  ;;  %v5285_v35 = vcombine.low %v437_v24, %v441_v25  ;;  %v489_v0 = vld [vmem:[#allocation7 + $0x3f0] sm:$0xff] }
 0x3db   :  { %1944 = vmatpush1.bf16.msra.mxu1 %v5217_v31  ;;  %2108 = vmatpush1.bf16.msra.mxu0 %v5221_v32  ;;  %v447_v31 = vld [vmem:[#allocation7 + $0x2a0] sm:$0xff]  ;;  %v445_v32 = vld [vmem:[#allocation7 + $0x290] sm:$0xff] }
 0x3dc   :  { %1945 = vmatprep.subr.bf16.mxu1 %v5226_v33  ;;  %2109 = vmatprep.subr.bf16.mxu0 %v5230_v34  ;;  %v449_v33 = vld [vmem:[#allocation7 + $0x2b0] sm:$0xff]  ;;  %v5281_v34 = vcombine.low %v435_v22, %v439_v23  ;;  %v5290_v36 = vcombine.high %v443_v30, %v447_v31 }
 0x3dd   :  { %v5294_v37 = vcombine.high %v445_v32, %v449_v33  ;;  %v5293_v43 = vcombine.low %v445_v32, %v449_v33  ;;  %v497_v23 = vld [vmem:[#allocation7 + $0x430] sm:$0xff] }
 0x3df   :  { %1946 = vmatpush1.bf16.msra.mxu1 %v5225_v39  ;;  %2110 = vmatpush1.bf16.msra.mxu0 %v5229_v40  ;;  %v455_v39 = vld [vmem:[#allocation7 + $0x2e0] sm:$0xff]  ;;  %v453_v40 = vld [vmem:[#allocation7 + $0x2d0] sm:$0xff] }
 0x3e0   :  { %1947 = vmatprep.subr.bf16.mxu1 %v5234_v41  ;;  %2111 = vmatprep.subr.bf16.mxu0 %v5238_v42  ;;  %v457_v41 = vld [vmem:[#allocation7 + $0x2f0] sm:$0xff]  ;;  %v5289_v42 = vcombine.low %v443_v30, %v447_v31  ;;  %v5298_v44 = vcombine.high %v451_v38, %v455_v39 }
 0x3e1   :  { %v5302_v45 = vcombine.high %v453_v40, %v457_v41  ;;  %v5301_v51 = vcombine.low %v453_v40, %v457_v41 }
 0x3e3   :  { %1948 = vmatpush1.bf16.msra.mxu1 %v5233_v47  ;;  %2112 = vmatpush1.bf16.msra.mxu0 %v5237_v48  ;;  %v463_v47 = vld [vmem:[#allocation7 + $0x320] sm:$0xff]  ;;  %v461_v48 = vld [vmem:[#allocation7 + $0x310] sm:$0xff] }
 0x3e4   :  { %1949 = vmatprep.subr.bf16.mxu1 %v5242_v49  ;;  %2113 = vmatprep.subr.bf16.mxu0 %v5246_v50  ;;  %v465_v49 = vld [vmem:[#allocation7 + $0x330] sm:$0xff]  ;;  %v5297_v50 = vcombine.low %v451_v38, %v455_v39  ;;  %v5306_v52 = vcombine.high %v459_v46, %v463_v47 }
 0x3e5   :  { %v5310_v53 = vcombine.high %v461_v48, %v465_v49  ;;  %v5309_v59 = vcombine.low %v461_v48, %v465_v49  ;;  %v501_v48 = vld [vmem:[#allocation7 + $0x450] sm:$0xff] }
 0x3e6   :  { %v505_v49 = vld [vmem:[#allocation7 + $0x470] sm:$0xff] }
 0x3e7   :  { %1950 = vmatpush1.bf16.msra.mxu1 %v5241_v55  ;;  %2114 = vmatpush1.bf16.msra.mxu0 %v5245_v56  ;;  %v471_v55 = vld [vmem:[#allocation7 + $0x360] sm:$0xff]  ;;  %v469_v56 = vld [vmem:[#allocation7 + $0x350] sm:$0xff] }
 0x3e8   :  { %1951 = vmatprep.subr.bf16.mxu1 %v5250_v57  ;;  %2115 = vmatprep.subr.bf16.mxu0 %v5254_v58  ;;  %v473_v57 = vld [vmem:[#allocation7 + $0x370] sm:$0xff]  ;;  %v5305_v58 = vcombine.low %v459_v46, %v463_v47  ;;  %v5314_v60 = vcombine.high %v467_v54, %v471_v55  ;;  %v5313_v62 = vcombine.low %v467_v54, %v471_v55  ;;  %v503_v47 = vld [vmem:[#allocation7 + $0x460] sm:$0xff] }
 0x3e9   :  { %v5318_v61 = vcombine.high %v469_v56, %v473_v57  ;;  %v5350_v54 = vcombine.high %v501_v48, %v505_v49  ;;  %v511_v55 = vld [vmem:[#allocation7 + $0x4a0] sm:$0xff] }
 0x3eb   :  { %1952 = vmatpush1.bf16.msra.mxu1 %v5249_v63  ;;  %2116 = vmatpush1.bf16.msra.mxu0 %v5253_v2  ;;  %v5317_v63 = vcombine.low %v469_v56, %v473_v57  ;;  %v475_v2 = vld [vmem:[#allocation7 + $0x380] sm:$0xff]  ;;  %v509_v56 = vld [vmem:[#allocation7 + $0x490] sm:$0xff] }
 0x3ec   :  { %1953 = vmatprep.subr.bf16.mxu1 %v5258_v3  ;;  %2117 = vmatprep.subr.bf16.mxu0 %v5262_v4  ;;  %v479_v3 = vld [vmem:[#allocation7 + $0x3a0] sm:$0xff]  ;;  %v477_v4 = vld [vmem:[#allocation7 + $0x390] sm:$0xff] }
 0x3ed   :  { %v5322_v5 = vcombine.high %v475_v2, %v479_v3  ;;  %v5321_v7 = vcombine.low %v475_v2, %v479_v3  ;;  %v5325_v9 = vcombine.low %v477_v4, %v481_v6  ;;  %v513_v57 = vld [vmem:[#allocation7 + $0x4b0] sm:$0xff]  ;;  %v519_v2 = vld [vmem:[#allocation7 + $0x4e0] sm:$0xff] }
 0x3ee   :  { %v517_v3 = vld [vmem:[#allocation7 + $0x4d0] sm:$0xff] }
 0x3ef   :  { %1954 = vmatpush1.bf16.msra.mxu1 %v5257_v10  ;;  %2118 = vmatpush1.bf16.msra.mxu0 %v5261_v11  ;;  %v5326_v10 = vcombine.high %v477_v4, %v481_v6  ;;  %v483_v11 = vld [vmem:[#allocation7 + $0x3c0] sm:$0xff]  ;;  %v521_v4 = vld [vmem:[#allocation7 + $0x4f0] sm:$0xff]  ;;  %v5357_v6 = vcombine.low %v509_v56, %v513_v57 }
 0x3f0   :  { %1955 = vmatprep.subr.bf16.mxu1 %v5266_v12  ;;  %2119 = vmatprep.subr.bf16.mxu0 %v5270_v13  ;;  %v487_v12 = vld [vmem:[#allocation7 + $0x3e0] sm:$0xff]  ;;  %v485_v13 = vld [vmem:[#allocation7 + $0x3d0] sm:$0xff] }
 0x3f1   :  { %v5330_v14 = vcombine.high %v483_v11, %v487_v12  ;;  %v5329_v15 = vcombine.low %v483_v11, %v487_v12  ;;  %v5333_v16 = vcombine.low %v485_v13, %v489_v0  ;;  %v527_v11 = vld [vmem:[#allocation7 + $0x520] sm:$0xff]  ;;  %v525_v12 = vld [vmem:[#allocation7 + $0x510] sm:$0xff] }
 0x3f3   :  { %1956 = vmatpush1.bf16.msra.mxu1 %v5265_v19  ;;  %2120 = vmatpush1.bf16.msra.mxu0 %v5269_v20  ;;  %v5334_v19 = vcombine.high %v485_v13, %v489_v0  ;;  %v491_v20 = vld [vmem:[#allocation7 + $0x400] sm:$0xff]  ;;  %v529_v13 = vld [vmem:[#allocation7 + $0x530] sm:$0xff]  ;;  %v5365_v0 = vcombine.low %v517_v3, %v521_v4 }
 0x3f4   :  { %1957 = vmatprep.subr.bf16.mxu1 %v5274_v21  ;;  %2121 = vmatprep.subr.bf16.mxu0 %v5278_v1  ;;  %v495_v21 = vld [vmem:[#allocation7 + $0x420] sm:$0xff]  ;;  %v493_v1 = vld [vmem:[#allocation7 + $0x410] sm:$0xff] }
 0x3f5   :  { %v5338_v22 = vcombine.high %v491_v20, %v495_v21  ;;  %v5337_v24 = vcombine.low %v491_v20, %v495_v21  ;;  %v5341_v25 = vcombine.low %v493_v1, %v497_v23  ;;  %v535_v20 = vld [vmem:[#allocation7 + $0x560] sm:$0xff]  ;;  %v533_v21 = vld [vmem:[#allocation7 + $0x550] sm:$0xff] }
 0x3f7   :  { %1958 = vmatpush1.bf16.msra.mxu1 %v5273_v26  ;;  %2122 = vmatpush1.bf16.msra.mxu0 %v5277_v27  ;;  %v5342_v26 = vcombine.high %v493_v1, %v497_v23  ;;  %v6877_v27 = vld [vmem:[#allocation5] sm:$0xf]  ;;  %v537_v1 = vld [vmem:[#allocation7 + $0x570] sm:$0xff]  ;;  %v5373_v23 = vcombine.low %v525_v12, %v529_v13 }
 0x3f8   :  { %1959 = vmatprep.subr.bf16.mxu1 %v5282_v28  ;;  %2123 = vmatprep.subr.bf16.mxu0 %v5286_v29  ;;  %v6880_v28 = vsub.s32 3, %v6855_v8  ;;  %v226_v29 = vrot.slane %v6877_v27, %v6861_v17  ;;  %v230_v30 = vrot.slane %v6877_v27, %v6864_v18 }
 0x3fa   :  { %v238_v31 = vrot.slane %v6877_v27, %v6880_v28 }
 0x3fb   :  { %1960 = vmatpush1.bf16.msra.mxu1 %v5281_v34  ;;  %2124 = vmatpush1.bf16.msra.mxu0 %v5285_v35 }
 0x3fc   :  { %1961 = vmatprep.subr.bf16.mxu1 %v5290_v36  ;;  %2125 = vmatprep.subr.bf16.mxu0 %v5294_v37 }
 0x3ff   :  { %1962 = vmatpush1.bf16.msra.mxu1 %v5289_v42  ;;  %2126 = vmatpush1.bf16.msra.mxu0 %v5293_v43 }
 0x400   :  { %1963 = vmatprep.subr.bf16.mxu1 %v5298_v44  ;;  %2127 = vmatprep.subr.bf16.mxu0 %v5302_v45  ;;  %v499_v45 = vld [vmem:[#allocation7 + $0x440] sm:$0xff] }
 0x403   :  { %1964 = vmatpush1.bf16.msra.mxu1 %v5297_v50  ;;  %2128 = vmatpush1.bf16.msra.mxu0 %v5301_v51 }
 0x404   :  { %1965 = vmatprep.subr.bf16.mxu1 %v5306_v52  ;;  %2129 = vmatprep.subr.bf16.mxu0 %v5310_v53  ;;  %v507_v52 = vld [vmem:[#allocation7 + $0x480] sm:$0xff]  ;;  %v5346_v53 = vcombine.high %v499_v45, %v503_v47 }
 0x407   :  { %1966 = vmatpush1.bf16.msra.mxu1 %v5305_v58  ;;  %2130 = vmatpush1.bf16.msra.mxu0 %v5309_v59  ;;  %v5345_v59 = vcombine.low %v499_v45, %v503_v47  ;;  %v555_v45 = vld [vmem:[#allocation7 + $0x600] sm:$0xff]  ;;  %v557_v47 = vld [vmem:[#allocation7 + $0x610] sm:$0xff] }
 0x408   :  { %1967 = vmatprep.subr.bf16.mxu1 %v5314_v60  ;;  %2131 = vmatprep.subr.bf16.mxu0 %v5318_v61  ;;  %v5349_v60 = vcombine.low %v501_v48, %v505_v49  ;;  %v5354_v61 = vcombine.high %v507_v52, %v511_v55  ;;  %v561_v48 = vld [vmem:[#allocation7 + $0x630] sm:$0xff] }
 0x40b   :  { %1968 = vmatpush1.bf16.msra.mxu1 %v5313_v62  ;;  %2132 = vmatpush1.bf16.msra.mxu0 %v5317_v63  ;;  %v5358_v62 = vcombine.high %v509_v56, %v513_v57  ;;  %v515_v63 = vld [vmem:[#allocation7 + $0x4c0] sm:$0xff]  ;;  %v565_v57 = vld [vmem:[#allocation7 + $0x650] sm:$0xff] }
 0x40c   :  { %1969 = vmatprep.subr.bf16.mxu1 %v5322_v5  ;;  %2133 = vmatprep.subr.bf16.mxu0 %v5326_v10  ;;  %v5353_v5 = vcombine.low %v507_v52, %v511_v55  ;;  %v523_v10 = vld [vmem:[#allocation7 + $0x500] sm:$0xff] }
 0x40d   :  { %v563_v55 = vld [vmem:[#allocation7 + $0x640] sm:$0xff] }
 0x40e   :  { %v567_v56 = vld [vmem:[#allocation7 + $0x660] sm:$0xff] }
 0x40f   :  { %1970 = vmatpush1.bf16.msra.mxu1 %v5321_v7  ;;  %2134 = vmatpush1.bf16.msra.mxu0 %v5325_v9  ;;  %v5362_v7 = vcombine.high %v515_v63, %v519_v2  ;;  %v5366_v9 = vcombine.high %v517_v3, %v521_v4  ;;  %v575_v3 = vld [vmem:[#allocation7 + $0x6a0] sm:$0xff]  ;;  %v573_v4 = vld [vmem:[#allocation7 + $0x690] sm:$0xff] }
 0x410   :  { %1971 = vmatprep.subr.bf16.mxu1 %v5330_v14  ;;  %2135 = vmatprep.subr.bf16.mxu0 %v5334_v19  ;;  %v5361_v14 = vcombine.low %v515_v63, %v519_v2  ;;  %v531_v19 = vld [vmem:[#allocation7 + $0x540] sm:$0xff] }
 0x411   :  { %v571_v2 = vld [vmem:[#allocation7 + $0x680] sm:$0xff] }
 0x413   :  { %1972 = vmatpush1.bf16.msra.mxu1 %v5329_v15  ;;  %2136 = vmatpush1.bf16.msra.mxu0 %v5333_v16  ;;  %v5370_v15 = vcombine.high %v523_v10, %v527_v11  ;;  %v5374_v16 = vcombine.high %v525_v12, %v529_v13  ;;  %v583_v12 = vld [vmem:[#allocation7 + $0x6e0] sm:$0xff]  ;;  %v581_v13 = vld [vmem:[#allocation7 + $0x6d0] sm:$0xff] }
 0x414   :  { %1982 = vmatprep.subr.bf16.mxu1 %v5338_v22  ;;  %2146 = vmatprep.subr.bf16.mxu0 %v5342_v26  ;;  %v5369_v22 = vcombine.low %v523_v10, %v527_v11  ;;  %v539_v26 = vld [vmem:[#allocation7 + $0x580] sm:$0xff] }
 0x415   :  { %v579_v11 = vld [vmem:[#allocation7 + $0x6c0] sm:$0xff] }
 0x4a9   :  { %v307_v32 = vpop.f32.mrb[0].mxu0  ;;  %v6888_v33 = vpop.f32.mrb[0].mxu1 }
 0x4aa   :  { %v308_v34 = vadd.f32 %v307_v32, %v226_v29  ;;  %v309_v35 = vpop.f32.mrb[1].mxu0  ;;  %v350_v36 = vpop.f32.mrb[1].mxu1  ;;  %v543_v29 = vld [vmem:[#allocation7 + $0x5a0] sm:$0xff]  ;;  %v5377_v32 = vcombine.low %v531_v19, %v535_v20 }
 0x4ab   :  { %v310_v37 = vadd.f32 %v309_v35, %v230_v30  ;;  %v351_v38 = vadd.f32 %v350_v36, %v238_v31  ;;  %v311_v39 = vpop.f32.mrb[2].mxu0  ;;  %v352_v40 = vpop.f32.mrb[2].mxu1  ;;  %v541_v30 = vld [vmem:[#allocation7 + $0x590] sm:$0xff]  ;;  %v5386_v35 = vcombine.high %v539_v26, %v543_v29 }
 0x4ac   :  { %v355_v41 = vmax.f32 %v308_v34, 0.0  ;;  %v312_v42 = vpop.f32.mrb[3].mxu0  ;;  %v353_v43 = vpop.f32.mrb[3].mxu1  ;;  %v545_v31 = vld [vmem:[#allocation7 + $0x5b0] sm:$0xff]  ;;  %v5381_v34 = vcombine.low %v533_v21, %v537_v1 }
 0x4ad   :  { %v356_v44 = vmax.f32 %v310_v37, 0.0  ;;  %v358_v46 = vmax.f32 %v351_v38, 0.0  ;;  %v5390_v36 = vcombine.high %v541_v30, %v545_v31  ;;  %v547_v37 = vld [vmem:[#allocation7 + $0x5c0] sm:$0xff]  ;;  %v549_v39 = vld [vmem:[#allocation7 + $0x5d0] sm:$0xff]  ;;  %v5389_v42 = vcombine.low %v541_v30, %v545_v31 }
 0x4ae   :  { %v6892_v51 = vpack.c.bf16 %v355_v41, %v355_v41  ;;  %v551_v38 = vld [vmem:[#allocation7 + $0x5e0] sm:$0xff]  ;;  %v553_v40 = vld [vmem:[#allocation7 + $0x5f0] sm:$0xff]  ;;  %v5385_v41 = vcombine.low %v539_v26, %v543_v29 }
 0x4af   :  { %v6890_v50 = vpack.c.bf16 %v356_v44, %v356_v44  ;;  %v6896_v58 = vpack.c.bf16 %v358_v46, %v358_v46  ;;  %v5394_v43 = vcombine.high %v547_v37, %v551_v38  ;;  %v5398_v44 = vcombine.high %v549_v39, %v553_v40  ;;  %v559_v46 = vld [vmem:[#allocation7 + $0x620] sm:$0xff]  ;;  %v597_v31 = vld [vmem:[#allocation7 + $0x750] sm:$0xff] }
 0x4b0   :  { %v5393_v49 = vcombine.low %v547_v37, %v551_v38  ;;  %v5397_v52 = vcombine.low %v549_v39, %v553_v40  ;;  %v595_v29 = vld [vmem:[#allocation7 + $0x740] sm:$0xff] }
 0x4b1   :  { %1973 = vmatprep.mubr.bf16.mxu1 %v6890_v50  ;;  %2137 = vmatprep.mubr.bf16.mxu0 %v6890_v50  ;;  %v599_v30 = vld [vmem:[#allocation7 + $0x760] sm:$0xff] }
 0x4b2   :  { %1974 = vmatmul.mubr.bf16.vlgmr.msra.gmra.mrb[4].mxu1 %v6892_v51  ;;  %2138 = vmatmul.mubr.bf16.vlgmr.msra.gmra.mrb[4].mxu0 %v6892_v51  ;;  %v5442_v37 = vcombine.high %v595_v29, %v599_v30  ;;  %v603_v39 = vld [vmem:[#allocation7 + $0x780] sm:$0xff] }
 0x4b3   :  { %1983 = vmatpush1.bf16.msra.mxu1 %v5337_v24  ;;  %2147 = vmatpush1.bf16.msra.mxu0 %v5341_v25  ;;  %v5378_v24 = vcombine.high %v531_v19, %v535_v20  ;;  %v5382_v25 = vcombine.high %v533_v21, %v537_v1  ;;  %v587_v20 = vld [vmem:[#allocation7 + $0x700] sm:$0xff]  ;;  %v589_v1 = vld [vmem:[#allocation7 + $0x710] sm:$0xff] }
 0x4b4   :  { %2014 = vmatprep.mubr.bf16.mxu1 %v6896_v58  ;;  %2178 = vmatprep.mubr.bf16.mxu0 %v6896_v58  ;;  %v591_v21 = vld [vmem:[#allocation7 + $0x720] sm:$0xff] }
 0x4b5   :  { %1984 = vmatprep.subr.bf16.mxu1 %v5346_v53  ;;  %2148 = vmatprep.subr.bf16.mxu0 %v5350_v54  ;;  %v5402_v53 = vcombine.high %v555_v45, %v559_v46  ;;  %v5406_v54 = vcombine.high %v557_v47, %v561_v48  ;;  %v607_v40 = vld [vmem:[#allocation7 + $0x7a0] sm:$0xff] }
 0x4b7   :  { %1985 = vmatpush1.bf16.msra.mxu1 %v5345_v59  ;;  %2149 = vmatpush1.bf16.msra.mxu0 %v5349_v60  ;;  %v569_v59 = vld [vmem:[#allocation7 + $0x670] sm:$0xff]  ;;  %v5401_v60 = vcombine.low %v555_v45, %v559_v46  ;;  %v5450_v46 = vcombine.high %v603_v39, %v607_v40 }
 0x4b8   :  { %1986 = vmatprep.subr.bf16.mxu1 %v5354_v61  ;;  %2150 = vmatprep.subr.bf16.mxu0 %v5358_v62  ;;  %v5405_v61 = vcombine.low %v557_v47, %v561_v48  ;;  %v5410_v62 = vcombine.high %v563_v55, %v567_v56  ;;  %v5414_v63 = vcombine.high %v565_v57, %v569_v59  ;;  %v611_v48 = vld [vmem:[#allocation7 + $0x7c0] sm:$0xff] }
 0x4bb   :  { %1987 = vmatpush1.bf16.msra.mxu1 %v5353_v5  ;;  %2151 = vmatpush1.bf16.msra.mxu0 %v5357_v6  ;;  %v577_v5 = vld [vmem:[#allocation7 + $0x6b0] sm:$0xff]  ;;  %v5409_v6 = vcombine.low %v563_v55, %v567_v56 }
 0x4bc   :  { %1988 = vmatprep.subr.bf16.mxu1 %v5362_v7  ;;  %2152 = vmatprep.subr.bf16.mxu0 %v5366_v9  ;;  %v5413_v7 = vcombine.low %v565_v57, %v569_v59  ;;  %v5418_v9 = vcombine.high %v571_v2, %v575_v3  ;;  %v5422_v10 = vcombine.high %v573_v4, %v577_v5 }
 0x4bf   :  { %1989 = vmatpush1.bf16.msra.mxu1 %v5361_v14  ;;  %2153 = vmatpush1.bf16.msra.mxu0 %v5365_v0  ;;  %v585_v14 = vld [vmem:[#allocation7 + $0x6f0] sm:$0xff]  ;;  %v5417_v0 = vcombine.low %v571_v2, %v575_v3  ;;  %v372_v3 = vld [vmem:[#allocation7 + $0x48] sm:$0xff] }
 0x4c0   :  { %1990 = vmatprep.subr.bf16.mxu1 %v5370_v15  ;;  %2154 = vmatprep.subr.bf16.mxu0 %v5374_v16  ;;  %v5421_v15 = vcombine.low %v573_v4, %v577_v5  ;;  %v5426_v16 = vcombine.high %v579_v11, %v583_v12  ;;  %v5430_v19 = vcombine.high %v581_v13, %v585_v14  ;;  %v376_v4 = vld [vmem:[#allocation7 + $0x68] sm:$0xff] }
 0x4c3   :  { %1991 = vmatpush1.bf16.msra.mxu1 %v5369_v22  ;;  %2155 = vmatpush1.bf16.msra.mxu0 %v5373_v23  ;;  %v593_v22 = vld [vmem:[#allocation7 + $0x730] sm:$0xff]  ;;  %v5425_v23 = vcombine.low %v579_v11, %v583_v12  ;;  %v388_v12 = vld [vmem:[#allocation7 + $0xc8] sm:$0xff] }
 0x4c4   :  { %1992 = vmatprep.subr.bf16.mxu1 %v5378_v24  ;;  %2156 = vmatprep.subr.bf16.mxu0 %v5382_v25  ;;  %v5429_v24 = vcombine.low %v581_v13, %v585_v14  ;;  %v5434_v25 = vcombine.high %v587_v20, %v591_v21  ;;  %v5438_v26 = vcombine.high %v589_v1, %v593_v22  ;;  %v392_v13 = vld [vmem:[#allocation7 + $0xe8] sm:$0xff] }
 0x4c7   :  { %1993 = vmatpush1.bf16.msra.mxu1 %v5377_v32  ;;  %2157 = vmatpush1.bf16.msra.mxu0 %v5381_v34  ;;  %v601_v32 = vld [vmem:[#allocation7 + $0x770] sm:$0xff]  ;;  %v5433_v34 = vcombine.low %v587_v20, %v591_v21  ;;  %v404_v21 = vld [vmem:[#allocation7 + $0x148] sm:$0xff] }
 0x4c8   :  { %1994 = vmatprep.subr.bf16.mxu1 %v5386_v35  ;;  %2158 = vmatprep.subr.bf16.mxu0 %v5390_v36  ;;  %v5437_v35 = vcombine.low %v589_v1, %v593_v22  ;;  %v6903_v36 = vsub.s32 2, %v6855_v8  ;;  %v5446_v38 = vcombine.high %v597_v31, %v601_v32  ;;  %v408_v1 = vld [vmem:[#allocation7 + $0x168] sm:$0xff] }
 0x4ca   :  { %v234_v45 = vrot.slane %v6877_v27, %v6903_v36  ;;  %v368_v27 = vld [vmem:[#allocation7 + $0x28] sm:$0xff] }
 0x4cb   :  { %1995 = vmatpush1.bf16.msra.mxu1 %v5385_v41  ;;  %2159 = vmatpush1.bf16.msra.mxu0 %v5389_v42  ;;  %v605_v41 = vld [vmem:[#allocation7 + $0x790] sm:$0xff] }
 0x4cc   :  { %1996 = vmatprep.subr.bf16.mxu1 %v5394_v43  ;;  %2160 = vmatprep.subr.bf16.mxu0 %v5398_v44  ;;  %v609_v42 = vld [vmem:[#allocation7 + $0x7b0] sm:$0xff]  ;;  %v5441_v43 = vcombine.low %v595_v29, %v599_v30  ;;  %v5445_v44 = vcombine.low %v597_v31, %v601_v32  ;;  %v349_v56 = vadd.f32 %v6888_v33, %v234_v45  ;;  %v420_v30 = vld [vmem:[#allocation7 + $0x1c8] sm:$0xff] }
 0x4cd   :  { %v5454_v47 = vcombine.high %v605_v41, %v609_v42  ;;  %v5453_v55 = vcombine.low %v605_v41, %v609_v42  ;;  %v424_v31 = vld [vmem:[#allocation7 + $0x1e8] sm:$0xff] }
 0x4ce   :  { %v5948_v41 = vld [vmem:[#allocation10 + $0x4] ss:$24 sps:$4 sm:$0xff]  }
 0x4cf   :  { %1997 = vmatpush1.bf16.msra.mxu1 %v5393_v49  ;;  %2161 = vmatpush1.bf16.msra.mxu0 %v5397_v52  ;;  %v615_v49 = vld [vmem:[#allocation7 + $0x7e0] sm:$0xff]  ;;  %v613_v52 = vld [vmem:[#allocation7 + $0x7d0] sm:$0xff]  ;;  %v436_v42 = vld [vmem:[#allocation7 + $0x248] sm:$0xff] }
 0x4d0   :  { %1998 = vmatprep.subr.bf16.mxu1 %v5402_v53  ;;  %2162 = vmatprep.subr.bf16.mxu0 %v5406_v54  ;;  %v617_v53 = vld [vmem:[#allocation7 + $0x7f0] sm:$0xff]  ;;  %v5449_v54 = vcombine.low %v603_v39, %v607_v40  ;;  %v5458_v57 = vcombine.high %v611_v48, %v615_v49  ;;  %v5946_v40 = vld [vmem:[#allocation10] ss:$24 sps:$4 sm:$0xff]  }
 0x4d1   :  { %v5462_v59 = vcombine.high %v613_v52, %v617_v53 }
 0x4d3   :  { %1999 = vmatpush1.bf16.msra.mxu1 %v5401_v60  ;;  %2163 = vmatpush1.bf16.msra.mxu0 %v5405_v61  ;;  %v364_v60 = vld [vmem:[#allocation7 + $0x8] sm:$0xff]  ;;  %v5457_v61 = vcombine.low %v611_v48, %v615_v49 }
 0x4d4   :  { %2000 = vmatprep.subr.bf16.mxu1 %v5410_v62  ;;  %2164 = vmatprep.subr.bf16.mxu0 %v5414_v63  ;;  %v5461_v62 = vcombine.low %v613_v52, %v617_v53  ;;  %v357_v63 = vmax.f32 %v349_v56, 0.0  ;;  %v5212_v2 = vcombine.high %v364_v60, %v368_v27  ;;  %v5211_v5 = vcombine.low %v364_v60, %v368_v27  ;;  %v444_v48 = vld [vmem:[#allocation7 + $0x288] sm:$0xff]  ;;  %v5955_v27 = vld [vmem:[#allocation10 + $0x90] ss:$24 sps:$4 sm:$0xff]  }
 0x4d5   :  { %v448_v49 = vld [vmem:[#allocation7 + $0x2a8] sm:$0xff] }
 0x4d6   :  { %v6908_v33 = vpack.c.bf16 %v357_v63, %v357_v63  ;;  %v5292_v53 = vcombine.high %v444_v48, %v448_v49  ;;  %v452_v56 = vld [vmem:[#allocation7 + $0x2c8] sm:$0xff] }
 0x4d7   :  { %2001 = vmatpush1.bf16.msra.mxu1 %v5409_v6  ;;  %2165 = vmatpush1.bf16.msra.mxu0 %v5413_v7  ;;  %v5220_v6 = vcombine.high %v372_v3, %v376_v4  ;;  %v380_v7 = vld [vmem:[#allocation7 + $0x88] sm:$0xff] }
 0x4d8   :  { %2002 = vmatprep.subr.bf16.mxu1 %v5418_v9  ;;  %2166 = vmatprep.subr.bf16.mxu0 %v5422_v10  ;;  %v384_v9 = vld [vmem:[#allocation7 + $0xa8] sm:$0xff]  ;;  %v5219_v10 = vcombine.low %v372_v3, %v376_v4 }
 0x4d9   :  { %v5228_v11 = vcombine.high %v380_v7, %v384_v9  ;;  %v5227_v14 = vcombine.low %v380_v7, %v384_v9  ;;  %v464_v63 = vld [vmem:[#allocation7 + $0x328] sm:$0xff] }
 0x4da   :  { %v5958_v4 = vld [vmem:[#allocation10 + $0xc0] ss:$24 sps:$4 sm:$0xff]  }
 0x4db   :  { %2003 = vmatpush1.bf16.msra.mxu1 %v5417_v0  ;;  %2167 = vmatpush1.bf16.msra.mxu0 %v5421_v15  ;;  %v5236_v0 = vcombine.high %v388_v12, %v392_v13  ;;  %v396_v15 = vld [vmem:[#allocation7 + $0x108] sm:$0xff] }
 0x4dc   :  { %2004 = vmatprep.subr.bf16.mxu1 %v5426_v16  ;;  %2168 = vmatprep.subr.bf16.mxu0 %v5430_v19  ;;  %v400_v16 = vld [vmem:[#allocation7 + $0x128] sm:$0xff]  ;;  %v5235_v19 = vcombine.low %v388_v12, %v392_v13  ;;  %v5963_v12 = vld [vmem:[#allocation10 + $0xf4] ss:$24 sps:$4 sm:$0xff]  }
 0x4dd   :  { %v5244_v20 = vcombine.high %v396_v15, %v400_v16  ;;  %v5243_v22 = vcombine.low %v396_v15, %v400_v16  ;;  %v472_v7 = vld [vmem:[#allocation7 + $0x368] sm:$0xff] }
 0x4de   :  { %v476_v13 = vld [vmem:[#allocation7 + $0x388] sm:$0xff] }
 0x4df   :  { %2005 = vmatpush1.bf16.msra.mxu1 %v5425_v23  ;;  %2169 = vmatpush1.bf16.msra.mxu0 %v5429_v24  ;;  %v5252_v23 = vcombine.high %v404_v21, %v408_v1  ;;  %v412_v24 = vld [vmem:[#allocation7 + $0x188] sm:$0xff] }
 0x4e0   :  { %2006 = vmatprep.subr.bf16.mxu1 %v5434_v25  ;;  %2170 = vmatprep.subr.bf16.mxu0 %v5438_v26  ;;  %v416_v25 = vld [vmem:[#allocation7 + $0x1a8] sm:$0xff]  ;;  %v5251_v26 = vcombine.low %v404_v21, %v408_v1 }
 0x4e1   :  { %v5260_v29 = vcombine.high %v412_v24, %v416_v25  ;;  %v5259_v32 = vcombine.low %v412_v24, %v416_v25  ;;  %v5964_v16 = vld [vmem:[#allocation10 + $0x120] ss:$24 sps:$4 sm:$0xff]   ;;  %v5969_v24 = vld [vmem:[#allocation10 + $0x154] ss:$24 sps:$4 sm:$0xff]  }
 0x4e2   :  { %v488_v21 = vld [vmem:[#allocation7 + $0x3e8] sm:$0xff] }
 0x4e3   :  { %2007 = vmatpush1.bf16.msra.mxu1 %v5433_v34  ;;  %2171 = vmatpush1.bf16.msra.mxu0 %v5437_v35  ;;  %v5268_v34 = vcombine.high %v420_v30, %v424_v31  ;;  %v428_v35 = vld [vmem:[#allocation7 + $0x208] sm:$0xff] }
 0x4e4   :  { %2008 = vmatprep.subr.bf16.mxu1 %v5442_v37  ;;  %2172 = vmatprep.subr.bf16.mxu0 %v5446_v38  ;;  %v432_v37 = vld [vmem:[#allocation7 + $0x228] sm:$0xff]  ;;  %v5267_v38 = vcombine.low %v420_v30, %v424_v31 }
 0x4e5   :  { %v5276_v39 = vcombine.high %v428_v35, %v432_v37  ;;  %v492_v25 = vld [vmem:[#allocation7 + $0x408] sm:$0xff] }
 0x4e6   :  { %v5970_v31 = vld [vmem:[#allocation10 + $0x180] ss:$24 sps:$4 sm:$0xff]  }
 0x4e7   :  { %2009 = vmatpush1.bf16.msra.mxu1 %v5441_v43  ;;  %2173 = vmatpush1.bf16.msra.mxu0 %v5445_v44  ;;  %v440_v43 = vld [vmem:[#allocation7 + $0x268] sm:$0xff]  ;;  %v5275_v44 = vcombine.low %v428_v35, %v432_v37 }
 0x4e8   :  { %2010 = vmatprep.subr.bf16.mxu1 %v5450_v46  ;;  %2174 = vmatprep.subr.bf16.mxu0 %v5454_v47  ;;  %v5284_v45 = vcombine.high %v436_v42, %v440_v43  ;;  %v5949_v46 = vld [vmem:[#allocation10 + $0x30] ss:$24 sps:$4 sm:$0xff]   ;;  %v5951_v47 = vld [vmem:[#allocation10 + $0x34] ss:$24 sps:$4 sm:$0xff]   ;;  %v5283_v52 = vcombine.low %v436_v42, %v440_v43  ;;  %v504_v35 = vld [vmem:[#allocation7 + $0x468] sm:$0xff] }
 0x4e9   :  { %v5973_v42 = vld [vmem:[#allocation10 + $0x1b0] ss:$24 sps:$4 sm:$0xff]  }
 0x4eb   :  { %2011 = vmatpush1.bf16.msra.mxu1 %v5449_v54  ;;  %2175 = vmatpush1.bf16.msra.mxu0 %v5453_v55  ;;  %v5952_v54 = vld [vmem:[#allocation10 + $0x60] ss:$24 sps:$4 sm:$0xff]   ;;  %v5954_v55 = vld [vmem:[#allocation10 + $0x64] ss:$24 sps:$4 sm:$0xff]  }
 0x4ec   :  { %2012 = vmatprep.subr.bf16.mxu1 %v5458_v57  ;;  %2176 = vmatprep.subr.bf16.mxu0 %v5462_v59  ;;  %v456_v57 = vld [vmem:[#allocation7 + $0x2e8] sm:$0xff]  ;;  %v5291_v59 = vcombine.low %v444_v48, %v448_v49 }
 0x4ed   :  { %v5300_v60 = vcombine.high %v452_v56, %v456_v57  ;;  %v520_v48 = vld [vmem:[#allocation7 + $0x4e8] sm:$0xff] }
 0x4ef   :  { %2013 = vmatpush1.bf16.msra.mxu1 %v5457_v61  ;;  %2177 = vmatpush1.bf16.msra.mxu0 %v5461_v62  ;;  %v5957_v61 = vld [vmem:[#allocation10 + $0x94] ss:$24 sps:$4 sm:$0xff]   ;;  %v460_v62 = vld [vmem:[#allocation7 + $0x308] sm:$0xff] }
 0x4f0   :  { %2023 = vmatprep.subr.bf16.mxu1 %v5212_v2  ;;  %4621 = vmatprep.subr.bf16.mxu0 %v5948_v41  ;;  %v5299_v2 = vcombine.low %v452_v56, %v456_v57  ;;  %v5308_v3 = vcombine.high %v460_v62, %v464_v63  ;;  %v5307_v9 = vcombine.low %v460_v62, %v464_v63  ;;  %v512_v41 = vld [vmem:[#allocation7 + $0x4a8] sm:$0xff] }
 0x4f1   :  { %v528_v56 = vld [vmem:[#allocation7 + $0x528] sm:$0xff] }
 0x4f2   :  { %2015 = vmatmul.mubr.bf16.vlgmr.msra.gmra.mrb[4].mxu1 %v6908_v33  ;;  %2179 = vmatmul.mubr.bf16.vlgmr.msra.gmra.mrb[4].mxu0 %v6908_v33  ;;  %v536_v62 = vld [vmem:[#allocation7 + $0x568] sm:$0xff] }
 0x4f3   :  { %2024 = vmatpush1.bf16.msra.mxu1 %v5211_v5  ;;  %2055 = vmatprep.mubr.bf16.mxu1 %v6890_v50  ;;  %v5960_v5 = vld [vmem:[#allocation10 + $0xc4] ss:$24 sps:$4 sm:$0xff]  }
 0x4f4   :  { %2025 = vmatprep.subr.bf16.mxu1 %v5220_v6  ;;  %4622 = vmatpush1.bf16.msra.mxu0 %v5946_v40  ;;  %v468_v6 = vld [vmem:[#allocation7 + $0x348] sm:$0xff] }
 0x4f5   :  { %4623 = vmatprep.subr.bf16.mxu0 %v5951_v47  ;;  %v508_v40 = vld [vmem:[#allocation7 + $0x488] sm:$0xff] }
 0x4f6   :  { %v516_v47 = vld [vmem:[#allocation7 + $0x4c8] sm:$0xff]  ;;  %v5355_v49 = vcombine.low %v508_v40, %v512_v41 }
 0x4f7   :  { %2026 = vmatpush1.bf16.msra.mxu1 %v5219_v10  ;;  %v5316_v10 = vcombine.high %v468_v6, %v472_v7  ;;  %v5363_v57 = vcombine.low %v516_v47, %v520_v48 }
 0x4f8   :  { %2027 = vmatprep.subr.bf16.mxu1 %v5228_v11  ;;  %4624 = vmatpush1.bf16.msra.mxu0 %v5949_v46  ;;  %v5961_v11 = vld [vmem:[#allocation10 + $0xf0] ss:$24 sps:$4 sm:$0xff]   ;;  %v5978_v46 = vld [vmem:[#allocation10 + $0x1e4] ss:$24 sps:$4 sm:$0xff]  }
 0x4f9   :  { %4625 = vmatprep.subr.bf16.mxu0 %v5954_v55  ;;  %v524_v55 = vld [vmem:[#allocation7 + $0x508] sm:$0xff] }
 0x4fa   :  { %v5371_v63 = vcombine.low %v524_v55, %v528_v56 }
 0x4fb   :  { %2028 = vmatpush1.bf16.msra.mxu1 %v5227_v14  ;;  %v480_v14 = vld [vmem:[#allocation7 + $0x3a8] sm:$0xff] }
 0x4fc   :  { %2029 = vmatprep.subr.bf16.mxu1 %v5236_v0  ;;  %4626 = vmatpush1.bf16.msra.mxu0 %v5952_v54  ;;  %v5315_v0 = vcombine.low %v468_v6, %v472_v7  ;;  %v5324_v15 = vcombine.high %v476_v13, %v480_v14  ;;  %v5323_v1 = vcombine.low %v476_v13, %v480_v14  ;;  %v5981_v54 = vld [vmem:[#allocation10 + $0x214] ss:$24 sps:$4 sm:$0xff]   ;;  %v544_v6 = vld [vmem:[#allocation7 + $0x5a8] sm:$0xff] }
 0x4fd   :  { %4627 = vmatprep.subr.bf16.mxu0 %v5957_v61  ;;  %v532_v61 = vld [vmem:[#allocation7 + $0x548] sm:$0xff] }
 0x4fe   :  { %v5379_v7 = vcombine.low %v532_v61, %v536_v62  ;;  %v5988_v13 = vld [vmem:[#allocation10 + $0x2a0] ss:$24 sps:$4 sm:$0xff]  }
 0x4ff   :  { %2030 = vmatpush1.bf16.msra.mxu1 %v5235_v19  ;;  %v5966_v19 = vld [vmem:[#allocation10 + $0x124] ss:$24 sps:$4 sm:$0xff]  }
 0x500   :  { %2031 = vmatprep.subr.bf16.mxu1 %v5244_v20  ;;  %4628 = vmatpush1.bf16.msra.mxu0 %v5955_v27  ;;  %v484_v20 = vld [vmem:[#allocation7 + $0x3c8] sm:$0xff] }
 0x501   :  { %4629 = vmatprep.subr.bf16.mxu0 %v5960_v5  ;;  %v5984_v27 = vld [vmem:[#allocation10 + $0x244] ss:$24 sps:$4 sm:$0xff]  }
 0x502   :  { %v540_v5 = vld [vmem:[#allocation7 + $0x588] sm:$0xff] }
 0x503   :  { %2032 = vmatpush1.bf16.msra.mxu1 %v5243_v22  ;;  %v5332_v22 = vcombine.high %v484_v20, %v488_v21  ;;  %v5387_v14 = vcombine.low %v540_v5, %v544_v6 }
 0x504   :  { %2033 = vmatprep.subr.bf16.mxu1 %v5252_v23  ;;  %4630 = vmatpush1.bf16.msra.mxu0 %v5958_v4  ;;  %v5967_v23 = vld [vmem:[#allocation10 + $0x150] ss:$24 sps:$4 sm:$0xff]   ;;  %v5987_v4 = vld [vmem:[#allocation10 + $0x274] ss:$24 sps:$4 sm:$0xff]  }
 0x505   :  { %4631 = vmatprep.subr.bf16.mxu0 %v5963_v12  ;;  %v552_v12 = vld [vmem:[#allocation7 + $0x5e8] sm:$0xff] }
 0x507   :  { %2034 = vmatpush1.bf16.msra.mxu1 %v5251_v26  ;;  %v496_v26 = vld [vmem:[#allocation7 + $0x428] sm:$0xff] }
 0x508   :  { %2035 = vmatprep.subr.bf16.mxu1 %v5260_v29  ;;  %4632 = vmatpush1.bf16.msra.mxu0 %v5961_v11  ;;  %v5331_v29 = vcombine.low %v484_v20, %v488_v21  ;;  %v5340_v30 = vcombine.high %v492_v25, %v496_v26  ;;  %v5339_v37 = vcombine.low %v492_v25, %v496_v26  ;;  %v548_v11 = vld [vmem:[#allocation7 + $0x5c8] sm:$0xff]  ;;  %v5991_v20 = vld [vmem:[#allocation10 + $0x2d0] ss:$24 sps:$4 sm:$0xff]  }
 0x509   :  { %4633 = vmatprep.subr.bf16.mxu0 %v5966_v19  ;;  %v560_v19 = vld [vmem:[#allocation7 + $0x628] sm:$0xff]  ;;  %v5395_v21 = vcombine.low %v548_v11, %v552_v12 }
 0x50a   :  { %v572_v26 = vld [vmem:[#allocation7 + $0x688] sm:$0xff] }
 0x50b   :  { %2036 = vmatpush1.bf16.msra.mxu1 %v5259_v32  ;;  %v5972_v32 = vld [vmem:[#allocation10 + $0x184] ss:$24 sps:$4 sm:$0xff]  }
 0x50c   :  { %2037 = vmatprep.subr.bf16.mxu1 %v5268_v34  ;;  %4634 = vmatpush1.bf16.msra.mxu0 %v5964_v16  ;;  %v500_v34 = vld [vmem:[#allocation7 + $0x448] sm:$0xff] }
 0x50d   :  { %4635 = vmatprep.subr.bf16.mxu0 %v5969_v24  ;;  %v5347_v43 = vcombine.low %v500_v34, %v504_v35  ;;  %v556_v16 = vld [vmem:[#allocation7 + $0x608] sm:$0xff] }
 0x50e   :  { %v5403_v24 = vcombine.low %v556_v16, %v560_v19 }
 0x50f   :  { %2038 = vmatpush1.bf16.msra.mxu1 %v5267_v38  ;;  %v5348_v38 = vcombine.high %v500_v34, %v504_v35  ;;  %v584_v34 = vld [vmem:[#allocation7 + $0x6e8] sm:$0xff] }
 0x510   :  { %2039 = vmatprep.subr.bf16.mxu1 %v5276_v39  ;;  %4636 = vmatpush1.bf16.msra.mxu0 %v5967_v23  ;;  %v5975_v39 = vld [vmem:[#allocation10 + $0x1b4] ss:$24 sps:$4 sm:$0xff]   ;;  %v568_v23 = vld [vmem:[#allocation7 + $0x668] sm:$0xff] }
 0x511   :  { %4637 = vmatprep.subr.bf16.mxu0 %v5972_v32  ;;  %v580_v32 = vld [vmem:[#allocation7 + $0x6c8] sm:$0xff] }
 0x513   :  { %2040 = vmatpush1.bf16.msra.mxu1 %v5275_v44  ;;  %v5356_v44 = vcombine.high %v508_v40, %v512_v41  ;;  %v5427_v40 = vcombine.low %v580_v32, %v584_v34 }
 0x514   :  { %2041 = vmatprep.subr.bf16.mxu1 %v5284_v45  ;;  %4638 = vmatpush1.bf16.msra.mxu0 %v5970_v31  ;;  %v5976_v45 = vld [vmem:[#allocation10 + $0x1e0] ss:$24 sps:$4 sm:$0xff]  }
 0x515   :  { %4639 = vmatprep.subr.bf16.mxu0 %v5975_v39  ;;  %v592_v39 = vld [vmem:[#allocation7 + $0x728] sm:$0xff] }
 0x517   :  { %2042 = vmatpush1.bf16.msra.mxu1 %v5283_v52  ;;  %v5364_v52 = vcombine.high %v516_v47, %v520_v48  ;;  %v608_v47 = vld [vmem:[#allocation7 + $0x7a8] sm:$0xff] }
 0x518   :  { %2043 = vmatprep.subr.bf16.mxu1 %v5292_v53  ;;  %4640 = vmatpush1.bf16.msra.mxu0 %v5973_v42  ;;  %v5979_v53 = vld [vmem:[#allocation10 + $0x210] ss:$24 sps:$4 sm:$0xff]   ;;  %v596_v42 = vld [vmem:[#allocation7 + $0x748] sm:$0xff] }
 0x519   :  { %4641 = vmatprep.subr.bf16.mxu0 %v5978_v46  ;;  %v604_v46 = vld [vmem:[#allocation7 + $0x788] sm:$0xff] }
 0x51b   :  { %2044 = vmatpush1.bf16.msra.mxu1 %v5291_v59  ;;  %v5372_v59 = vcombine.high %v524_v55, %v528_v56  ;;  %v366_v56 = vld [vmem:[#allocation7 + $0x18] sm:$0xff] }
 0x51c   :  { %2045 = vmatprep.subr.bf16.mxu1 %v5300_v60  ;;  %4642 = vmatpush1.bf16.msra.mxu0 %v5976_v45  ;;  %v5982_v60 = vld [vmem:[#allocation10 + $0x240] ss:$24 sps:$4 sm:$0xff]  }
 0x51d   :  { %4643 = vmatprep.subr.bf16.mxu0 %v5981_v54  ;;  %v5451_v54 = vcombine.low %v604_v46, %v608_v47 }
 0x51f   :  { %2046 = vmatpush1.bf16.msra.mxu1 %v5299_v2  ;;  %v5380_v2 = vcombine.high %v532_v61, %v536_v62  ;;  %v378_v61 = vld [vmem:[#allocation7 + $0x78] sm:$0xff] }
 0x520   :  { %2047 = vmatprep.subr.bf16.mxu1 %v5308_v3  ;;  %4644 = vmatpush1.bf16.msra.mxu0 %v5979_v53  ;;  %v5985_v3 = vld [vmem:[#allocation10 + $0x270] ss:$24 sps:$4 sm:$0xff]   ;;  %v616_v53 = vld [vmem:[#allocation7 + $0x7e8] sm:$0xff] }
 0x521   :  { %4645 = vmatprep.subr.bf16.mxu0 %v5984_v27  ;;  %v374_v27 = vld [vmem:[#allocation7 + $0x58] sm:$0xff] }
 0x523   :  { %2048 = vmatpush1.bf16.msra.mxu1 %v5307_v9  ;;  %v5388_v9 = vcombine.high %v540_v5, %v544_v6  ;;  %v390_v6 = vld [vmem:[#allocation7 + $0xd8] sm:$0xff] }
 0x524   :  { %2049 = vmatprep.subr.bf16.mxu1 %v5316_v10  ;;  %4646 = vmatpush1.bf16.msra.mxu0 %v5982_v60  ;;  %v5990_v10 = vld [vmem:[#allocation10 + $0x2a4] ss:$24 sps:$4 sm:$0xff]  }
 0x525   :  { %4647 = vmatprep.subr.bf16.mxu0 %v5987_v4  ;;  %v5223_v4 = vcombine.low %v374_v27, %v378_v61 }
 0x527   :  { %2050 = vmatpush1.bf16.msra.mxu1 %v5315_v0  ;;  %v5396_v0 = vcombine.high %v548_v11, %v552_v12  ;;  %v398_v11 = vld [vmem:[#allocation7 + $0x118] sm:$0xff] }
 0x528   :  { %2051 = vmatprep.subr.bf16.mxu1 %v5324_v15  ;;  %4648 = vmatpush1.bf16.msra.mxu0 %v5985_v3  ;;  %v5993_v15 = vld [vmem:[#allocation10 + $0x2d4] ss:$24 sps:$4 sm:$0xff]  }
 0x529   :  { %4649 = vmatprep.subr.bf16.mxu0 %v5990_v10  ;;  %v386_v3 = vld [vmem:[#allocation7 + $0xb8] sm:$0xff] }
 0x52a   :  { %v402_v12 = vld [vmem:[#allocation7 + $0x138] sm:$0xff] }
 0x52b   :  { %2052 = vmatpush1.bf16.msra.mxu1 %v5323_v1  ;;  %v5404_v1 = vcombine.high %v556_v16, %v560_v19  ;;  %v5247_v16 = vcombine.low %v398_v11, %v402_v12  ;;  %v414_v19 = vld [vmem:[#allocation7 + $0x198] sm:$0xff] }
 0x52c   :  { %2053 = vmatprep.subr.bf16.mxu1 %v5332_v22  ;;  %4650 = vmatpush1.bf16.msra.mxu0 %v5988_v13  ;;  %v564_v22 = vld [vmem:[#allocation7 + $0x648] sm:$0xff] }
 0x52d   :  { %4651 = vmatprep.subr.bf16.mxu0 %v5993_v15  ;;  %v5412_v25 = vcombine.high %v564_v22, %v568_v23  ;;  %v410_v15 = vld [vmem:[#allocation7 + $0x178] sm:$0xff] }
 0x52f   :  { %2054 = vmatpush1.bf16.msra.mxu1 %v5331_v29  ;;  %v576_v29 = vld [vmem:[#allocation7 + $0x6a8] sm:$0xff] }
 0x530   :  { %2064 = vmatprep.subr.bf16.mxu1 %v5340_v30  ;;  %4652 = vmatpush1.bf16.msra.mxu0 %v5991_v20  ;;  %v5411_v30 = vcombine.low %v564_v22, %v568_v23  ;;  %v5420_v31 = vcombine.high %v572_v26, %v576_v29  ;;  %v5419_v35 = vcombine.low %v572_v26, %v576_v29  ;;  %v418_v20 = vld [vmem:[#allocation7 + $0x1b8] sm:$0xff] }
 0x531   :  { %v422_v22 = vld [vmem:[#allocation7 + $0x1d8] sm:$0xff] }
 0x532   :  { %2056 = vmatmul.mubr.bf16.vlgmr.msra.gmra.mrb[8].mxu1 %v6892_v51  ;;  %v426_v23 = vld [vmem:[#allocation7 + $0x1f8] sm:$0xff] }
 0x533   :  { %2065 = vmatpush1.bf16.msra.mxu1 %v5339_v37  ;;  %2096 = vmatprep.mubr.bf16.mxu1 %v6896_v58  ;;  %v5428_v37 = vcombine.high %v580_v32, %v584_v34  ;;  %v430_v26 = vld [vmem:[#allocation7 + $0x218] sm:$0xff] }
 0x534   :  { %2066 = vmatprep.subr.bf16.mxu1 %v5348_v38  ;;  %v588_v38 = vld [vmem:[#allocation7 + $0x708] sm:$0xff]  ;;  %v434_v29 = vld [vmem:[#allocation7 + $0x238] sm:$0xff] }
 0x535   :  { %v5436_v41 = vcombine.high %v588_v38, %v592_v39  ;;  %v5280_v32 = vcombine.high %v430_v26, %v434_v29  ;;  %v438_v34 = vld [vmem:[#allocation7 + $0x258] sm:$0xff] }
 0x537   :  { %2067 = vmatpush1.bf16.msra.mxu1 %v5347_v43  ;;  %v600_v43 = vld [vmem:[#allocation7 + $0x768] sm:$0xff] }
 0x538   :  { %2068 = vmatprep.subr.bf16.mxu1 %v5356_v44  ;;  %v5435_v44 = vcombine.low %v588_v38, %v592_v39  ;;  %v5444_v45 = vcombine.high %v596_v42, %v600_v43  ;;  %v5443_v48 = vcombine.low %v596_v42, %v600_v43  ;;  %v446_v39 = vld [vmem:[#allocation7 + $0x298] sm:$0xff] }
 0x539   :  { %v454_v43 = vld [vmem:[#allocation7 + $0x2d8] sm:$0xff] }
 0x53b   :  { %2069 = vmatpush1.bf16.msra.mxu1 %v5355_v49  ;;  %v5452_v49 = vcombine.high %v604_v46, %v608_v47  ;;  %v462_v47 = vld [vmem:[#allocation7 + $0x318] sm:$0xff] }
 0x53c   :  { %2070 = vmatprep.subr.bf16.mxu1 %v5364_v52  ;;  %v612_v52 = vld [vmem:[#allocation7 + $0x7c8] sm:$0xff] }
 0x53d   :  { %v5460_v55 = vcombine.high %v612_v52, %v616_v53 }
 0x53f   :  { %2071 = vmatpush1.bf16.msra.mxu1 %v5363_v57  ;;  %v370_v57 = vld [vmem:[#allocation7 + $0x38] sm:$0xff] }
 0x540   :  { %2072 = vmatprep.subr.bf16.mxu1 %v5372_v59  ;;  %v5459_v59 = vcombine.low %v612_v52, %v616_v53  ;;  %v5216_v60 = vcombine.high %v366_v56, %v370_v57  ;;  %v5215_v62 = vcombine.low %v366_v56, %v370_v57  ;;  %v470_v53 = vld [vmem:[#allocation7 + $0x358] sm:$0xff] }
 0x541   :  { %v478_v57 = vld [vmem:[#allocation7 + $0x398] sm:$0xff] }
 0x543   :  { %2073 = vmatpush1.bf16.msra.mxu1 %v5371_v63  ;;  %v5224_v63 = vcombine.high %v374_v27, %v378_v61  ;;  %v486_v61 = vld [vmem:[#allocation7 + $0x3d8] sm:$0xff] }
 0x544   :  { %2074 = vmatprep.subr.bf16.mxu1 %v5380_v2  ;;  %v382_v2 = vld [vmem:[#allocation7 + $0x98] sm:$0xff] }
 0x545   :  { %v5232_v5 = vcombine.high %v382_v2, %v386_v3 }
 0x547   :  { %2075 = vmatpush1.bf16.msra.mxu1 %v5379_v7  ;;  %v394_v7 = vld [vmem:[#allocation7 + $0xf8] sm:$0xff] }
 0x548   :  { %2076 = vmatprep.subr.bf16.mxu1 %v5388_v9  ;;  %v5231_v9 = vcombine.low %v382_v2, %v386_v3  ;;  %v5240_v10 = vcombine.high %v390_v6, %v394_v7  ;;  %v5239_v13 = vcombine.low %v390_v6, %v394_v7  ;;  %v494_v3 = vld [vmem:[#allocation7 + $0x418] sm:$0xff] }
 0x549   :  { %v502_v7 = vld [vmem:[#allocation7 + $0x458] sm:$0xff] }
 0x54b   :  { %2077 = vmatpush1.bf16.msra.mxu1 %v5387_v14  ;;  %v5248_v14 = vcombine.high %v398_v11, %v402_v12  ;;  %v510_v12 = vld [vmem:[#allocation7 + $0x498] sm:$0xff] }
 0x54c   :  { %2078 = vmatprep.subr.bf16.mxu1 %v5396_v0  ;;  %v406_v0 = vld [vmem:[#allocation7 + $0x158] sm:$0xff] }
 0x54f   :  { %2079 = vmatpush1.bf16.msra.mxu1 %v5395_v21  ;;  %v5255_v21 = vcombine.low %v406_v0, %v410_v15 }
 0x550   :  { %2080 = vmatprep.subr.bf16.mxu1 %v5404_v1  ;;  %v5264_v1 = vcombine.high %v414_v19, %v418_v20 }
 0x553   :  { %2081 = vmatpush1.bf16.msra.mxu1 %v5403_v24  ;;  %v5263_v24 = vcombine.low %v414_v19, %v418_v20  ;;  %v526_v20 = vld [vmem:[#allocation7 + $0x518] sm:$0xff] }
 0x554   :  { %2082 = vmatprep.subr.bf16.mxu1 %v5412_v25  ;;  %v5272_v25 = vcombine.high %v422_v22, %v426_v23 }
 0x557   :  { %2083 = vmatpush1.bf16.msra.mxu1 %v5411_v30  ;;  %v5271_v30 = vcombine.low %v422_v22, %v426_v23  ;;  %v534_v23 = vld [vmem:[#allocation7 + $0x558] sm:$0xff] }
 0x558   :  { %2084 = vmatprep.subr.bf16.mxu1 %v5420_v31  ;;  %v6017_v31 = vld [vmem:[#allocation10 + $0x304] ss:$24 sps:$4 sm:$0xff]  }
 0x559   :  { %4662 = vmatprep.subr.bf16.mxu0 %v6017_v31 }
 0x55b   :  { %2085 = vmatpush1.bf16.msra.mxu1 %v5419_v35  ;;  %v442_v35 = vld [vmem:[#allocation7 + $0x278] sm:$0xff] }
 0x55c   :  { %2086 = vmatprep.subr.bf16.mxu1 %v5428_v37  ;;  %v5279_v37 = vcombine.low %v430_v26, %v434_v29  ;;  %v5288_v38 = vcombine.high %v438_v34, %v442_v35  ;;  %v542_v26 = vld [vmem:[#allocation7 + $0x598] sm:$0xff] }
 0x55d   :  { %v546_v29 = vld [vmem:[#allocation7 + $0x5b8] sm:$0xff] }
 0x55f   :  { %2087 = vmatpush1.bf16.msra.mxu1 %v5427_v40  ;;  %v450_v40 = vld [vmem:[#allocation7 + $0x2b8] sm:$0xff] }
 0x560   :  { %2088 = vmatprep.subr.bf16.mxu1 %v5436_v41  ;;  %v5287_v41 = vcombine.low %v438_v34, %v442_v35  ;;  %v5296_v42 = vcombine.high %v446_v39, %v450_v40  ;;  %v5392_v34 = vcombine.high %v542_v26, %v546_v29 }
 0x563   :  { %2089 = vmatpush1.bf16.msra.mxu1 %v5435_v44  ;;  %v458_v44 = vld [vmem:[#allocation7 + $0x2f8] sm:$0xff] }
 0x564   :  { %2090 = vmatprep.subr.bf16.mxu1 %v5444_v45  ;;  %v5295_v45 = vcombine.low %v446_v39, %v450_v40  ;;  %v5304_v46 = vcombine.high %v454_v43, %v458_v44  ;;  %v554_v39 = vld [vmem:[#allocation7 + $0x5f8] sm:$0xff] }
 0x567   :  { %2091 = vmatpush1.bf16.msra.mxu1 %v5443_v48  ;;  %v466_v48 = vld [vmem:[#allocation7 + $0x338] sm:$0xff] }
 0x568   :  { %2092 = vmatprep.subr.bf16.mxu1 %v5452_v49  ;;  %v5303_v49 = vcombine.low %v454_v43, %v458_v44  ;;  %v5312_v52 = vcombine.high %v462_v47, %v466_v48 }
 0x56b   :  { %2093 = vmatpush1.bf16.msra.mxu1 %v5451_v54  ;;  %v474_v54 = vld [vmem:[#allocation7 + $0x378] sm:$0xff] }
 0x56c   :  { %2094 = vmatprep.subr.bf16.mxu1 %v5460_v55  ;;  %v5311_v55 = vcombine.low %v462_v47, %v466_v48  ;;  %v5320_v56 = vcombine.high %v470_v53, %v474_v54 }
 0x56f   :  { %2095 = vmatpush1.bf16.msra.mxu1 %v5459_v59  ;;  %v482_v59 = vld [vmem:[#allocation7 + $0x3b8] sm:$0xff] }
 0x570   :  { %2187 = vmatprep.subr.bf16.mxu1 %v5216_v60  ;;  %v5319_v60 = vcombine.low %v470_v53, %v474_v54  ;;  %v5328_v27 = vcombine.high %v478_v57, %v482_v59  ;;  %v558_v54 = vld [vmem:[#allocation7 + $0x618] sm:$0xff] }
 0x572   :  { %2097 = vmatmul.mubr.bf16.vlgmr.msra.gmra.mrb[8].mxu1 %v6908_v33 }
 0x573   :  { %2188 = vmatpush1.bf16.msra.mxu1 %v5215_v62  ;;  %2219 = vmatprep.mubr.bf16.mxu1 %v6890_v50  ;;  %v5256_v50 = vcombine.high %v406_v0, %v410_v15  ;;  %v490_v62 = vld [vmem:[#allocation7 + $0x3f8] sm:$0xff] }
 0x574   :  { %2189 = vmatprep.subr.bf16.mxu1 %v5224_v63  ;;  %v5327_v63 = vcombine.low %v478_v57, %v482_v59  ;;  %v5336_v2 = vcombine.high %v486_v61, %v490_v62  ;;  %v518_v15 = vld [vmem:[#allocation7 + $0x4d8] sm:$0xff]  ;;  %v6015_v59 = vld [vmem:[#allocation10 + $0x300] ss:$24 sps:$4 sm:$0xff]  }
 0x577   :  { %2190 = vmatpush1.bf16.msra.mxu1 %v5223_v4  ;;  %v498_v4 = vld [vmem:[#allocation7 + $0x438] sm:$0xff] }
 0x578   :  { %2191 = vmatprep.subr.bf16.mxu1 %v5232_v5  ;;  %v5335_v5 = vcombine.low %v486_v61, %v490_v62  ;;  %v5344_v6 = vcombine.high %v494_v3, %v498_v4  ;;  %v6023_v61 = vld [vmem:[#allocation10 + $0x334] ss:$24 sps:$4 sm:$0xff]  }
 0x579   :  { %v566_v62 = vld [vmem:[#allocation7 + $0x658] sm:$0xff] }
 0x57b   :  { %2192 = vmatpush1.bf16.msra.mxu1 %v5231_v9  ;;  %v506_v9 = vld [vmem:[#allocation7 + $0x478] sm:$0xff] }
 0x57c   :  { %2193 = vmatprep.subr.bf16.mxu1 %v5240_v10  ;;  %v5343_v10 = vcombine.low %v494_v3, %v498_v4  ;;  %v5352_v11 = vcombine.high %v502_v7, %v506_v9  ;;  %v6021_v3 = vld [vmem:[#allocation10 + $0x330] ss:$24 sps:$4 sm:$0xff]  }
 0x57f   :  { %2194 = vmatpush1.bf16.msra.mxu1 %v5239_v13  ;;  %v514_v13 = vld [vmem:[#allocation7 + $0x4b8] sm:$0xff] }
 0x580   :  { %2195 = vmatprep.subr.bf16.mxu1 %v5248_v14  ;;  %v5351_v14 = vcombine.low %v502_v7, %v506_v9  ;;  %v5360_v0 = vcombine.high %v510_v12, %v514_v13  ;;  %v578_v7 = vld [vmem:[#allocation7 + $0x6b8] sm:$0xff] }
 0x583   :  { %2196 = vmatpush1.bf16.msra.mxu1 %v5247_v16  ;;  %v522_v16 = vld [vmem:[#allocation7 + $0x4f8] sm:$0xff] }
 0x584   :  { %2197 = vmatprep.subr.bf16.mxu1 %v5256_v50  ;;  %v5359_v50 = vcombine.low %v510_v12, %v514_v13  ;;  %v5368_v19 = vcombine.high %v518_v15, %v522_v16  ;;  %v6035_v12 = vld [vmem:[#allocation10 + $0x394] ss:$24 sps:$4 sm:$0xff]  }
 0x585   :  { %v582_v13 = vld [vmem:[#allocation7 + $0x6d8] sm:$0xff] }
 0x587   :  { %2198 = vmatpush1.bf16.msra.mxu1 %v5255_v21  ;;  %v530_v21 = vld [vmem:[#allocation7 + $0x538] sm:$0xff] }
 0x588   :  { %2199 = vmatprep.subr.bf16.mxu1 %v5264_v1  ;;  %v5367_v1 = vcombine.low %v518_v15, %v522_v16  ;;  %v5376_v22 = vcombine.high %v526_v20, %v530_v21  ;;  %v6033_v15 = vld [vmem:[#allocation10 + $0x390] ss:$24 sps:$4 sm:$0xff]  }
 0x58b   :  { %2200 = vmatpush1.bf16.msra.mxu1 %v5263_v24  ;;  %v5375_v24 = vcombine.low %v526_v20, %v530_v21  ;;  %v594_v20 = vld [vmem:[#allocation7 + $0x738] sm:$0xff] }
 0x58c   :  { %2201 = vmatprep.subr.bf16.mxu1 %v5272_v25 }
 0x58f   :  { %2202 = vmatpush1.bf16.msra.mxu1 %v5271_v30 }
 0x590   :  { %2203 = vmatprep.subr.bf16.mxu1 %v5280_v32 }
 0x593   :  { %2204 = vmatpush1.bf16.msra.mxu1 %v5279_v37 }
 0x594   :  { %2205 = vmatprep.subr.bf16.mxu1 %v5288_v38  ;;  %v550_v38 = vld [vmem:[#allocation7 + $0x5d8] sm:$0xff] }
 0x595   :  { %v5399_v57 = vcombine.low %v550_v38, %v554_v39 }
 0x597   :  { %2206 = vmatpush1.bf16.msra.mxu1 %v5287_v41 }
 0x598   :  { %2207 = vmatprep.subr.bf16.mxu1 %v5296_v42 }
 0x59b   :  { %2208 = vmatpush1.bf16.msra.mxu1 %v5295_v45 }
 0x59c   :  { %2209 = vmatprep.subr.bf16.mxu1 %v5304_v46  ;;  %v5391_v46 = vcombine.low %v542_v26, %v546_v29  ;;  %v6045_v26 = vld [vmem:[#allocation10 + $0x3f0] ss:$24 sps:$4 sm:$0xff]  }
 0x59f   :  { %2210 = vmatpush1.bf16.msra.mxu1 %v5303_v49 }
 0x5a0   :  { %2211 = vmatprep.subr.bf16.mxu1 %v5312_v52  ;;  %v5400_v52 = vcombine.high %v550_v38, %v554_v39  ;;  %v6059_v39 = vld [vmem:[#allocation10 + $0x454] ss:$24 sps:$4 sm:$0xff]  }
 0x5a3   :  { %2212 = vmatpush1.bf16.msra.mxu1 %v5311_v55  ;;  %v562_v55 = vld [vmem:[#allocation7 + $0x638] sm:$0xff] }
 0x5a4   :  { %2213 = vmatprep.subr.bf16.mxu1 %v5320_v56 }
 0x5a7   :  { %2214 = vmatpush1.bf16.msra.mxu1 %v5319_v60 }
 0x5a8   :  { %2215 = vmatprep.subr.bf16.mxu1 %v5328_v27  ;;  %v5408_v27 = vcombine.high %v558_v54, %v562_v55 }
 0x5ab   :  { %2216 = vmatpush1.bf16.msra.mxu1 %v5327_v63  ;;  %v570_v63 = vld [vmem:[#allocation7 + $0x678] sm:$0xff] }
 0x5ac   :  { %2217 = vmatprep.subr.bf16.mxu1 %v5336_v2  ;;  %v5407_v2 = vcombine.low %v558_v54, %v562_v55  ;;  %v5416_v4 = vcombine.high %v566_v62, %v570_v63  ;;  %v5415_v9 = vcombine.low %v566_v62, %v570_v63  ;;  %v5999_v54 = vld [vmem:[#allocation10 + $0x3c] ss:$24 sps:$4 sm:$0xff]   ;;  %v6069_v55 = vld [vmem:[#allocation10 + $0x4b0] ss:$24 sps:$4 sm:$0xff]  }
 0x5ad   :  { %v6083_v62 = vld [vmem:[#allocation10 + $0x514] ss:$24 sps:$4 sm:$0xff]   ;;  %v6000_v63 = vld [vmem:[#allocation10 + $0x68] ss:$24 sps:$4 sm:$0xff]  }
 0x5af   :  { %2218 = vmatpush1.bf16.msra.mxu1 %v5335_v5  ;;  %v6029_v5 = vld [vmem:[#allocation10 + $0x364] ss:$24 sps:$4 sm:$0xff]  }
 0x5b0   :  { %2228 = vmatprep.subr.bf16.mxu1 %v5344_v6  ;;  %v574_v6 = vld [vmem:[#allocation7 + $0x698] sm:$0xff] }
 0x5b2   :  { %2220 = vmatmul.mubr.bf16.vlgmr.msra.gmra.mrb[12].mxu1 %v6892_v51  ;;  %v538_v51 = vld [vmem:[#allocation7 + $0x578] sm:$0xff] }
 0x5b3   :  { %2229 = vmatpush1.bf16.msra.mxu1 %v5343_v10  ;;  %2260 = vmatprep.mubr.bf16.mxu1 %v6896_v58  ;;  %v6919_v58 = vld [vmem:[#allocation8] sm:$0xff]  ;;  %v5384_v25 = vcombine.high %v534_v23, %v538_v51  ;;  %v5383_v32 = vcombine.low %v534_v23, %v538_v51  ;;  %v6047_v23 = vld [vmem:[#allocation10 + $0x3f4] ss:$24 sps:$4 sm:$0xff]  }
 0x5b4   :  { %2230 = vmatprep.subr.bf16.mxu1 %v5352_v11  ;;  %v624_v30 = vrot.slane %v6919_v58, %v6861_v17  ;;  %v628_v31 = vrot.slane %v6919_v58, %v6864_v18  ;;  %v6027_v10 = vld [vmem:[#allocation10 + $0x360] ss:$24 sps:$4 sm:$0xff]   ;;  %v5424_v11 = vcombine.high %v574_v6, %v578_v7  ;;  %v598_v51 = vld [vmem:[#allocation7 + $0x758] sm:$0xff] }
 0x5b7   :  { %2231 = vmatpush1.bf16.msra.mxu1 %v5351_v14  ;;  %v586_v14 = vld [vmem:[#allocation7 + $0x6f8] sm:$0xff] }
 0x5b8   :  { %2232 = vmatprep.subr.bf16.mxu1 %v5360_v0  ;;  %v5423_v0 = vcombine.low %v574_v6, %v578_v7  ;;  %v5432_v16 = vcombine.high %v582_v13, %v586_v14  ;;  %v5431_v21 = vcombine.low %v582_v13, %v586_v14  ;;  %v6087_v6 = vld [vmem:[#allocation10 + $0x540] ss:$24 sps:$4 sm:$0xff]   ;;  %v6095_v7 = vld [vmem:[#allocation10 + $0x574] ss:$24 sps:$4 sm:$0xff]  }
 0x5b9   :  { %v6009_v13 = vld [vmem:[#allocation10 + $0xf8] ss:$24 sps:$4 sm:$0xff]   ;;  %v6014_v14 = vld [vmem:[#allocation10 + $0x12c] ss:$24 sps:$4 sm:$0xff]  }
 0x5bb   :  { %2233 = vmatpush1.bf16.msra.mxu1 %v5359_v50  ;;  %v6041_v50 = vld [vmem:[#allocation10 + $0x3c4] ss:$24 sps:$4 sm:$0xff]  }
 0x5bc   :  { %2234 = vmatprep.subr.bf16.mxu1 %v5368_v19  ;;  %v590_v19 = vld [vmem:[#allocation7 + $0x718] sm:$0xff] }
 0x5bf   :  { %2235 = vmatpush1.bf16.msra.mxu1 %v5367_v1  ;;  %v6039_v1 = vld [vmem:[#allocation10 + $0x3c0] ss:$24 sps:$4 sm:$0xff]  }
 0x5c0   :  { %2236 = vmatprep.subr.bf16.mxu1 %v5376_v22  ;;  %v5440_v22 = vcombine.high %v590_v19, %v594_v20 }
 0x5c3   :  { %2237 = vmatpush1.bf16.msra.mxu1 %v5375_v24  ;;  %v602_v24 = vld [vmem:[#allocation7 + $0x778] sm:$0xff] }
 0x5c4   :  { %2238 = vmatprep.subr.bf16.mxu1 %v5384_v25  ;;  %v5439_v25 = vcombine.low %v590_v19, %v594_v20  ;;  %v5448_v29 = vcombine.high %v598_v51, %v602_v24  ;;  %v6105_v19 = vld [vmem:[#allocation10 + $0x5d0] ss:$24 sps:$4 sm:$0xff]   ;;  %v6113_v20 = vld [vmem:[#allocation10 + $0x604] ss:$24 sps:$4 sm:$0xff]  }
 0x5c5   :  { %v2016_v35 = vpop.f32.mrb[4].mxu1  ;;  %v6925_v37 = vpop.f32.mrb[4].mxu0 }
 0x5c6   :  { %v5856_v40 = vadd.f32 %v2016_v35, %v624_v30  ;;  %v2018_v41 = vpop.f32.mrb[5].mxu1  ;;  %v6927_v42 = vpop.f32.mrb[5].mxu0  ;;  %v6053_v30 = vld [vmem:[#allocation10 + $0x424] ss:$24 sps:$4 sm:$0xff]   ;;  %v6051_v35 = vld [vmem:[#allocation10 + $0x420] ss:$24 sps:$4 sm:$0xff]  }
 0x5c7   :  { %v5857_v43 = vadd.f32 %v2018_v41, %v628_v31  ;;  %v2020_v44 = vpop.f32.mrb[6].mxu1  ;;  %v2184_v45 = vpop.f32.mrb[6].mxu0  ;;  %2239 = vmatpush1.bf16.msra.mxu1 %v5383_v32  ;;  %v606_v31 = vld [vmem:[#allocation7 + $0x798] sm:$0xff] }
 0x5c8   :  { %v2269_v47 = vmax.f32 %v5856_v40, 0.0  ;;  %v2021_v48 = vpop.f32.mrb[7].mxu1  ;;  %v2185_v49 = vpop.f32.mrb[7].mxu0  ;;  %2240 = vmatprep.subr.bf16.mxu1 %v5392_v34  ;;  %v610_v32 = vld [vmem:[#allocation7 + $0x7b8] sm:$0xff]  ;;  %v5447_v34 = vcombine.low %v598_v51, %v602_v24  ;;  %v6038_v24 = vld [vmem:[#allocation10 + $0x1ec] ss:$24 sps:$4 sm:$0xff]  }
 0x5c9   :  { %v2270_v53 = vmax.f32 %v5857_v43, 0.0  ;;  %v5456_v38 = vcombine.high %v606_v31, %v610_v32  ;;  %v614_v40 = vld [vmem:[#allocation7 + $0x7d8] sm:$0xff]  ;;  %v5455_v43 = vcombine.low %v606_v31, %v610_v32  ;;  %v6063_v48 = vld [vmem:[#allocation10 + $0x480] ss:$24 sps:$4 sm:$0xff]   ;;  %v5996_v49 = vld [vmem:[#allocation10 + $0xc] ss:$24 sps:$4 sm:$0xff]  }
 0x5ca   :  { %v6931_v60 = vpack.c.bf16 %v2269_v47, %v2269_v47  ;;  %v618_v41 = vld [vmem:[#allocation7 + $0x7f8] sm:$0xff]  ;;  %v6048_v31 = vld [vmem:[#allocation10 + $0x248] ss:$24 sps:$4 sm:$0xff]  }
 0x5cb   :  { %v6929_v56 = vpack.c.bf16 %v2270_v53, %v2270_v53  ;;  %2241 = vmatpush1.bf16.msra.mxu1 %v5391_v46  ;;  %v6057_v44 = vld [vmem:[#allocation10 + $0x450] ss:$24 sps:$4 sm:$0xff]   ;;  %v5464_v45 = vcombine.high %v614_v40, %v618_v41  ;;  %v6065_v46 = vld [vmem:[#allocation10 + $0x484] ss:$24 sps:$4 sm:$0xff]   ;;  %v5463_v47 = vcombine.low %v614_v40, %v618_v41 }
 0x5cc   :  { %2242 = vmatprep.subr.bf16.mxu1 %v5400_v52  ;;  %v6071_v52 = vld [vmem:[#allocation10 + $0x4b4] ss:$24 sps:$4 sm:$0xff]   ;;  %v5994_v53 = vld [vmem:[#allocation10 + $0x8] ss:$24 sps:$4 sm:$0xff]   ;;  %v6030_v51 = vld [vmem:[#allocation10 + $0x1b8] ss:$24 sps:$4 sm:$0xff]  }
 0x5cd   :  { %4653 = vmatprep.mubr.bf16.mxu0 %v6929_v56  ;;  %v6056_v32 = vld [vmem:[#allocation10 + $0x27c] ss:$24 sps:$4 sm:$0xff]   ;;  %v6066_v40 = vld [vmem:[#allocation10 + $0x2d8] ss:$24 sps:$4 sm:$0xff]   ;;  %v6074_v41 = vld [vmem:[#allocation10 + $0x30c] ss:$24 sps:$4 sm:$0xff]  }
 0x5ce   :  { %4654 = vmatmul.mubr.bf16.vlgmr.msra.gmra.mrb[8].mxu0 %v6931_v60 }
 0x5cf   :  { %2243 = vmatpush1.bf16.msra.mxu1 %v5399_v57  ;;  %4663 = vmatpush1.bf16.msra.mxu0 %v6015_v59  ;;  %v6077_v57 = vld [vmem:[#allocation10 + $0x4e4] ss:$24 sps:$4 sm:$0xff]   ;;  %v5997_v59 = vld [vmem:[#allocation10 + $0x38] ss:$24 sps:$4 sm:$0xff]  }
 0x5d0   :  { %2244 = vmatprep.subr.bf16.mxu1 %v5408_v27  ;;  %4664 = vmatprep.subr.bf16.mxu0 %v6023_v61  ;;  %v6002_v27 = vld [vmem:[#allocation10 + $0x6c] ss:$24 sps:$4 sm:$0xff]   ;;  %v6075_v61 = vld [vmem:[#allocation10 + $0x4e0] ss:$24 sps:$4 sm:$0xff]  }
 0x5d3   :  { %2245 = vmatpush1.bf16.msra.mxu1 %v5407_v2  ;;  %4665 = vmatpush1.bf16.msra.mxu0 %v6021_v3  ;;  %v6005_v2 = vld [vmem:[#allocation10 + $0x9c] ss:$24 sps:$4 sm:$0xff]   ;;  %v6081_v3 = vld [vmem:[#allocation10 + $0x510] ss:$24 sps:$4 sm:$0xff]  }
 0x5d4   :  { %2246 = vmatprep.subr.bf16.mxu1 %v5416_v4  ;;  %4666 = vmatprep.subr.bf16.mxu0 %v6029_v5  ;;  %v6089_v4 = vld [vmem:[#allocation10 + $0x544] ss:$24 sps:$4 sm:$0xff]  }
 0x5d5   :  { %v6008_v5 = vld [vmem:[#allocation10 + $0xcc] ss:$24 sps:$4 sm:$0xff]  }
 0x5d7   :  { %2247 = vmatpush1.bf16.msra.mxu1 %v5415_v9  ;;  %4667 = vmatpush1.bf16.msra.mxu0 %v6027_v10  ;;  %v6006_v9 = vld [vmem:[#allocation10 + $0xc8] ss:$24 sps:$4 sm:$0xff]   ;;  %v6011_v10 = vld [vmem:[#allocation10 + $0xfc] ss:$24 sps:$4 sm:$0xff]  }
 0x5d8   :  { %2248 = vmatprep.subr.bf16.mxu1 %v5424_v11  ;;  %4668 = vmatprep.subr.bf16.mxu0 %v6035_v12  ;;  %v6093_v11 = vld [vmem:[#allocation10 + $0x570] ss:$24 sps:$4 sm:$0xff]   ;;  %v6101_v12 = vld [vmem:[#allocation10 + $0x5a4] ss:$24 sps:$4 sm:$0xff]  }
 0x5db   :  { %2249 = vmatpush1.bf16.msra.mxu1 %v5423_v0  ;;  %4669 = vmatpush1.bf16.msra.mxu0 %v6033_v15  ;;  %v6099_v0 = vld [vmem:[#allocation10 + $0x5a0] ss:$24 sps:$4 sm:$0xff]   ;;  %v6107_v15 = vld [vmem:[#allocation10 + $0x5d4] ss:$24 sps:$4 sm:$0xff]  }
 0x5dc   :  { %2250 = vmatprep.subr.bf16.mxu1 %v5432_v16  ;;  %4670 = vmatprep.subr.bf16.mxu0 %v6041_v50  ;;  %v6012_v16 = vld [vmem:[#allocation10 + $0x128] ss:$24 sps:$4 sm:$0xff]   ;;  %v6020_v50 = vld [vmem:[#allocation10 + $0x15c] ss:$24 sps:$4 sm:$0xff]  }
 0x5df   :  { %2251 = vmatpush1.bf16.msra.mxu1 %v5431_v21  ;;  %4671 = vmatpush1.bf16.msra.mxu0 %v6039_v1  ;;  %v6018_v21 = vld [vmem:[#allocation10 + $0x158] ss:$24 sps:$4 sm:$0xff]   ;;  %v6026_v1 = vld [vmem:[#allocation10 + $0x18c] ss:$24 sps:$4 sm:$0xff]  }
 0x5e0   :  { %2252 = vmatprep.subr.bf16.mxu1 %v5440_v22  ;;  %4672 = vmatprep.subr.bf16.mxu0 %v6047_v23  ;;  %v6024_v22 = vld [vmem:[#allocation10 + $0x188] ss:$24 sps:$4 sm:$0xff]   ;;  %v6032_v23 = vld [vmem:[#allocation10 + $0x1bc] ss:$24 sps:$4 sm:$0xff]  }
 0x5e3   :  { %2253 = vmatpush1.bf16.msra.mxu1 %v5439_v25  ;;  %4673 = vmatpush1.bf16.msra.mxu0 %v6045_v26  ;;  %v6036_v25 = vld [vmem:[#allocation10 + $0x1e8] ss:$24 sps:$4 sm:$0xff]   ;;  %v6044_v26 = vld [vmem:[#allocation10 + $0x21c] ss:$24 sps:$4 sm:$0xff]  }
 0x5e4   :  { %2254 = vmatprep.subr.bf16.mxu1 %v5448_v29  ;;  %4674 = vmatprep.subr.bf16.mxu0 %v6053_v30  ;;  %v6042_v29 = vld [vmem:[#allocation10 + $0x218] ss:$24 sps:$4 sm:$0xff]   ;;  %v6050_v30 = vld [vmem:[#allocation10 + $0x24c] ss:$24 sps:$4 sm:$0xff]  }
 0x5e7   :  { %2255 = vmatpush1.bf16.msra.mxu1 %v5447_v34  ;;  %4675 = vmatpush1.bf16.msra.mxu0 %v6051_v35  ;;  %v6054_v34 = vld [vmem:[#allocation10 + $0x278] ss:$24 sps:$4 sm:$0xff]   ;;  %v6062_v35 = vld [vmem:[#allocation10 + $0x2ac] ss:$24 sps:$4 sm:$0xff]  }
 0x5e8   :  { %2256 = vmatprep.subr.bf16.mxu1 %v5456_v38  ;;  %4676 = vmatprep.subr.bf16.mxu0 %v6059_v39  ;;  %v6060_v38 = vld [vmem:[#allocation10 + $0x2a8] ss:$24 sps:$4 sm:$0xff]   ;;  %v6068_v39 = vld [vmem:[#allocation10 + $0x2dc] ss:$24 sps:$4 sm:$0xff]  }
 0x5eb   :  { %2257 = vmatpush1.bf16.msra.mxu1 %v5455_v43  ;;  %4677 = vmatpush1.bf16.msra.mxu0 %v6057_v44  ;;  %v6072_v43 = vld [vmem:[#allocation10 + $0x308] ss:$24 sps:$4 sm:$0xff]   ;;  %v6080_v44 = vld [vmem:[#allocation10 + $0x33c] ss:$24 sps:$4 sm:$0xff]  }
 0x5ec   :  { %2258 = vmatprep.subr.bf16.mxu1 %v5464_v45  ;;  %4678 = vmatprep.subr.bf16.mxu0 %v6065_v46  ;;  %v6078_v45 = vld [vmem:[#allocation10 + $0x338] ss:$24 sps:$4 sm:$0xff]   ;;  %v6086_v46 = vld [vmem:[#allocation10 + $0x36c] ss:$24 sps:$4 sm:$0xff]  }
 0x5ef   :  { %2259 = vmatpush1.bf16.msra.mxu1 %v5463_v47  ;;  %4679 = vmatpush1.bf16.msra.mxu0 %v6063_v48  ;;  %v6084_v47 = vld [vmem:[#allocation10 + $0x368] ss:$24 sps:$4 sm:$0xff]   ;;  %v6092_v48 = vld [vmem:[#allocation10 + $0x39c] ss:$24 sps:$4 sm:$0xff]  }
 0x5f0   :  { %4785 = vmatprep.subr.bf16.mxu1 %v5996_v49  ;;  %4680 = vmatprep.subr.bf16.mxu0 %v6071_v52  ;;  %v6090_v49 = vld [vmem:[#allocation10 + $0x398] ss:$24 sps:$4 sm:$0xff]   ;;  %v6098_v52 = vld [vmem:[#allocation10 + $0x3cc] ss:$24 sps:$4 sm:$0xff]  }
 0x5f2   :  { %2261 = vmatmul.mubr.bf16.vlgmr.msra.gmra.mrb[12].mxu1 %v6908_v33  ;;  %v6003_v33 = vld [vmem:[#allocation10 + $0x98] ss:$24 sps:$4 sm:$0xff]  }
 0x5f3   :  { %4786 = vmatpush1.bf16.msra.mxu1 %v5994_v53  ;;  %4817 = vmatprep.mubr.bf16.mxu1 %v6929_v56  ;;  %v643_v53 = vsub.s32 5, %v6855_v8 }
 0x5f4   :  { %4787 = vmatprep.subr.bf16.mxu1 %v5999_v54  ;;  %4681 = vmatpush1.bf16.msra.mxu0 %v6069_v55  ;;  %v6096_v54 = vld [vmem:[#allocation10 + $0x3c8] ss:$24 sps:$4 sm:$0xff]   ;;  %v6104_v55 = vld [vmem:[#allocation10 + $0x3fc] ss:$24 sps:$4 sm:$0xff]  }
 0x5f5   :  { %4682 = vmatprep.subr.bf16.mxu0 %v6077_v57  ;;  %v644_v57 = vrot.slane %v6919_v58, %v643_v53 }
 0x5f7   :  { %4788 = vmatpush1.bf16.msra.mxu1 %v5997_v59  ;;  %v632_v59 = vrot.slane %v6919_v58, %v6903_v36 }
 0x5f8   :  { %4789 = vmatprep.subr.bf16.mxu1 %v6002_v27  ;;  %4683 = vmatpush1.bf16.msra.mxu0 %v6075_v61  ;;  %v636_v27 = vrot.slane %v6919_v58, %v6880_v28  ;;  %v6102_v61 = vld [vmem:[#allocation10 + $0x3f8] ss:$24 sps:$4 sm:$0xff]  }
 0x5f9   :  { %4684 = vmatprep.subr.bf16.mxu0 %v6083_v62  ;;  %v6110_v62 = vld [vmem:[#allocation10 + $0x42c] ss:$24 sps:$4 sm:$0xff]  }
 0x5fb   :  { %4790 = vmatpush1.bf16.msra.mxu1 %v6000_v63  ;;  %v5861_v63 = vadd.f32 %v6927_v42, %v644_v57  ;;  %v6114_v42 = vld [vmem:[#allocation10 + $0x458] ss:$24 sps:$4 sm:$0xff]   ;;  %v6167_v57 = vld [vmem:[#allocation10 + $0x7b4] ss:$24 sps:$4 sm:$0xff]  }
 0x5fc   :  { %4791 = vmatprep.subr.bf16.mxu1 %v6005_v2  ;;  %4685 = vmatpush1.bf16.msra.mxu0 %v6081_v3 }
 0x5fd   :  { %4686 = vmatprep.subr.bf16.mxu0 %v6089_v4 }
 0x5ff   :  { %4792 = vmatpush1.bf16.msra.mxu1 %v6003_v33 }
 0x600   :  { %4793 = vmatprep.subr.bf16.mxu1 %v6008_v5  ;;  %4687 = vmatpush1.bf16.msra.mxu0 %v6087_v6  ;;  %v6108_v6 = vld [vmem:[#allocation10 + $0x428] ss:$24 sps:$4 sm:$0xff]  }
 0x601   :  { %4688 = vmatprep.subr.bf16.mxu0 %v6095_v7 }
 0x603   :  { %4794 = vmatpush1.bf16.msra.mxu1 %v6006_v9 }
 0x604   :  { %4795 = vmatprep.subr.bf16.mxu1 %v6011_v10  ;;  %4689 = vmatpush1.bf16.msra.mxu0 %v6093_v11  ;;  %v6116_v10 = vld [vmem:[#allocation10 + $0x45c] ss:$24 sps:$4 sm:$0xff]   ;;  %v2274_v11 = vmax.f32 %v5861_v63, 0.0 }
 0x605   :  { %4690 = vmatprep.subr.bf16.mxu0 %v6101_v12  ;;  %v6176_v63 = vld [vmem:[#allocation10 + $0x63c] ss:$24 sps:$4 sm:$0xff]  }
 0x607   :  { %4796 = vmatpush1.bf16.msra.mxu1 %v6009_v13 }
 0x608   :  { %4797 = vmatprep.subr.bf16.mxu1 %v6014_v14  ;;  %4691 = vmatpush1.bf16.msra.mxu0 %v6099_v0  ;;  %v6111_v14 = vld [vmem:[#allocation10 + $0x600] ss:$24 sps:$4 sm:$0xff]  }
 0x609   :  { %4692 = vmatprep.subr.bf16.mxu0 %v6107_v15  ;;  %v6119_v15 = vld [vmem:[#allocation10 + $0x634] ss:$24 sps:$4 sm:$0xff]  }
 0x60b   :  { %4798 = vmatpush1.bf16.msra.mxu1 %v6012_v16  ;;  %v6951_v16 = vpack.c.bf16 %v2274_v11, %v2274_v11  ;;  %v639_v11 = vsub.s32 4, %v6855_v8 }
 0x60c   :  { %4799 = vmatprep.subr.bf16.mxu1 %v6020_v50  ;;  %4693 = vmatpush1.bf16.msra.mxu0 %v6105_v19  ;;  %v6122_v50 = vld [vmem:[#allocation10 + $0x48c] ss:$24 sps:$4 sm:$0xff]   ;;  %v6117_v19 = vld [vmem:[#allocation10 + $0x630] ss:$24 sps:$4 sm:$0xff]  }
 0x60d   :  { %4703 = vmatprep.subr.bf16.mxu0 %v6113_v20  ;;  %v6120_v20 = vld [vmem:[#allocation10 + $0x488] ss:$24 sps:$4 sm:$0xff]  }
 0x60f   :  { %4800 = vmatpush1.bf16.msra.mxu1 %v6018_v21  ;;  %v6125_v21 = vld [vmem:[#allocation10 + $0x664] ss:$24 sps:$4 sm:$0xff]  }
 0x610   :  { %4801 = vmatprep.subr.bf16.mxu1 %v6026_v1  ;;  %v6128_v1 = vld [vmem:[#allocation10 + $0x4bc] ss:$24 sps:$4 sm:$0xff]  }
 0x613   :  { %4802 = vmatpush1.bf16.msra.mxu1 %v6024_v22  ;;  %v6123_v22 = vld [vmem:[#allocation10 + $0x660] ss:$24 sps:$4 sm:$0xff]  }
 0x614   :  { %4803 = vmatprep.subr.bf16.mxu1 %v6032_v23  ;;  %v6126_v23 = vld [vmem:[#allocation10 + $0x4b8] ss:$24 sps:$4 sm:$0xff]  }
 0x617   :  { %4804 = vmatpush1.bf16.msra.mxu1 %v6030_v51  ;;  %v6131_v51 = vld [vmem:[#allocation10 + $0x694] ss:$24 sps:$4 sm:$0xff]  }
 0x618   :  { %4805 = vmatprep.subr.bf16.mxu1 %v6038_v24  ;;  %v6134_v24 = vld [vmem:[#allocation10 + $0x4ec] ss:$24 sps:$4 sm:$0xff]  }
 0x61b   :  { %4806 = vmatpush1.bf16.msra.mxu1 %v6036_v25  ;;  %v6129_v25 = vld [vmem:[#allocation10 + $0x690] ss:$24 sps:$4 sm:$0xff]  }
 0x61c   :  { %4807 = vmatprep.subr.bf16.mxu1 %v6044_v26  ;;  %v6132_v26 = vld [vmem:[#allocation10 + $0x4e8] ss:$24 sps:$4 sm:$0xff]  }
 0x61f   :  { %4808 = vmatpush1.bf16.msra.mxu1 %v6042_v29  ;;  %v6137_v29 = vld [vmem:[#allocation10 + $0x6c4] ss:$24 sps:$4 sm:$0xff]  }
 0x620   :  { %4809 = vmatprep.subr.bf16.mxu1 %v6050_v30  ;;  %v6140_v30 = vld [vmem:[#allocation10 + $0x51c] ss:$24 sps:$4 sm:$0xff]  }
 0x623   :  { %4810 = vmatpush1.bf16.msra.mxu1 %v6048_v31  ;;  %v6135_v31 = vld [vmem:[#allocation10 + $0x6c0] ss:$24 sps:$4 sm:$0xff]  }
 0x624   :  { %4811 = vmatprep.subr.bf16.mxu1 %v6056_v32  ;;  %v6138_v32 = vld [vmem:[#allocation10 + $0x518] ss:$24 sps:$4 sm:$0xff]  }
 0x627   :  { %4812 = vmatpush1.bf16.msra.mxu1 %v6054_v34  ;;  %v6143_v34 = vld [vmem:[#allocation10 + $0x6f4] ss:$24 sps:$4 sm:$0xff]  }
 0x628   :  { %4813 = vmatprep.subr.bf16.mxu1 %v6062_v35  ;;  %v6146_v35 = vld [vmem:[#allocation10 + $0x54c] ss:$24 sps:$4 sm:$0xff]  }
 0x62b   :  { %4814 = vmatpush1.bf16.msra.mxu1 %v6060_v38  ;;  %v6141_v38 = vld [vmem:[#allocation10 + $0x6f0] ss:$24 sps:$4 sm:$0xff]  }
 0x62c   :  { %4815 = vmatprep.subr.bf16.mxu1 %v6068_v39  ;;  %v6144_v39 = vld [vmem:[#allocation10 + $0x548] ss:$24 sps:$4 sm:$0xff]  }
 0x62f   :  { %4816 = vmatpush1.bf16.msra.mxu1 %v6066_v40  ;;  %v6149_v40 = vld [vmem:[#allocation10 + $0x724] ss:$24 sps:$4 sm:$0xff]  }
 0x630   :  { %4826 = vmatprep.subr.bf16.mxu1 %v6074_v41  ;;  %v6152_v41 = vld [vmem:[#allocation10 + $0x57c] ss:$24 sps:$4 sm:$0xff]  }
 0x632   :  { %4818 = vmatmul.mubr.bf16.vlgmr.msra.gmra.mrb[16].mxu1 %v6931_v60 }
 0x633   :  { %4827 = vmatpush1.bf16.msra.mxu1 %v6072_v43  ;;  %v6147_v43 = vld [vmem:[#allocation10 + $0x720] ss:$24 sps:$4 sm:$0xff]  }
 0x634   :  { %4828 = vmatprep.subr.bf16.mxu1 %v6080_v44  ;;  %v6150_v44 = vld [vmem:[#allocation10 + $0x578] ss:$24 sps:$4 sm:$0xff]  }
 0x637   :  { %4829 = vmatpush1.bf16.msra.mxu1 %v6078_v45  ;;  %v6155_v45 = vld [vmem:[#allocation10 + $0x754] ss:$24 sps:$4 sm:$0xff]  }
 0x638   :  { %4830 = vmatprep.subr.bf16.mxu1 %v6086_v46  ;;  %v6158_v46 = vld [vmem:[#allocation10 + $0x5ac] ss:$24 sps:$4 sm:$0xff]  }
 0x63b   :  { %4831 = vmatpush1.bf16.msra.mxu1 %v6084_v47  ;;  %v6153_v47 = vld [vmem:[#allocation10 + $0x750] ss:$24 sps:$4 sm:$0xff]  }
 0x63c   :  { %4832 = vmatprep.subr.bf16.mxu1 %v6092_v48  ;;  %v6156_v48 = vld [vmem:[#allocation10 + $0x5a8] ss:$24 sps:$4 sm:$0xff]  }
 0x63f   :  { %4833 = vmatpush1.bf16.msra.mxu1 %v6090_v49  ;;  %v6161_v49 = vld [vmem:[#allocation10 + $0x784] ss:$24 sps:$4 sm:$0xff]  }
 0x640   :  { %4834 = vmatprep.subr.bf16.mxu1 %v6098_v52  ;;  %v6164_v52 = vld [vmem:[#allocation10 + $0x5dc] ss:$24 sps:$4 sm:$0xff]  }
 0x643   :  { %4835 = vmatpush1.bf16.msra.mxu1 %v6096_v54  ;;  %v6159_v54 = vld [vmem:[#allocation10 + $0x780] ss:$24 sps:$4 sm:$0xff]  }
 0x644   :  { %4836 = vmatprep.subr.bf16.mxu1 %v6104_v55  ;;  %v6162_v55 = vld [vmem:[#allocation10 + $0x5d8] ss:$24 sps:$4 sm:$0xff]  }
 0x645   :  { %v2098_v2 = vpop.f32.mrb[8].mxu1 }
 0x646   :  { %v5858_v3 = vadd.f32 %v2098_v2, %v632_v59  ;;  %v2100_v4 = vpop.f32.mrb[9].mxu1  ;;  %v6170_v59 = vld [vmem:[#allocation10 + $0x60c] ss:$24 sps:$4 sm:$0xff]   ;;  %v6171_v2 = vld [vmem:[#allocation10 + $0x7e0] ss:$24 sps:$4 sm:$0xff]  }
 0x647   :  { %v5859_v33 = vadd.f32 %v2100_v4, %v636_v27  ;;  %v2102_v5 = vpop.f32.mrb[10].mxu1  ;;  %4837 = vmatpush1.bf16.msra.mxu1 %v6102_v61  ;;  %v6165_v27 = vld [vmem:[#allocation10 + $0x7b0] ss:$24 sps:$4 sm:$0xff]   ;;  %v6179_v4 = vld [vmem:[#allocation10 + $0x814] ss:$24 sps:$4 sm:$0xff]  }
 0x648   :  { %v2271_v7 = vmax.f32 %v5858_v3, 0.0  ;;  %v2103_v9 = vpop.f32.mrb[11].mxu1  ;;  %4838 = vmatprep.subr.bf16.mxu1 %v6110_v62  ;;  %v6168_v61 = vld [vmem:[#allocation10 + $0x608] ss:$24 sps:$4 sm:$0xff]   ;;  %v6173_v62 = vld [vmem:[#allocation10 + $0x7e4] ss:$24 sps:$4 sm:$0xff]  }
 0x649   :  { %v2272_v12 = vmax.f32 %v5859_v33, 0.0  ;;  %v6174_v3 = vld [vmem:[#allocation10 + $0x638] ss:$24 sps:$4 sm:$0xff]   ;;  %v6182_v33 = vld [vmem:[#allocation10 + $0x66c] ss:$24 sps:$4 sm:$0xff]  }
 0x64a   :  { %v6949_v0 = vpack.c.bf16 %v2271_v7, %v2271_v7  ;;  %v6177_v5 = vld [vmem:[#allocation10 + $0x810] ss:$24 sps:$4 sm:$0xff]   ;;  %v6185_v7 = vld [vmem:[#allocation10 + $0x844] ss:$24 sps:$4 sm:$0xff]  }
 0x64b   :  { %v6947_v13 = vpack.c.bf16 %v2272_v12, %v2272_v12  ;;  %4839 = vmatpush1.bf16.msra.mxu1 %v6108_v6  ;;  %v6180_v6 = vld [vmem:[#allocation10 + $0x668] ss:$24 sps:$4 sm:$0xff]   ;;  %v6188_v9 = vld [vmem:[#allocation10 + $0x69c] ss:$24 sps:$4 sm:$0xff]   ;;  %v6186_v12 = vld [vmem:[#allocation10 + $0x698] ss:$24 sps:$4 sm:$0xff]  }
 0x64c   :  { %4840 = vmatprep.subr.bf16.mxu1 %v6116_v10  ;;  %v6183_v10 = vld [vmem:[#allocation10 + $0x840] ss:$24 sps:$4 sm:$0xff]  }
 0x64d   :  { %4694 = vmatprep.mubr.bf16.mxu0 %v6947_v13  ;;  %4858 = vmatprep.mubr.bf16.mxu1 %v6947_v13 }
 0x64e   :  { %4695 = vmatmul.mubr.bf16.vlgmr.msra.gmra.mrb[8].mxu0 %v6949_v0 }
 0x64f   :  { %4704 = vmatpush1.bf16.msra.mxu0 %v6111_v14  ;;  %4735 = vmatprep.mubr.bf16.mxu0 %v6951_v16  ;;  %v6191_v14 = vld [vmem:[#allocation10 + $0x874] ss:$24 sps:$4 sm:$0xff]  }
 0x650   :  { %4841 = vmatpush1.bf16.msra.mxu1 %v6114_v42  ;;  %4705 = vmatprep.subr.bf16.mxu0 %v6119_v15  ;;  %v6194_v42 = vld [vmem:[#allocation10 + $0x6cc] ss:$24 sps:$4 sm:$0xff]   ;;  %v6189_v15 = vld [vmem:[#allocation10 + $0x870] ss:$24 sps:$4 sm:$0xff]  }
 0x651   :  { %4842 = vmatprep.subr.bf16.mxu1 %v6122_v50  ;;  %v640_v50 = vrot.slane %v6919_v58, %v639_v11  ;;  %v6204_v58 = vld [vmem:[#allocation10 + $0x728] ss:$24 sps:$4 sm:$0xff]  }
 0x653   :  { %4706 = vmatpush1.bf16.msra.mxu0 %v6117_v19  ;;  %v6192_v19 = vld [vmem:[#allocation10 + $0x6c8] ss:$24 sps:$4 sm:$0xff]  }
 0x654   :  { %4843 = vmatpush1.bf16.msra.mxu1 %v6120_v20  ;;  %4707 = vmatprep.subr.bf16.mxu0 %v6125_v21  ;;  %v6197_v20 = vld [vmem:[#allocation10 + $0x8a4] ss:$24 sps:$4 sm:$0xff]  }
 0x655   :  { %4844 = vmatprep.subr.bf16.mxu1 %v6128_v1  ;;  %v6200_v21 = vld [vmem:[#allocation10 + $0x6fc] ss:$24 sps:$4 sm:$0xff]   ;;  %v6195_v1 = vld [vmem:[#allocation10 + $0x8a0] ss:$24 sps:$4 sm:$0xff]  }
 0x657   :  { %4708 = vmatpush1.bf16.msra.mxu0 %v6123_v22  ;;  %v5860_v22 = vadd.f32 %v6925_v37, %v640_v50  ;;  %v6210_v37 = vld [vmem:[#allocation10 + $0x758] ss:$24 sps:$4 sm:$0xff]   ;;  %v6264_v50 = vld [vmem:[#allocation10 + $0x908] ss:$24 sps:$4 sm:$0xff]  }
 0x658   :  { %4845 = vmatpush1.bf16.msra.mxu1 %v6126_v23  ;;  %4709 = vmatprep.subr.bf16.mxu0 %v6131_v51  ;;  %v6198_v23 = vld [vmem:[#allocation10 + $0x6f8] ss:$24 sps:$4 sm:$0xff]   ;;  %v6203_v51 = vld [vmem:[#allocation10 + $0x8d4] ss:$24 sps:$4 sm:$0xff]  }
 0x659   :  { %4846 = vmatprep.subr.bf16.mxu1 %v6134_v24  ;;  %v6206_v24 = vld [vmem:[#allocation10 + $0x72c] ss:$24 sps:$4 sm:$0xff]  }
 0x65b   :  { %4710 = vmatpush1.bf16.msra.mxu0 %v6129_v25  ;;  %v6201_v25 = vld [vmem:[#allocation10 + $0x8d0] ss:$24 sps:$4 sm:$0xff]  }
 0x65c   :  { %4847 = vmatpush1.bf16.msra.mxu1 %v6132_v26  ;;  %4711 = vmatprep.subr.bf16.mxu0 %v6137_v29  ;;  %v2273_v26 = vmax.f32 %v5860_v22, 0.0  ;;  %v6209_v29 = vld [vmem:[#allocation10 + $0x904] ss:$24 sps:$4 sm:$0xff]   ;;  %v6275_v22 = vld [vmem:[#allocation10 + $0xb14] ss:$24 sps:$4 sm:$0xff]  }
 0x65d   :  { %4848 = vmatprep.subr.bf16.mxu1 %v6140_v30  ;;  %v6212_v30 = vld [vmem:[#allocation10 + $0x75c] ss:$24 sps:$4 sm:$0xff]  }
 0x65f   :  { %4712 = vmatpush1.bf16.msra.mxu0 %v6135_v31  ;;  %v6207_v31 = vld [vmem:[#allocation10 + $0x900] ss:$24 sps:$4 sm:$0xff]  }
 0x660   :  { %4849 = vmatpush1.bf16.msra.mxu1 %v6138_v32  ;;  %4713 = vmatprep.subr.bf16.mxu0 %v6143_v34  ;;  %v6964_v32 = vpack.c.bf16 %v2273_v26, %v2273_v26  ;;  %v6215_v34 = vld [vmem:[#allocation10 + $0x934] ss:$24 sps:$4 sm:$0xff]  }
 0x661   :  { %4850 = vmatprep.subr.bf16.mxu1 %v6146_v35  ;;  %v6218_v35 = vld [vmem:[#allocation10 + $0x78c] ss:$24 sps:$4 sm:$0xff]   ;;  %v6284_v26 = vld [vmem:[#allocation10 + $0x99c] ss:$24 sps:$4 sm:$0xff]  }
 0x663   :  { %4714 = vmatpush1.bf16.msra.mxu0 %v6141_v38  ;;  %v6213_v38 = vld [vmem:[#allocation10 + $0x930] ss:$24 sps:$4 sm:$0xff]  }
 0x664   :  { %4851 = vmatpush1.bf16.msra.mxu1 %v6144_v39  ;;  %4715 = vmatprep.subr.bf16.mxu0 %v6149_v40  ;;  %v6216_v39 = vld [vmem:[#allocation10 + $0x788] ss:$24 sps:$4 sm:$0xff]   ;;  %v6221_v40 = vld [vmem:[#allocation10 + $0x964] ss:$24 sps:$4 sm:$0xff]  }
 0x665   :  { %4852 = vmatprep.subr.bf16.mxu1 %v6152_v41  ;;  %v6224_v41 = vld [vmem:[#allocation10 + $0x7bc] ss:$24 sps:$4 sm:$0xff]  }
 0x667   :  { %4716 = vmatpush1.bf16.msra.mxu0 %v6147_v43  ;;  %v6219_v43 = vld [vmem:[#allocation10 + $0x960] ss:$24 sps:$4 sm:$0xff]  }
 0x668   :  { %4853 = vmatpush1.bf16.msra.mxu1 %v6150_v44  ;;  %4717 = vmatprep.subr.bf16.mxu0 %v6155_v45  ;;  %v6222_v44 = vld [vmem:[#allocation10 + $0x7b8] ss:$24 sps:$4 sm:$0xff]   ;;  %v6227_v45 = vld [vmem:[#allocation10 + $0x994] ss:$24 sps:$4 sm:$0xff]  }
 0x669   :  { %4854 = vmatprep.subr.bf16.mxu1 %v6158_v46  ;;  %v6230_v46 = vld [vmem:[#allocation10 + $0x7ec] ss:$24 sps:$4 sm:$0xff]  }
 0x66b   :  { %4718 = vmatpush1.bf16.msra.mxu0 %v6153_v47  ;;  %v6225_v47 = vld [vmem:[#allocation10 + $0x990] ss:$24 sps:$4 sm:$0xff]  }
 0x66c   :  { %4855 = vmatpush1.bf16.msra.mxu1 %v6156_v48  ;;  %4719 = vmatprep.subr.bf16.mxu0 %v6161_v49  ;;  %v6228_v48 = vld [vmem:[#allocation10 + $0x7e8] ss:$24 sps:$4 sm:$0xff]   ;;  %v6233_v49 = vld [vmem:[#allocation10 + $0x9c4] ss:$24 sps:$4 sm:$0xff]  }
 0x66d   :  { %4856 = vmatprep.subr.bf16.mxu1 %v6164_v52  ;;  %v6236_v52 = vld [vmem:[#allocation10 + $0x81c] ss:$24 sps:$4 sm:$0xff]  }
 0x66f   :  { %4720 = vmatpush1.bf16.msra.mxu0 %v6159_v54  ;;  %v6231_v54 = vld [vmem:[#allocation10 + $0x9c0] ss:$24 sps:$4 sm:$0xff]  }
 0x670   :  { %4857 = vmatpush1.bf16.msra.mxu1 %v6162_v55  ;;  %4721 = vmatprep.subr.bf16.mxu0 %v6167_v57  ;;  %v6234_v55 = vld [vmem:[#allocation10 + $0x818] ss:$24 sps:$4 sm:$0xff]   ;;  %v6239_v57 = vld [vmem:[#allocation10 + $0x9f4] ss:$24 sps:$4 sm:$0xff]  }
 0x671   :  { %4867 = vmatprep.subr.bf16.mxu1 %v6170_v59  ;;  %v6242_v59 = vld [vmem:[#allocation10 + $0x84c] ss:$24 sps:$4 sm:$0xff]  }
 0x673   :  { %4722 = vmatpush1.bf16.msra.mxu0 %v6165_v27  ;;  %4859 = vmatmul.mubr.bf16.vlgmr.msra.gmra.mrb[16].mxu1 %v6949_v0  ;;  %v6237_v27 = vld [vmem:[#allocation10 + $0x9f0] ss:$24 sps:$4 sm:$0xff]  }
 0x674   :  { %4868 = vmatpush1.bf16.msra.mxu1 %v6168_v61  ;;  %4899 = vmatprep.mubr.bf16.mxu1 %v6951_v16  ;;  %v6240_v61 = vld [vmem:[#allocation10 + $0x848] ss:$24 sps:$4 sm:$0xff]  }
 0x675   :  { %4723 = vmatprep.subr.bf16.mxu0 %v6173_v62  ;;  %4869 = vmatprep.subr.bf16.mxu1 %v6176_v63  ;;  %v6245_v62 = vld [vmem:[#allocation10 + $0xa24] ss:$24 sps:$4 sm:$0xff]  }
 0x676   :  { %v6248_v63 = vld [vmem:[#allocation10 + $0x87c] ss:$24 sps:$4 sm:$0xff]  }
 0x677   :  { %4724 = vmatpush1.bf16.msra.mxu0 %v6171_v2  ;;  %v6243_v2 = vld [vmem:[#allocation10 + $0xa20] ss:$24 sps:$4 sm:$0xff]  }
 0x678   :  { %4870 = vmatpush1.bf16.msra.mxu1 %v6174_v3  ;;  %4725 = vmatprep.subr.bf16.mxu0 %v6179_v4  ;;  %v6246_v3 = vld [vmem:[#allocation10 + $0x878] ss:$24 sps:$4 sm:$0xff]   ;;  %v6251_v4 = vld [vmem:[#allocation10 + $0xa54] ss:$24 sps:$4 sm:$0xff]  }
 0x679   :  { %4871 = vmatprep.subr.bf16.mxu1 %v6182_v33  ;;  %v6254_v33 = vld [vmem:[#allocation10 + $0x8ac] ss:$24 sps:$4 sm:$0xff]  }
 0x67b   :  { %4726 = vmatpush1.bf16.msra.mxu0 %v6177_v5  ;;  %v6249_v5 = vld [vmem:[#allocation10 + $0xa50] ss:$24 sps:$4 sm:$0xff]  }
 0x67c   :  { %4872 = vmatpush1.bf16.msra.mxu1 %v6180_v6  ;;  %4727 = vmatprep.subr.bf16.mxu0 %v6185_v7  ;;  %v6252_v6 = vld [vmem:[#allocation10 + $0x8a8] ss:$24 sps:$4 sm:$0xff]   ;;  %v6257_v7 = vld [vmem:[#allocation10 + $0xa84] ss:$24 sps:$4 sm:$0xff]  }
 0x67d   :  { %4873 = vmatprep.subr.bf16.mxu1 %v6188_v9  ;;  %v6260_v9 = vld [vmem:[#allocation10 + $0x8dc] ss:$24 sps:$4 sm:$0xff]  }
 0x67f   :  { %4728 = vmatpush1.bf16.msra.mxu0 %v6183_v10  ;;  %v6255_v10 = vld [vmem:[#allocation10 + $0xa80] ss:$24 sps:$4 sm:$0xff]  }
 0x680   :  { %4874 = vmatpush1.bf16.msra.mxu1 %v6186_v12  ;;  %4729 = vmatprep.subr.bf16.mxu0 %v6191_v14  ;;  %v6258_v12 = vld [vmem:[#allocation10 + $0x8d8] ss:$24 sps:$4 sm:$0xff]   ;;  %v6263_v14 = vld [vmem:[#allocation10 + $0xab4] ss:$24 sps:$4 sm:$0xff]  }
 0x681   :  { %4875 = vmatprep.subr.bf16.mxu1 %v6194_v42  ;;  %v6266_v42 = vld [vmem:[#allocation10 + $0x90c] ss:$24 sps:$4 sm:$0xff]  }
 0x683   :  { %4730 = vmatpush1.bf16.msra.mxu0 %v6189_v15  ;;  %v6261_v15 = vld [vmem:[#allocation10 + $0xab0] ss:$24 sps:$4 sm:$0xff]  }
 0x684   :  { %4876 = vmatpush1.bf16.msra.mxu1 %v6192_v19  ;;  %4731 = vmatprep.subr.bf16.mxu0 %v6197_v20  ;;  %v6269_v19 = vld [vmem:[#allocation10 + $0xae4] ss:$24 sps:$4 sm:$0xff]  }
 0x685   :  { %4877 = vmatprep.subr.bf16.mxu1 %v6200_v21  ;;  %v6272_v20 = vld [vmem:[#allocation10 + $0x93c] ss:$24 sps:$4 sm:$0xff]   ;;  %v6267_v21 = vld [vmem:[#allocation10 + $0xae0] ss:$24 sps:$4 sm:$0xff]  }
 0x687   :  { %4732 = vmatpush1.bf16.msra.mxu0 %v6195_v1  ;;  %v6270_v1 = vld [vmem:[#allocation10 + $0x938] ss:$24 sps:$4 sm:$0xff]  }
 0x688   :  { %4878 = vmatpush1.bf16.msra.mxu1 %v6198_v23  ;;  %4733 = vmatprep.subr.bf16.mxu0 %v6203_v51  ;;  %v6278_v23 = vld [vmem:[#allocation10 + $0x96c] ss:$24 sps:$4 sm:$0xff]   ;;  %v6273_v51 = vld [vmem:[#allocation10 + $0xb10] ss:$24 sps:$4 sm:$0xff]  }
 0x689   :  { %4879 = vmatprep.subr.bf16.mxu1 %v6206_v24  ;;  %v6276_v24 = vld [vmem:[#allocation10 + $0x968] ss:$24 sps:$4 sm:$0xff]  }
 0x68b   :  { %4734 = vmatpush1.bf16.msra.mxu0 %v6201_v25  ;;  %v6281_v25 = vld [vmem:[#allocation10 + $0xb44] ss:$24 sps:$4 sm:$0xff]  }
 0x68c   :  { %4880 = vmatpush1.bf16.msra.mxu1 %v6204_v58  ;;  %4744 = vmatprep.subr.bf16.mxu0 %v6209_v29  ;;  %v6279_v58 = vld [vmem:[#allocation10 + $0xb40] ss:$24 sps:$4 sm:$0xff]  }
 0x68d   :  { %4881 = vmatprep.subr.bf16.mxu1 %v6212_v30  ;;  %v6282_v29 = vld [vmem:[#allocation10 + $0x998] ss:$24 sps:$4 sm:$0xff]   ;;  %v6287_v30 = vld [vmem:[#allocation10 + $0xb74] ss:$24 sps:$4 sm:$0xff]  }
 0x68e   :  { %4736 = vmatmul.mubr.bf16.vlgmr.msra.gmra.mrb[8].mxu0 %v6964_v32 }
 0x68f   :  { %4745 = vmatpush1.bf16.msra.mxu0 %v6207_v31  ;;  %v6290_v31 = vld [vmem:[#allocation10 + $0x9cc] ss:$24 sps:$4 sm:$0xff]  }
 0x690   :  { %4882 = vmatpush1.bf16.msra.mxu1 %v6210_v37  ;;  %4746 = vmatprep.subr.bf16.mxu0 %v6215_v34  ;;  %v647_v37 = vsub.s32 6, %v6855_v8  ;;  %v6285_v34 = vld [vmem:[#allocation10 + $0xb70] ss:$24 sps:$4 sm:$0xff]  }
 0x691   :  { %4883 = vmatprep.subr.bf16.mxu1 %v6218_v35  ;;  %v651_v35 = vsub.s32 7, %v6855_v8 }
 0x693   :  { %4747 = vmatpush1.bf16.msra.mxu0 %v6213_v38  ;;  %v6288_v38 = vld [vmem:[#allocation10 + $0x9c8] ss:$24 sps:$4 sm:$0xff]  }
 0x694   :  { %4884 = vmatpush1.bf16.msra.mxu1 %v6216_v39  ;;  %4748 = vmatprep.subr.bf16.mxu0 %v6221_v40  ;;  %v6293_v39 = vld [vmem:[#allocation10 + $0xba4] ss:$24 sps:$4 sm:$0xff]  }
 0x695   :  { %4885 = vmatprep.subr.bf16.mxu1 %v6224_v41  ;;  %v6296_v40 = vld [vmem:[#allocation10 + $0x9fc] ss:$24 sps:$4 sm:$0xff]  }
 0x696   :  { %v6546_v41 = vld [vmem:[#allocation8] sm:$0xff] }
 0x697   :  { %4749 = vmatpush1.bf16.msra.mxu0 %v6219_v43  ;;  %v648_v43 = vrot.slane %v6546_v41, %v647_v37  ;;  %v6342_v37 = vld [vmem:[#allocation10 + $0xb78] ss:$24 sps:$4 sm:$0xff]  }
 0x698   :  { %4886 = vmatpush1.bf16.msra.mxu1 %v6222_v44  ;;  %4750 = vmatprep.subr.bf16.mxu0 %v6227_v45  ;;  %v6291_v44 = vld [vmem:[#allocation10 + $0xba0] ss:$24 sps:$4 sm:$0xff]   ;;  %v652_v45 = vrot.slane %v6546_v41, %v651_v35  ;;  %v6350_v35 = vld [vmem:[#allocation10 + $0xbac] ss:$24 sps:$4 sm:$0xff]   ;;  %v6356_v41 = vld [vmem:[#allocation10 + $0xbdc] ss:$24 sps:$4 sm:$0xff]  }
 0x699   :  { %4887 = vmatprep.subr.bf16.mxu1 %v6230_v46  ;;  %v6294_v46 = vld [vmem:[#allocation10 + $0x9f8] ss:$24 sps:$4 sm:$0xff]  }
 0x69b   :  { %4751 = vmatpush1.bf16.msra.mxu0 %v6225_v47  ;;  %v6299_v47 = vld [vmem:[#allocation10 + $0xbd4] ss:$24 sps:$4 sm:$0xff]  }
 0x69c   :  { %4888 = vmatpush1.bf16.msra.mxu1 %v6228_v48  ;;  %4752 = vmatprep.subr.bf16.mxu0 %v6233_v49  ;;  %v6302_v49 = vld [vmem:[#allocation10 + $0xa2c] ss:$24 sps:$4 sm:$0xff]  }
 0x69d   :  { %4889 = vmatprep.subr.bf16.mxu1 %v6236_v52 }
 0x69f   :  { %4753 = vmatpush1.bf16.msra.mxu0 %v6231_v54 }
 0x6a0   :  { %4890 = vmatpush1.bf16.msra.mxu1 %v6234_v55  ;;  %4754 = vmatprep.subr.bf16.mxu0 %v6239_v57 }
 0x6a1   :  { %4891 = vmatprep.subr.bf16.mxu1 %v6242_v59  ;;  %v6297_v59 = vld [vmem:[#allocation10 + $0xbd0] ss:$24 sps:$4 sm:$0xff]  }
 0x6a3   :  { %4755 = vmatpush1.bf16.msra.mxu0 %v6237_v27 }
 0x6a4   :  { %4892 = vmatpush1.bf16.msra.mxu1 %v6240_v61  ;;  %4756 = vmatprep.subr.bf16.mxu0 %v6245_v62  ;;  %v6300_v62 = vld [vmem:[#allocation10 + $0xa28] ss:$24 sps:$4 sm:$0xff]  }
 0x6a5   :  { %4893 = vmatprep.subr.bf16.mxu1 %v6248_v63  ;;  %v6305_v63 = vld [vmem:[#allocation10 + $0x14] ss:$24 sps:$4 sm:$0xff]  }
 0x6a7   :  { %4757 = vmatpush1.bf16.msra.mxu0 %v6243_v2 }
 0x6a8   :  { %4894 = vmatpush1.bf16.msra.mxu1 %v6246_v3  ;;  %4758 = vmatprep.subr.bf16.mxu0 %v6251_v4  ;;  %v6308_v3 = vld [vmem:[#allocation10 + $0xa5c] ss:$24 sps:$4 sm:$0xff]  }
 0x6a9   :  { %4895 = vmatprep.subr.bf16.mxu1 %v6254_v33  ;;  %v6303_v33 = vld [vmem:[#allocation10 + $0x10] ss:$24 sps:$4 sm:$0xff]  }
 0x6ab   :  { %4759 = vmatpush1.bf16.msra.mxu0 %v6249_v5 }
 0x6ac   :  { %4896 = vmatpush1.bf16.msra.mxu1 %v6252_v6  ;;  %4760 = vmatprep.subr.bf16.mxu0 %v6257_v7  ;;  %v6306_v6 = vld [vmem:[#allocation10 + $0xa58] ss:$24 sps:$4 sm:$0xff]   ;;  %v6311_v7 = vld [vmem:[#allocation10 + $0x44] ss:$24 sps:$4 sm:$0xff]  }
 0x6ad   :  { %4897 = vmatprep.subr.bf16.mxu1 %v6260_v9  ;;  %v6314_v9 = vld [vmem:[#allocation10 + $0xa8c] ss:$24 sps:$4 sm:$0xff]  }
 0x6af   :  { %4761 = vmatpush1.bf16.msra.mxu0 %v6255_v10  ;;  %v6309_v10 = vld [vmem:[#allocation10 + $0x40] ss:$24 sps:$4 sm:$0xff]  }
 0x6b0   :  { %4898 = vmatpush1.bf16.msra.mxu1 %v6258_v12  ;;  %4762 = vmatprep.subr.bf16.mxu0 %v6263_v14  ;;  %v6312_v12 = vld [vmem:[#allocation10 + $0xa88] ss:$24 sps:$4 sm:$0xff]   ;;  %v6317_v14 = vld [vmem:[#allocation10 + $0x74] ss:$24 sps:$4 sm:$0xff]  }
 0x6b1   :  { %4908 = vmatprep.subr.bf16.mxu1 %v6266_v42  ;;  %v6320_v42 = vld [vmem:[#allocation10 + $0xabc] ss:$24 sps:$4 sm:$0xff]  }
 0x6b3   :  { %4763 = vmatpush1.bf16.msra.mxu0 %v6261_v15  ;;  %4900 = vmatmul.mubr.bf16.vlgmr.msra.gmra.mrb[16].mxu1 %v6964_v32  ;;  %v6315_v15 = vld [vmem:[#allocation10 + $0x70] ss:$24 sps:$4 sm:$0xff]  }
 0x6b4   :  { %4909 = vmatpush1.bf16.msra.mxu1 %v6264_v50  ;;  %4764 = vmatprep.subr.bf16.mxu0 %v6269_v19  ;;  %v6318_v50 = vld [vmem:[#allocation10 + $0xab8] ss:$24 sps:$4 sm:$0xff]   ;;  %v6323_v19 = vld [vmem:[#allocation10 + $0xa4] ss:$24 sps:$4 sm:$0xff]  }
 0x6b5   :  { %4910 = vmatprep.subr.bf16.mxu1 %v6272_v20  ;;  %v6326_v20 = vld [vmem:[#allocation10 + $0xaec] ss:$24 sps:$4 sm:$0xff]  }
 0x6b7   :  { %4765 = vmatpush1.bf16.msra.mxu0 %v6267_v21  ;;  %v6321_v21 = vld [vmem:[#allocation10 + $0xa0] ss:$24 sps:$4 sm:$0xff]  }
 0x6b8   :  { %4911 = vmatpush1.bf16.msra.mxu1 %v6270_v1  ;;  %4766 = vmatprep.subr.bf16.mxu0 %v6275_v22  ;;  %v6329_v1 = vld [vmem:[#allocation10 + $0xd4] ss:$24 sps:$4 sm:$0xff]  }
 0x6b9   :  { %4912 = vmatprep.subr.bf16.mxu1 %v6278_v23  ;;  %v6332_v22 = vld [vmem:[#allocation10 + $0xb1c] ss:$24 sps:$4 sm:$0xff]   ;;  %v6327_v23 = vld [vmem:[#allocation10 + $0xd0] ss:$24 sps:$4 sm:$0xff]  }
 0x6bb   :  { %4767 = vmatpush1.bf16.msra.mxu0 %v6273_v51  ;;  %v6330_v51 = vld [vmem:[#allocation10 + $0xb18] ss:$24 sps:$4 sm:$0xff]  }
 0x6bc   :  { %4913 = vmatpush1.bf16.msra.mxu1 %v6276_v24  ;;  %4768 = vmatprep.subr.bf16.mxu0 %v6281_v25  ;;  %v6335_v24 = vld [vmem:[#allocation10 + $0x104] ss:$24 sps:$4 sm:$0xff]  }
 0x6bd   :  { %4914 = vmatprep.subr.bf16.mxu1 %v6284_v26  ;;  %v6338_v25 = vld [vmem:[#allocation10 + $0xb4c] ss:$24 sps:$4 sm:$0xff]   ;;  %v6333_v26 = vld [vmem:[#allocation10 + $0x100] ss:$24 sps:$4 sm:$0xff]  }
 0x6bf   :  { %4769 = vmatpush1.bf16.msra.mxu0 %v6279_v58  ;;  %v6336_v58 = vld [vmem:[#allocation10 + $0xb48] ss:$24 sps:$4 sm:$0xff]  }
 0x6c0   :  { %4915 = vmatpush1.bf16.msra.mxu1 %v6282_v29  ;;  %4770 = vmatprep.subr.bf16.mxu0 %v6287_v30  ;;  %v6341_v29 = vld [vmem:[#allocation10 + $0x134] ss:$24 sps:$4 sm:$0xff]  }
 0x6c1   :  { %4916 = vmatprep.subr.bf16.mxu1 %v6290_v31  ;;  %v6344_v30 = vld [vmem:[#allocation10 + $0xb7c] ss:$24 sps:$4 sm:$0xff]   ;;  %v6339_v31 = vld [vmem:[#allocation10 + $0x130] ss:$24 sps:$4 sm:$0xff]  }
 0x6c3   :  { %4771 = vmatpush1.bf16.msra.mxu0 %v6285_v34  ;;  %v6347_v34 = vld [vmem:[#allocation10 + $0x164] ss:$24 sps:$4 sm:$0xff]  }
 0x6c4   :  { %4917 = vmatpush1.bf16.msra.mxu1 %v6288_v38  ;;  %4772 = vmatprep.subr.bf16.mxu0 %v6293_v39  ;;  %v6345_v38 = vld [vmem:[#allocation10 + $0x160] ss:$24 sps:$4 sm:$0xff]  }
 0x6c5   :  { %v2262_v48 = vpop.f32.mrb[12].mxu1  ;;  %4918 = vmatprep.subr.bf16.mxu1 %v6296_v40  ;;  %v6348_v39 = vld [vmem:[#allocation10 + $0xba8] ss:$24 sps:$4 sm:$0xff]   ;;  %v6353_v40 = vld [vmem:[#allocation10 + $0x194] ss:$24 sps:$4 sm:$0xff]  }
 0x6c6   :  { %v5862_v52 = vadd.f32 %v2262_v48, %v648_v43  ;;  %v2264_v54 = vpop.f32.mrb[13].mxu1  ;;  %v6351_v43 = vld [vmem:[#allocation10 + $0x190] ss:$24 sps:$4 sm:$0xff]  }
 0x6c7   :  { %v5863_v55 = vadd.f32 %v2264_v54, %v652_v45  ;;  %4773 = vmatpush1.bf16.msra.mxu0 %v6291_v44  ;;  %v2266_v57 = vpop.f32.mrb[14].mxu1  ;;  %v6354_v44 = vld [vmem:[#allocation10 + $0xbd8] ss:$24 sps:$4 sm:$0xff]   ;;  %v6359_v45 = vld [vmem:[#allocation10 + $0x1c4] ss:$24 sps:$4 sm:$0xff]  }
 0x6c8   :  { %v2275_v27 = vmax.f32 %v5862_v52, 0.0  ;;  %4919 = vmatpush1.bf16.msra.mxu1 %v6294_v46  ;;  %v2267_v61 = vpop.f32.mrb[15].mxu1  ;;  %4774 = vmatprep.subr.bf16.mxu0 %v6299_v47  ;;  %v6357_v46 = vld [vmem:[#allocation10 + $0x1c0] ss:$24 sps:$4 sm:$0xff]   ;;  %v6362_v47 = vld [vmem:[#allocation10 + $0x1f4] ss:$24 sps:$4 sm:$0xff]  }
 0x6c9   :  { %v2276_v2 = vmax.f32 %v5863_v55, 0.0  ;;  %4920 = vmatprep.subr.bf16.mxu1 %v6302_v49  ;;  %v6360_v48 = vld [vmem:[#allocation10 + $0x1f0] ss:$24 sps:$4 sm:$0xff]   ;;  %v6365_v49 = vld [vmem:[#allocation10 + $0x224] ss:$24 sps:$4 sm:$0xff]  }
 0x6ca   :  { %v6972_v5 = vpack.c.bf16 %v2275_v27, %v2275_v27  ;;  %v6363_v52 = vld [vmem:[#allocation10 + $0x220] ss:$24 sps:$4 sm:$0xff]   ;;  %v6368_v54 = vld [vmem:[#allocation10 + $0x254] ss:$24 sps:$4 sm:$0xff]   ;;  %v6366_v55 = vld [vmem:[#allocation10 + $0x250] ss:$24 sps:$4 sm:$0xff]  }
 0x6cb   :  { %v6970_v4 = vpack.c.bf16 %v2276_v2, %v2276_v2  ;;  %4775 = vmatpush1.bf16.msra.mxu0 %v6297_v59  ;;  %v6371_v57 = vld [vmem:[#allocation10 + $0x284] ss:$24 sps:$4 sm:$0xff]   ;;  %v6369_v59 = vld [vmem:[#allocation10 + $0x280] ss:$24 sps:$4 sm:$0xff]   ;;  %v6374_v27 = vld [vmem:[#allocation10 + $0x2b4] ss:$24 sps:$4 sm:$0xff]  }
 0x6cc   :  { %4921 = vmatpush1.bf16.msra.mxu1 %v6300_v62  ;;  %4949 = vmatprep.subr.bf16.mxu0 %v6305_v63  ;;  %v6372_v61 = vld [vmem:[#allocation10 + $0x2b0] ss:$24 sps:$4 sm:$0xff]   ;;  %v6377_v62 = vld [vmem:[#allocation10 + $0x2e4] ss:$24 sps:$4 sm:$0xff]   ;;  %v6375_v63 = vld [vmem:[#allocation10 + $0x2e0] ss:$24 sps:$4 sm:$0xff]  }
 0x6cd   :  { %4776 = vmatprep.mubr.bf16.mxu0 %v6970_v4  ;;  %4940 = vmatprep.mubr.bf16.mxu1 %v6970_v4  ;;  %v6380_v2 = vld [vmem:[#allocation10 + $0x314] ss:$24 sps:$4 sm:$0xff]  }
 0x6ce   :  { %4777 = vmatmul.mubr.bf16.vlgmr.msra.gmra.mrb[8].mxu0 %v6972_v5  ;;  %4922 = vmatprep.subr.bf16.mxu1 %v6308_v3  ;;  %v6378_v3 = vld [vmem:[#allocation10 + $0x310] ss:$24 sps:$4 sm:$0xff]  }
 0x6cf   :  { %4950 = vmatpush1.bf16.msra.mxu0 %v6303_v33  ;;  %4981 = vmatprep.mubr.bf16.mxu0 %v6929_v56  ;;  %v6324_v56 = vld [vmem:[#allocation10 + $0xae8] ss:$24 sps:$4 sm:$0xff]   ;;  %v6383_v33 = vld [vmem:[#allocation10 + $0x344] ss:$24 sps:$4 sm:$0xff]  }
 0x6d0   :  { %4923 = vmatpush1.bf16.msra.mxu1 %v6306_v6  ;;  %4951 = vmatprep.subr.bf16.mxu0 %v6311_v7  ;;  %v6381_v6 = vld [vmem:[#allocation10 + $0x340] ss:$24 sps:$4 sm:$0xff]   ;;  %v6386_v7 = vld [vmem:[#allocation10 + $0x374] ss:$24 sps:$4 sm:$0xff]  }
 0x6d1   :  { %4924 = vmatprep.subr.bf16.mxu1 %v6314_v9  ;;  %v6384_v9 = vld [vmem:[#allocation10 + $0x370] ss:$24 sps:$4 sm:$0xff]  }
 0x6d3   :  { %4952 = vmatpush1.bf16.msra.mxu0 %v6309_v10  ;;  %v6389_v10 = vld [vmem:[#allocation10 + $0x3a4] ss:$24 sps:$4 sm:$0xff]  }
 0x6d4   :  { %4925 = vmatpush1.bf16.msra.mxu1 %v6312_v12  ;;  %4953 = vmatprep.subr.bf16.mxu0 %v6317_v14  ;;  %v6387_v12 = vld [vmem:[#allocation10 + $0x3a0] ss:$24 sps:$4 sm:$0xff]   ;;  %v6392_v14 = vld [vmem:[#allocation10 + $0x3d4] ss:$24 sps:$4 sm:$0xff]  }
 0x6d5   :  { %4926 = vmatprep.subr.bf16.mxu1 %v6320_v42  ;;  %v6390_v42 = vld [vmem:[#allocation10 + $0x3d0] ss:$24 sps:$4 sm:$0xff]  }
 0x6d7   :  { %4954 = vmatpush1.bf16.msra.mxu0 %v6315_v15  ;;  %v6395_v15 = vld [vmem:[#allocation10 + $0x404] ss:$24 sps:$4 sm:$0xff]  }
 0x6d8   :  { %4927 = vmatpush1.bf16.msra.mxu1 %v6318_v50  ;;  %4955 = vmatprep.subr.bf16.mxu0 %v6323_v19  ;;  %v6398_v50 = vld [vmem:[#allocation10 + $0x434] ss:$24 sps:$4 sm:$0xff]   ;;  %v6401_v19 = vld [vmem:[#allocation10 + $0x464] ss:$24 sps:$4 sm:$0xff]  }
 0x6d9   :  { %4928 = vmatprep.subr.bf16.mxu1 %v6326_v20  ;;  %v6399_v20 = vld [vmem:[#allocation10 + $0x460] ss:$24 sps:$4 sm:$0xff]  }
 0x6db   :  { %4956 = vmatpush1.bf16.msra.mxu0 %v6321_v21  ;;  %v6404_v21 = vld [vmem:[#allocation10 + $0x494] ss:$24 sps:$4 sm:$0xff]  }
 0x6dc   :  { %4929 = vmatpush1.bf16.msra.mxu1 %v6324_v56  ;;  %4957 = vmatprep.subr.bf16.mxu0 %v6329_v1  ;;  %v6402_v56 = vld [vmem:[#allocation10 + $0x490] ss:$24 sps:$4 sm:$0xff]   ;;  %v6407_v1 = vld [vmem:[#allocation10 + $0x4c4] ss:$24 sps:$4 sm:$0xff]  }
 0x6dd   :  { %4930 = vmatprep.subr.bf16.mxu1 %v6332_v22  ;;  %v6405_v22 = vld [vmem:[#allocation10 + $0x4c0] ss:$24 sps:$4 sm:$0xff]  }
 0x6df   :  { %4958 = vmatpush1.bf16.msra.mxu0 %v6327_v23  ;;  %v6410_v23 = vld [vmem:[#allocation10 + $0x4f4] ss:$24 sps:$4 sm:$0xff]  }
 0x6e0   :  { %4931 = vmatpush1.bf16.msra.mxu1 %v6330_v51  ;;  %4959 = vmatprep.subr.bf16.mxu0 %v6335_v24  ;;  %v6408_v51 = vld [vmem:[#allocation10 + $0x4f0] ss:$24 sps:$4 sm:$0xff]   ;;  %v6413_v24 = vld [vmem:[#allocation10 + $0x524] ss:$24 sps:$4 sm:$0xff]  }
 0x6e1   :  { %4932 = vmatprep.subr.bf16.mxu1 %v6338_v25  ;;  %v6411_v25 = vld [vmem:[#allocation10 + $0x520] ss:$24 sps:$4 sm:$0xff]  }
 0x6e3   :  { %4960 = vmatpush1.bf16.msra.mxu0 %v6333_v26  ;;  %v6416_v26 = vld [vmem:[#allocation10 + $0x554] ss:$24 sps:$4 sm:$0xff]  }
 0x6e4   :  { %4933 = vmatpush1.bf16.msra.mxu1 %v6336_v58  ;;  %4961 = vmatprep.subr.bf16.mxu0 %v6341_v29  ;;  %v6414_v58 = vld [vmem:[#allocation10 + $0x550] ss:$24 sps:$4 sm:$0xff]   ;;  %v6419_v29 = vld [vmem:[#allocation10 + $0x584] ss:$24 sps:$4 sm:$0xff]  }
 0x6e5   :  { %4934 = vmatprep.subr.bf16.mxu1 %v6344_v30  ;;  %v6417_v30 = vld [vmem:[#allocation10 + $0x580] ss:$24 sps:$4 sm:$0xff]  }
 0x6e7   :  { %4962 = vmatpush1.bf16.msra.mxu0 %v6339_v31  ;;  %v6422_v31 = vld [vmem:[#allocation10 + $0x5b4] ss:$24 sps:$4 sm:$0xff]  }
 0x6e8   :  { %4935 = vmatpush1.bf16.msra.mxu1 %v6342_v37  ;;  %4963 = vmatprep.subr.bf16.mxu0 %v6347_v34  ;;  %v6420_v37 = vld [vmem:[#allocation10 + $0x5b0] ss:$24 sps:$4 sm:$0xff]   ;;  %v6425_v34 = vld [vmem:[#allocation10 + $0x5e4] ss:$24 sps:$4 sm:$0xff]  }
 0x6e9   :  { %4936 = vmatprep.subr.bf16.mxu1 %v6350_v35  ;;  %v6423_v35 = vld [vmem:[#allocation10 + $0x5e0] ss:$24 sps:$4 sm:$0xff]  }
 0x6eb   :  { %4964 = vmatpush1.bf16.msra.mxu0 %v6345_v38  ;;  %v6428_v38 = vld [vmem:[#allocation10 + $0x614] ss:$24 sps:$4 sm:$0xff]  }
 0x6ec   :  { %4937 = vmatpush1.bf16.msra.mxu1 %v6348_v39  ;;  %4965 = vmatprep.subr.bf16.mxu0 %v6353_v40  ;;  %v6426_v39 = vld [vmem:[#allocation10 + $0x610] ss:$24 sps:$4 sm:$0xff]   ;;  %v6431_v40 = vld [vmem:[#allocation10 + $0x644] ss:$24 sps:$4 sm:$0xff]  }
 0x6ed   :  { %4938 = vmatprep.subr.bf16.mxu1 %v6356_v41  ;;  %v6429_v41 = vld [vmem:[#allocation10 + $0x640] ss:$24 sps:$4 sm:$0xff]  }
 0x6ef   :  { %4966 = vmatpush1.bf16.msra.mxu0 %v6351_v43  ;;  %v6434_v43 = vld [vmem:[#allocation10 + $0x674] ss:$24 sps:$4 sm:$0xff]  }
 0x6f0   :  { %4939 = vmatpush1.bf16.msra.mxu1 %v6354_v44  ;;  %4967 = vmatprep.subr.bf16.mxu0 %v6359_v45  ;;  %v6432_v44 = vld [vmem:[#allocation10 + $0x670] ss:$24 sps:$4 sm:$0xff]   ;;  %v6437_v45 = vld [vmem:[#allocation10 + $0x6a4] ss:$24 sps:$4 sm:$0xff]  }
 0x6f3   :  { %4941 = vmatmul.mubr.bf16.vlgmr.msra.gmra.mrb[16].mxu1 %v6972_v5  ;;  %4968 = vmatpush1.bf16.msra.mxu0 %v6357_v46  ;;  %v6435_v46 = vld [vmem:[#allocation10 + $0x6a0] ss:$24 sps:$4 sm:$0xff]  }
 0x6f4   :  { %4969 = vmatprep.subr.bf16.mxu0 %v6362_v47  ;;  %v6440_v47 = vld [vmem:[#allocation10 + $0x6d4] ss:$24 sps:$4 sm:$0xff]  }
 0x6f7   :  { %4970 = vmatpush1.bf16.msra.mxu0 %v6360_v48  ;;  %v6438_v48 = vld [vmem:[#allocation10 + $0x6d0] ss:$24 sps:$4 sm:$0xff]  }
 0x6f8   :  { %4971 = vmatprep.subr.bf16.mxu0 %v6365_v49  ;;  %v6443_v49 = vld [vmem:[#allocation10 + $0x704] ss:$24 sps:$4 sm:$0xff]  }
 0x6fb   :  { %4972 = vmatpush1.bf16.msra.mxu0 %v6363_v52  ;;  %v6446_v52 = vld [vmem:[#allocation10 + $0x734] ss:$24 sps:$4 sm:$0xff]  }
 0x6fc   :  { %4973 = vmatprep.subr.bf16.mxu0 %v6368_v54  ;;  %v6449_v54 = vld [vmem:[#allocation10 + $0x764] ss:$24 sps:$4 sm:$0xff]  }
 0x6ff   :  { %4974 = vmatpush1.bf16.msra.mxu0 %v6366_v55  ;;  %v6447_v55 = vld [vmem:[#allocation10 + $0x760] ss:$24 sps:$4 sm:$0xff]  }
 0x700   :  { %4975 = vmatprep.subr.bf16.mxu0 %v6371_v57  ;;  %v6452_v57 = vld [vmem:[#allocation10 + $0x794] ss:$24 sps:$4 sm:$0xff]  }
 0x703   :  { %4976 = vmatpush1.bf16.msra.mxu0 %v6369_v59  ;;  %v6450_v59 = vld [vmem:[#allocation10 + $0x790] ss:$24 sps:$4 sm:$0xff]  }
 0x704   :  { %4977 = vmatprep.subr.bf16.mxu0 %v6374_v27  ;;  %v6455_v27 = vld [vmem:[#allocation10 + $0x7c4] ss:$24 sps:$4 sm:$0xff]  }
 0x707   :  { %4978 = vmatpush1.bf16.msra.mxu0 %v6372_v61  ;;  %v6453_v61 = vld [vmem:[#allocation10 + $0x7c0] ss:$24 sps:$4 sm:$0xff]  }
 0x708   :  { %4979 = vmatprep.subr.bf16.mxu0 %v6377_v62  ;;  %v6458_v62 = vld [vmem:[#allocation10 + $0x7f4] ss:$24 sps:$4 sm:$0xff]  }
 0x70b   :  { %4980 = vmatpush1.bf16.msra.mxu0 %v6375_v63  ;;  %v6456_v63 = vld [vmem:[#allocation10 + $0x7f0] ss:$24 sps:$4 sm:$0xff]  }
 0x70c   :  { %4990 = vmatprep.subr.bf16.mxu0 %v6380_v2  ;;  %v6461_v2 = vld [vmem:[#allocation10 + $0x824] ss:$24 sps:$4 sm:$0xff]  }
 0x70e   :  { %4982 = vmatmul.mubr.bf16.vlgmr.msra.gmra.mrb[12].mxu0 %v6931_v60  ;;  %v6393_v60 = vld [vmem:[#allocation10 + $0x400] ss:$24 sps:$4 sm:$0xff]  }
 0x70f   :  { %4991 = vmatpush1.bf16.msra.mxu0 %v6378_v3  ;;  %5022 = vmatprep.mubr.bf16.mxu0 %v6947_v13  ;;  %v6396_v13 = vld [vmem:[#allocation10 + $0x430] ss:$24 sps:$4 sm:$0xff]   ;;  %v6459_v3 = vld [vmem:[#allocation10 + $0x820] ss:$24 sps:$4 sm:$0xff]  }
 0x710   :  { %4992 = vmatprep.subr.bf16.mxu0 %v6383_v33  ;;  %v6464_v33 = vld [vmem:[#allocation10 + $0x854] ss:$24 sps:$4 sm:$0xff]  }
 0x713   :  { %4993 = vmatpush1.bf16.msra.mxu0 %v6381_v6  ;;  %v6462_v6 = vld [vmem:[#allocation10 + $0x850] ss:$24 sps:$4 sm:$0xff]  }
 0x714   :  { %4994 = vmatprep.subr.bf16.mxu0 %v6386_v7  ;;  %v6467_v7 = vld [vmem:[#allocation10 + $0x884] ss:$24 sps:$4 sm:$0xff]  }
 0x717   :  { %4995 = vmatpush1.bf16.msra.mxu0 %v6384_v9  ;;  %v6465_v9 = vld [vmem:[#allocation10 + $0x880] ss:$24 sps:$4 sm:$0xff]  }
 0x718   :  { %4996 = vmatprep.subr.bf16.mxu0 %v6389_v10  ;;  %v6470_v10 = vld [vmem:[#allocation10 + $0x8b4] ss:$24 sps:$4 sm:$0xff]  }
 0x71b   :  { %4997 = vmatpush1.bf16.msra.mxu0 %v6387_v12  ;;  %v6468_v12 = vld [vmem:[#allocation10 + $0x8b0] ss:$24 sps:$4 sm:$0xff]  }
 0x71c   :  { %4998 = vmatprep.subr.bf16.mxu0 %v6392_v14  ;;  %v6473_v14 = vld [vmem:[#allocation10 + $0x8e4] ss:$24 sps:$4 sm:$0xff]  }
 0x71f   :  { %4999 = vmatpush1.bf16.msra.mxu0 %v6390_v42  ;;  %v6471_v42 = vld [vmem:[#allocation10 + $0x8e0] ss:$24 sps:$4 sm:$0xff]  }
 0x720   :  { %5000 = vmatprep.subr.bf16.mxu0 %v6395_v15  ;;  %v6476_v15 = vld [vmem:[#allocation10 + $0x914] ss:$24 sps:$4 sm:$0xff]  }
 0x723   :  { %5001 = vmatpush1.bf16.msra.mxu0 %v6393_v60  ;;  %v6474_v60 = vld [vmem:[#allocation10 + $0x910] ss:$24 sps:$4 sm:$0xff]  }
 0x724   :  { %5002 = vmatprep.subr.bf16.mxu0 %v6398_v50  ;;  %v6479_v50 = vld [vmem:[#allocation10 + $0x944] ss:$24 sps:$4 sm:$0xff]  }
 0x727   :  { %5003 = vmatpush1.bf16.msra.mxu0 %v6396_v13  ;;  %v6477_v13 = vld [vmem:[#allocation10 + $0x940] ss:$24 sps:$4 sm:$0xff]  }
 0x728   :  { %5004 = vmatprep.subr.bf16.mxu0 %v6401_v19  ;;  %v6482_v19 = vld [vmem:[#allocation10 + $0x974] ss:$24 sps:$4 sm:$0xff]  }
 0x72b   :  { %5005 = vmatpush1.bf16.msra.mxu0 %v6399_v20  ;;  %v6480_v20 = vld [vmem:[#allocation10 + $0x970] ss:$24 sps:$4 sm:$0xff]  }
 0x72c   :  { %5006 = vmatprep.subr.bf16.mxu0 %v6404_v21  ;;  %v6485_v21 = vld [vmem:[#allocation10 + $0x9a4] ss:$24 sps:$4 sm:$0xff]  }
 0x72f   :  { %5007 = vmatpush1.bf16.msra.mxu0 %v6402_v56  ;;  %v6483_v56 = vld [vmem:[#allocation10 + $0x9a0] ss:$24 sps:$4 sm:$0xff]  }
 0x730   :  { %5008 = vmatprep.subr.bf16.mxu0 %v6407_v1  ;;  %v6488_v1 = vld [vmem:[#allocation10 + $0x9d4] ss:$24 sps:$4 sm:$0xff]  }
 0x733   :  { %5009 = vmatpush1.bf16.msra.mxu0 %v6405_v22  ;;  %v6486_v22 = vld [vmem:[#allocation10 + $0x9d0] ss:$24 sps:$4 sm:$0xff]  }
 0x734   :  { %5010 = vmatprep.subr.bf16.mxu0 %v6410_v23  ;;  %v6985_v23 = vld [vmem:[#allocation11] sm:$0x3f] }
 0x737   :  { %5011 = vmatpush1.bf16.msra.mxu0 %v6408_v51  ;;  %v6489_v51 = vld [vmem:[#allocation10 + $0xa00] ss:$24 sps:$4 sm:$0xff]  }
 0x738   :  { %5012 = vmatprep.subr.bf16.mxu0 %v6413_v24  ;;  %v2678_v24 = vrot.slane %v6985_v23, %v6864_v18  ;;  %v6500_v18 = vld [vmem:[#allocation10 + $0xa94] ss:$24 sps:$4 sm:$0xff]  }
 0x73b   :  { %5013 = vmatpush1.bf16.msra.mxu0 %v6411_v25  ;;  %v6494_v25 = vld [vmem:[#allocation10 + $0xa34] ss:$24 sps:$4 sm:$0xff]  }
 0x73c   :  { %5014 = vmatprep.subr.bf16.mxu0 %v6416_v26 }
 0x73f   :  { %5015 = vmatpush1.bf16.msra.mxu0 %v6414_v58 }
 0x740   :  { %5016 = vmatprep.subr.bf16.mxu0 %v6419_v29 }
 0x743   :  { %5017 = vmatpush1.bf16.msra.mxu0 %v6417_v30 }
 0x744   :  { %5018 = vmatprep.subr.bf16.mxu0 %v6422_v31 }
 0x747   :  { %5019 = vmatpush1.bf16.msra.mxu0 %v6420_v37  ;;  %v6492_v37 = vld [vmem:[#allocation10 + $0xa30] ss:$24 sps:$4 sm:$0xff]  }
 0x748   :  { %5020 = vmatprep.subr.bf16.mxu0 %v6425_v34 }
 0x74b   :  { %5021 = vmatpush1.bf16.msra.mxu0 %v6423_v35 }
 0x74c   :  { %5031 = vmatprep.subr.bf16.mxu0 %v6428_v38  ;;  %v6497_v38 = vld [vmem:[#allocation10 + $0xa64] ss:$24 sps:$4 sm:$0xff]  }
 0x74e   :  { %5023 = vmatmul.mubr.bf16.vlgmr.msra.gmra.mrb[12].mxu0 %v6949_v0  ;;  %v6441_v0 = vld [vmem:[#allocation10 + $0x700] ss:$24 sps:$4 sm:$0xff]  }
 0x74f   :  { %5032 = vmatpush1.bf16.msra.mxu0 %v6426_v39  ;;  %5063 = vmatprep.mubr.bf16.mxu0 %v6951_v16  ;;  %v6444_v16 = vld [vmem:[#allocation10 + $0x730] ss:$24 sps:$4 sm:$0xff]  }
 0x750   :  { %5033 = vmatprep.subr.bf16.mxu0 %v6431_v40  ;;  %v6498_v40 = vld [vmem:[#allocation10 + $0xa90] ss:$24 sps:$4 sm:$0xff]  }
 0x753   :  { %5034 = vmatpush1.bf16.msra.mxu0 %v6429_v41  ;;  %v6503_v41 = vld [vmem:[#allocation10 + $0xac4] ss:$24 sps:$4 sm:$0xff]  }
 0x754   :  { %5035 = vmatprep.subr.bf16.mxu0 %v6434_v43  ;;  %v6501_v43 = vld [vmem:[#allocation10 + $0xac0] ss:$24 sps:$4 sm:$0xff]  }
 0x757   :  { %5036 = vmatpush1.bf16.msra.mxu0 %v6432_v44 }
 0x758   :  { %5037 = vmatprep.subr.bf16.mxu0 %v6437_v45  ;;  %v6506_v45 = vld [vmem:[#allocation10 + $0xaf4] ss:$24 sps:$4 sm:$0xff]  }
 0x75b   :  { %5038 = vmatpush1.bf16.msra.mxu0 %v6435_v46 }
 0x75c   :  { %5039 = vmatprep.subr.bf16.mxu0 %v6440_v47 }
 0x75f   :  { %5040 = vmatpush1.bf16.msra.mxu0 %v6438_v48 }
 0x760   :  { %5041 = vmatprep.subr.bf16.mxu0 %v6443_v49  ;;  %v6504_v49 = vld [vmem:[#allocation10 + $0xaf0] ss:$24 sps:$4 sm:$0xff]  }
 0x763   :  { %5042 = vmatpush1.bf16.msra.mxu0 %v6441_v0  ;;  %v6509_v0 = vld [vmem:[#allocation10 + $0xb24] ss:$24 sps:$4 sm:$0xff]  }
 0x764   :  { %5043 = vmatprep.subr.bf16.mxu0 %v6446_v52  ;;  %v6507_v52 = vld [vmem:[#allocation10 + $0xb20] ss:$24 sps:$4 sm:$0xff]  }
 0x767   :  { %5044 = vmatpush1.bf16.msra.mxu0 %v6444_v16  ;;  %v6512_v16 = vld [vmem:[#allocation10 + $0xb54] ss:$24 sps:$4 sm:$0xff]  }
 0x768   :  { %5045 = vmatprep.subr.bf16.mxu0 %v6449_v54  ;;  %v6510_v54 = vld [vmem:[#allocation10 + $0xb50] ss:$24 sps:$4 sm:$0xff]  }
 0x76b   :  { %5046 = vmatpush1.bf16.msra.mxu0 %v6447_v55  ;;  %v6515_v55 = vld [vmem:[#allocation10 + $0xb84] ss:$24 sps:$4 sm:$0xff]  }
 0x76c   :  { %5047 = vmatprep.subr.bf16.mxu0 %v6452_v57 }
 0x76f   :  { %5048 = vmatpush1.bf16.msra.mxu0 %v6450_v59 }
 0x770   :  { %5049 = vmatprep.subr.bf16.mxu0 %v6455_v27  ;;  %v6513_v27 = vld [vmem:[#allocation10 + $0xb80] ss:$24 sps:$4 sm:$0xff]  }
 0x773   :  { %5050 = vmatpush1.bf16.msra.mxu0 %v6453_v61 }
 0x774   :  { %5051 = vmatprep.subr.bf16.mxu0 %v6458_v62  ;;  %v6518_v62 = vld [vmem:[#allocation10 + $0xbb4] ss:$24 sps:$4 sm:$0xff]  }
 0x777   :  { %5052 = vmatpush1.bf16.msra.mxu0 %v6456_v63  ;;  %v2682_v63 = vrot.slane %v6985_v23, %v6903_v36 }
 0x778   :  { %5053 = vmatprep.subr.bf16.mxu0 %v6461_v2  ;;  %v6516_v2 = vld [vmem:[#allocation10 + $0xbb0] ss:$24 sps:$4 sm:$0xff]  }
 0x77b   :  { %5054 = vmatpush1.bf16.msra.mxu0 %v6459_v3  ;;  %v2686_v3 = vrot.slane %v6985_v23, %v6880_v28 }
 0x77c   :  { %5055 = vmatprep.subr.bf16.mxu0 %v6464_v33  ;;  %v6521_v33 = vld [vmem:[#allocation10 + $0xbe4] ss:$24 sps:$4 sm:$0xff]  }
 0x77f   :  { %5056 = vmatpush1.bf16.msra.mxu0 %v6462_v6 }
 0x780   :  { %5057 = vmatprep.subr.bf16.mxu0 %v6467_v7 }
 0x783   :  { %5058 = vmatpush1.bf16.msra.mxu0 %v6465_v9 }
 0x784   :  { %5059 = vmatprep.subr.bf16.mxu0 %v6470_v10  ;;  %v6519_v10 = vld [vmem:[#allocation10 + $0xbe0] ss:$24 sps:$4 sm:$0xff]  }
 0x787   :  { %5060 = vmatpush1.bf16.msra.mxu0 %v6468_v12 }
 0x788   :  { %5061 = vmatprep.subr.bf16.mxu0 %v6473_v14 }
 0x78b   :  { %5062 = vmatpush1.bf16.msra.mxu0 %v6471_v42 }
 0x78c   :  { %5072 = vmatprep.subr.bf16.mxu0 %v6476_v15 }
 0x78e   :  { %5064 = vmatmul.mubr.bf16.vlgmr.msra.gmra.mrb[12].mxu0 %v6964_v32  ;;  %v6491_v32 = vld [vmem:[#allocation10 + $0xa04] ss:$24 sps:$4 sm:$0xff]  }
 0x78f   :  { %5073 = vmatpush1.bf16.msra.mxu0 %v6474_v60  ;;  %5104 = vmatprep.mubr.bf16.mxu0 %v6970_v4  ;;  %v2674_v4 = vrot.slane %v6985_v23, %v6861_v17  ;;  %v6495_v17 = vld [vmem:[#allocation10 + $0xa60] ss:$24 sps:$4 sm:$0xff]  }
 0x790   :  { %5074 = vmatprep.subr.bf16.mxu0 %v6479_v50 }
 0x793   :  { %5075 = vmatpush1.bf16.msra.mxu0 %v6477_v13 }
 0x794   :  { %5076 = vmatprep.subr.bf16.mxu0 %v6482_v19  ;;  %v6725_v19 = vmov 1983009808  }
 0x797   :  { %5077 = vmatpush1.bf16.msra.mxu0 %v6480_v20  ;;  %v5158_v20 = vunpack.c.l.s4 %v6725_v19 }
 0x798   :  { %5078 = vmatprep.subr.bf16.mxu0 %v6485_v21 }
 0x799   :  { %v5159_v21 = vunpack.c.0.s8 %v5158_v20 }
 0x79b   :  { %5079 = vmatpush1.bf16.msra.mxu0 %v6483_v56 }
 0x79c   :  { %5080 = vmatprep.subr.bf16.mxu0 %v6488_v1  ;;  %v5162_v1 = vsub.s32 %v5159_v21, %v6855_v8 }
 0x79f   :  { %5081 = vmatpush1.bf16.msra.mxu0 %v6486_v22 }
 0x7a0   :  { %5082 = vmatprep.subr.bf16.mxu0 %v6491_v32 }
 0x7a1   :  { %v4778_v26 = vpop.f32.mrb[8].mxu0 }
 0x7a2   :  { %v5864_v58 = vadd.f32 %v4778_v26, %v2674_v4  ;;  %v4780_v29 = vpop.f32.mrb[9].mxu0 }
 0x7a3   :  { %v5865_v30 = vadd.f32 %v4780_v29, %v2678_v24  ;;  %5083 = vmatpush1.bf16.msra.mxu0 %v6489_v51  ;;  %v4782_v31 = vpop.f32.mrb[10].mxu0 }
 0x7a4   :  { %v5849_v34 = vmul.f32 -1.442695, %v5864_v58  ;;  %v4783_v35 = vpop.f32.mrb[11].mxu0  ;;  %5084 = vmatprep.subr.bf16.mxu0 %v6494_v25  ;;  %v2694_v25 = vrot.slane %v6985_v23, %v643_v53 }
 0x7a5   :  { %v5850_v39 = vmul.f32 -1.442695, %v5865_v30 }
 0x7a6   :  { %6522 = vpow2.f32 %v5849_v34 }
 0x7a7   :  { %6524 = vpow2.f32 %v5850_v39  ;;  %5085 = vmatpush1.bf16.msra.mxu0 %v6492_v37 }
 0x7a8   :  { %5086 = vmatprep.subr.bf16.mxu0 %v6497_v38 }
 0x7ab   :  { %5087 = vmatpush1.bf16.msra.mxu0 %v6495_v17 }
 0x7ac   :  { %5088 = vmatprep.subr.bf16.mxu0 %v6500_v18 }
 0x7af   :  { %5089 = vmatpush1.bf16.msra.mxu0 %v6498_v40 }
 0x7b0   :  { %v6523_v44 = vpop.eup %6522  ;;  %5090 = vmatprep.subr.bf16.mxu0 %v6503_v41 }
 0x7b1   :  { %v6525_v46 = vpop.eup %6524  ;;  %v5131_v47 = vadd.f32 1.0, %v6523_v44 }
 0x7b2   :  { %v5132_v48 = vadd.f32 1.0, %v6525_v46 }
 0x7b3   :  { %6526 = vrcp.f32 %v5131_v47  ;;  %5091 = vmatpush1.bf16.msra.mxu0 %v6501_v43 }
 0x7b4   :  { %6528 = vrcp.f32 %v5132_v48  ;;  %5092 = vmatprep.subr.bf16.mxu0 %v6506_v45 }
 0x7b7   :  { %5093 = vmatpush1.bf16.msra.mxu0 %v6504_v49 }
 0x7b8   :  { %5094 = vmatprep.subr.bf16.mxu0 %v6509_v0 }
 0x7bb   :  { %5095 = vmatpush1.bf16.msra.mxu0 %v6507_v52 }
 0x7bc   :  { %5096 = vmatprep.subr.bf16.mxu0 %v6512_v16 }
 0x7bd   :  { %v6527_v57 = vpop.eup %6526 }
 0x7be   :  { %v6529_v59 = vpop.eup %6528 }
 0x7bf   :  { %5097 = vmatpush1.bf16.msra.mxu0 %v6510_v54  ;;  %v5155_v61 = vcombine.low %v6527_v57, %v6529_v59 }
 0x7c0   :  { %5098 = vmatprep.subr.bf16.mxu0 %v6515_v55 }
 0x7c1   :  { %v5163_v4 = vrot.slane %v5155_v61, %v5162_v1 }
 0x7c3   :  { %5099 = vmatpush1.bf16.msra.mxu0 %v6513_v27 }
 0x7c4   :  { %5100 = vmatprep.subr.bf16.mxu0 %v6518_v62 }
 0x7c6   :  { %v4942_v6 = vpop.f32.mrb[16].mxu1 }
 0x7c7   :  { %v5866_v7 = vadd.f32 %v4942_v6, %v2682_v63  ;;  %v4944_v9 = vpop.f32.mrb[17].mxu1  ;;  %5101 = vmatpush1.bf16.msra.mxu0 %v6516_v2 }
 0x7c8   :  { %v5867_v12 = vadd.f32 %v4944_v9, %v2686_v3  ;;  %v4946_v14 = vpop.f32.mrb[18].mxu1  ;;  %5102 = vmatprep.subr.bf16.mxu0 %v6521_v33 }
 0x7c9   :  { %v5851_v42 = vmul.f32 -1.442695, %v5866_v7  ;;  %v4947_v15 = vpop.f32.mrb[19].mxu1 }
 0x7ca   :  { %v5852_v60 = vmul.f32 -1.442695, %v5867_v12 }
 0x7cb   :  { %6530 = vpow2.f32 %v5851_v42  ;;  %5103 = vmatpush1.bf16.msra.mxu0 %v6519_v10 }
 0x7cc   :  { %6532 = vpow2.f32 %v5852_v60 }
 0x7ce   :  { %5105 = vmatmul.mubr.bf16.vlgmr.msra.gmra.mrb[12].mxu0 %v6972_v5  ;;  %v2690_v5 = vrot.slane %v6985_v23, %v639_v11 }
 0x7d5   :  { %v6531_v36 = vpop.eup %6530 }
 0x7d6   :  { %v6533_v50 = vpop.eup %6532  ;;  %v5133_v28 = vadd.f32 1.0, %v6531_v36 }
 0x7d7   :  { %v5134_v13 = vadd.f32 1.0, %v6533_v50 }
 0x7d8   :  { %6534 = vrcp.f32 %v5133_v28 }
 0x7d9   :  { %6536 = vrcp.f32 %v5134_v13 }
 0x7e2   :  { %v6535_v56 = vpop.eup %6534 }
 0x7e3   :  { %v6537_v22 = vpop.eup %6536 }
 0x7e4   :  { %v5156_v32 = vcombine.low %v6535_v56, %v6537_v22 }
 0x7e6   :  { %v5170_v51 = vrot.slane %v5156_v32, %v5162_v1 }
 0x7e8   :  { %v5171_v24 = vcombine.low %v5163_v4, %v5170_v51 }
 0x7ea   :  { %5182 = vst [vmem:[#allocation13] sm:$0xff] %v5171_v24 }
 0x8a1   :  { %v5106_v26 = vpop.f32.mrb[12].mxu0 }
 0x8a2   :  { %v5868_v58 = vadd.f32 %v5106_v26, %v2690_v5  ;;  %v5108_v29 = vpop.f32.mrb[13].mxu0 }
 0x8a3   :  { %v5869_v30 = vadd.f32 %v5108_v29, %v2694_v25  ;;  %v5110_v31 = vpop.f32.mrb[14].mxu0 }
 0x8a4   :  { %v5853_v37 = vmul.f32 -1.442695, %v5868_v58  ;;  %v5111_v34 = vpop.f32.mrb[15].mxu0 }
 0x8a5   :  { %v5854_v35 = vmul.f32 -1.442695, %v5869_v30 }
 0x8a6   :  { %6538 = vpow2.f32 %v5853_v37 }
 0x8a7   :  { %6540 = vpow2.f32 %v5854_v35 }
 0x8b0   :  { %v6539_v38 = vpop.eup %6538 }
 0x8b1   :  { %v6541_v39 = vpop.eup %6540  ;;  %v5135_v17 = vadd.f32 1.0, %v6539_v38 }
 0x8b2   :  { %v5136_v18 = vadd.f32 1.0, %v6541_v39 }
 0x8b3   :  { %6542 = vrcp.f32 %v5135_v17 }
 0x8b4   :  { %6544 = vrcp.f32 %v5136_v18 }
 0x8bd   :  { %v6543_v8 = vpop.eup %6542 }
 0x8be   :  { %v6545_v53 = vpop.eup %6544 }
 0x8bf   :  { %v5172_v11 = vcombine.low %v6543_v8, %v6545_v53 }
 0x8c1   :  { %5855 = vst.sshfl [vmem:[#allocation13 + $0x8] sm:$0x33 pattern:$0x76325410] %v5172_v11 }
 0x8c2   :  { %6690 = shalt.err (!%p6687_p10)
}
 0x8c3   :  { %s6691_s9 = scalar_lea.hbm %s7022_s7, 192 }
 0x8c4   :  { %p6692_p11 = scmp.ne.s32.totalorder %s7022_s7, %s6691_s9  ;;  %p6695_p12 = scmp.lt.u32.totalorder %s6691_s9, %s7022_s7 }
 0x8c6   :  { %p6697_p13 = pnand %p6695_p12, %p6692_p11 }
 0x8c8   :  { %6700 = shalt.err (!%p6697_p13)
}
 0x8c9   :  { %5193 = dma.vmem_to_hbm [thread:$0]  %s5191_s6, 192, %s7022_s7, [#allocation4]  }
 0x8ca   :  { %6709 = dma.done.wait [#allocation4], 192  }
 0x8cb   :  { %6710 = vsyncadd [#allocation4], 4294967104 }
 0x8cc   :  { %5197 = vsyncpa [#allocation3], 1 }
 0x8cd   :  { %5198 = vsyncpa [#allocation6], 1 }
 0x8ce   :  { %5199 = vsyncpa [#allocation9], 1 }
 0x8cf   :  { %5200 = vsyncpa [#allocation12], 1 }
 0x8d0   :  { %5201 = vsyncpa [#allocation4], 1 }

</bundles_post_ra>
